<compile_context>
chip_gen: v7x
topology: tpu7x:2x2x1
jax: 0.10.0
libtpu: 0.0.40
codegen_flags: <defaults>
</compile_context>

<pallas_src>
import jax
import jax.numpy as jnp
from jax.experimental import pallas as pl
from jax.experimental.pallas import tpu as pltpu

NEG_SLOPE = 0.01   # nn.LeakyReLU default
BN_EPS = 1e-5


# ----------------------------- Pallas kernels ------------------------------

def conv_mm_kernel(p_ref, w_ref, s_ref, t_ref, o_ref):
    """One conv layer as a single MXU matmul over im2col patches.
    Epilogue fuses folded eval BatchNorm2d scale/shift (conv bias already
    folded into the shift) and LeakyReLU."""
    acc = jnp.dot(p_ref[...].astype(jnp.bfloat16), w_ref[...],
                  preferred_element_type=jnp.float32)
    v = acc * s_ref[...] + t_ref[...]
    o_ref[...] = jnp.where(v > 0.0, v, NEG_SLOPE * v).astype(o_ref.dtype)


def head_kernel(h_ref, lab_ref, wt_ref, bt_ref, w2a_ref, w2b_ref,
                s2_ref, t2_ref, wo_ref, bo_ref, o_ref):
    """Per-batch-element head:
       y = txt_emb(label)                                   (Linear 130->256)
       cat([x, y.repeat(4,4)], C) -> 1x1 conv (512->512)  == x @ W2a + y @ W2b
       folded BN2d + LeakyReLU
       to_out: Linear(8192, 1) + Sigmoid  (weight pre-permuted to (pos, ch))."""
    y = jnp.dot(lab_ref[...].astype(jnp.bfloat16), wt_ref[...],
                preferred_element_type=jnp.float32) + bt_ref[...]          # (1, 256)
    hx = jnp.dot(h_ref[...].astype(jnp.bfloat16), w2a_ref[...],
                 preferred_element_type=jnp.float32)                       # (16, 512)
    hy = jnp.dot(y.astype(jnp.bfloat16), w2b_ref[...],
                 preferred_element_type=jnp.float32)                       # (1, 512)
    v = (hx + hy) * s2_ref[...] + t2_ref[...]                              # BN (conv bias folded)
    v = jnp.where(v > 0.0, v, NEG_SLOPE * v)                               # LeakyReLU
    logit = jnp.sum(jnp.sum(v * wo_ref[...], axis=1, keepdims=True),
                    axis=0, keepdims=True) + bo_ref[...]                   # (1, 1)
    o_ref[...] = (1.0 / (1.0 + jnp.exp(-logit))).astype(o_ref.dtype)       # Sigmoid


# ----------------------------- wrappers / glue ------------------------------

def im2col(x_nhwc, k, stride, pad):
    """Extract k*k patches (pure layout glue in XLA).
    Returns ((B*Ho*Wo, k*k*C), Ho, Wo); K-axis order is (dy, dx, ci)."""
    B, H, W, C = x_nhwc.shape
    if pad:
        x_nhwc = jnp.pad(x_nhwc, ((0, 0), (pad, pad), (pad, pad), (0, 0)))
    Hp, Wp = H + 2 * pad, W + 2 * pad
    Ho = (Hp - k) // stride + 1
    Wo = (Wp - k) // stride + 1
    cols = []
    for dy in range(k):
        for dx in range(k):
            cols.append(x_nhwc[:, dy:dy + stride * (Ho - 1) + 1:stride,
                               dx:dx + stride * (Wo - 1) + 1:stride, :])
    patches = jnp.concatenate(cols, axis=-1)            # (B, Ho, Wo, k*k*C)
    return patches.reshape(B * Ho * Wo, k * k * C), Ho, Wo


def conv_bn_lrelu(x_nhwc, w_mat, scale, shift, *, k, stride, pad):
    """Conv2d(k, stride, pad) + eval BatchNorm2d + LeakyReLU, one pallas_call."""
    B = x_nhwc.shape[0]
    patches, Ho, Wo = im2col(x_nhwc, k, stride, pad)
    Co = w_mat.shape[1]
    out = pl.pallas_call(
        conv_mm_kernel,
        out_shape=jax.ShapeDtypeStruct((patches.shape[0], Co), jnp.float32),
    )(patches, w_mat, scale.reshape(1, -1), shift.reshape(1, -1))
    return out.reshape(B, Ho, Wo, Co)


def head(h4, label, p):
    B = h4.shape[0]
    h = h4.reshape(B, 16, 256)            # (B, 4, 4, 256) -> (B, pos, C)
    lab = label.reshape(B, 1, 130)
    out = pl.pallas_call(
        head_kernel,
        out_shape=jax.ShapeDtypeStruct((B, 1, 1), jnp.float32),
        grid=(B,),
        in_specs=[
            pl.BlockSpec((None, 16, 256), lambda b: (b, 0, 0)),
            pl.BlockSpec((None, 1, 130), lambda b: (b, 0, 0)),
            pl.BlockSpec((130, 256), lambda b: (0, 0)),
            pl.BlockSpec((1, 256), lambda b: (0, 0)),
            pl.BlockSpec((256, 512), lambda b: (0, 0)),
            pl.BlockSpec((256, 512), lambda b: (0, 0)),
            pl.BlockSpec((1, 512), lambda b: (0, 0)),
            pl.BlockSpec((1, 512), lambda b: (0, 0)),
            pl.BlockSpec((16, 512), lambda b: (0, 0)),
            pl.BlockSpec((1, 1), lambda b: (0, 0)),
        ],
        out_specs=pl.BlockSpec((None, 1, 1), lambda b: (b, 0, 0)),
        compiler_params=pltpu.CompilerParams(
            dimension_semantics=("parallel",)),   # batch elems independent
    )(h, lab, p["wt"], p["bt"], p["w2a"], p["w2b"],
      p["s2"], p["t2"], p["wo"], p["bo"])
    return out.reshape(B, 1)


# ------------------------------ model forward -------------------------------

def discriminator_forward(params, x_nchw, label):
    h = jnp.transpose(x_nchw, (0, 2, 3, 1))               # NCHW -> NHWC
    for layer in params["convs"]:
        h = conv_bn_lrelu(h, layer["w"], layer["scale"], layer["shift"],
                          k=layer["k"], stride=layer["s"], pad=layer["pad"])
        # TODO(synk): Dropout(0.1) is identity in eval mode (no stochastic drop).
    # h: (B, 4, 4, 256) == conv_layers1 output
    return head(h, label, params)                          # (B, 1)


# ------------------------------ parameter init -------------------------------

def init_params(key):
    it = iter(jax.random.split(key, 64))

    def nrm(shape, scale=0.05):
        return (scale * jax.random.normal(next(it), shape)).astype(jnp.float32)

    p = {}

    # txt_emb: Linear(130, 256)  (PyTorch weight (256, 130), bias (256,))
    wt = nrm((256, 130))
    p["wt"] = wt.T.astype(jnp.bfloat16)                    # (130, 256)
    p["bt"] = nrm((256,)).reshape(1, 256)

    # conv_layers1: 4 x (Conv2d 5x5 + BN2d(eval) + LeakyReLU + Dropout)
    p["convs"] = []
    for ci, co, k, s, pad in [(3, 32, 5, 2, 0), (32, 64, 5, 2, 1),
                              (64, 128, 5, 2, 1), (128, 256, 5, 1, 1)]:
        w = nrm((co, ci, k, k))                            # PyTorch Conv2d layout
        b = nrm((co,))
        gamma = 1.0 + nrm((co,))
        beta = nrm((co,))
        scale = gamma / jnp.sqrt(1.0 + BN_EPS)             # running mean=0, var=1
        shift = b * scale + beta                           # conv bias folded through BN
        # matmul weight (k*k*ci, co) matching im2col K-order (dy, dx, ci)
        w_mat = jnp.transpose(w, (2, 3, 1, 0)).reshape(k * k * ci, co)
        p["convs"].append(dict(w=w_mat.astype(jnp.bfloat16),
                               scale=scale.astype(jnp.float32),
                               shift=shift.astype(jnp.float32),
                               k=k, s=s, pad=pad))

    # conv_layers2: Conv2d(512, 512, 1) + BN2d + LeakyReLU, split over the concat:
    #   channels [0:256] come from conv_layers1, [256:512] from the broadcast txt_emb.
    w2 = nrm((512, 512, 1, 1))
    b2 = nrm((512,))
    g2 = 1.0 + nrm((512,))
    be2 = nrm((512,))
    s2 = g2 / jnp.sqrt(1.0 + BN_EPS)
    p["w2a"] = jnp.transpose(w2[:, :256, 0, 0], (1, 0)).astype(jnp.bfloat16)  # (256, 512)
    p["w2b"] = jnp.transpose(w2[:, 256:, 0, 0], (1, 0)).astype(jnp.bfloat16)  # (256, 512)
    p["s2"] = s2.reshape(1, 512).astype(jnp.float32)
    p["t2"] = (b2 * s2 + be2).reshape(1, 512).astype(jnp.float32)

    # to_out: Linear(8192, 1) + Sigmoid.  PyTorch flattens NCHW (c*16 + pos);
    # permute the weight to (pos, ch) to match the in-kernel NHWC layout.
    wo = nrm((1, 8192))
    bo = nrm((1,))
    p["wo"] = wo.reshape(512, 16).T.astype(jnp.float32)    # (16, 512)
    p["bo"] = bo.reshape(1, 1)
    return p


# ----------------------------------- main ------------------------------------

if __name__ == "__main__":
    key = jax.random.PRNGKey(0)
    kp, kx, kl = jax.random.split(key, 3)
    params = init_params(kp)

    B = 2
    x = jax.random.normal(kx, (B, 3, 64, 64), dtype=jnp.float32)   # image (NCHW)
    label = jax.random.normal(kl, (B, 130), dtype=jnp.float32)     # text/label embedding

    out = discriminator_forward(params, x, label)
    out = jax.block_until_ready(out)
    assert out.shape == (B, 1), out.shape
    assert out.dtype == jnp.float32
    assert bool(jnp.all((out >= 0.0) & (out <= 1.0)))               # sigmoid range
    print("KERNEL_OK")
</pallas_src>

<mosaic_0001>
module attributes {stable_mosaic.version = 11 : i64} {
  func.func @conv_mm_kernel(%arg0: memref<1800x75xf32, #tpu.memory_space<vmem>>, %arg1: memref<75x32xbf16, #tpu.memory_space<vmem>>, %arg2: memref<1x32xf32, #tpu.memory_space<vmem>>, %arg3: memref<1x32xf32, #tpu.memory_space<vmem>>, %arg4: memref<1800x32xf32, #tpu.memory_space<vmem>>) attributes {dimension_semantics = [], scalar_prefetch = 0 : i64, scratch_operands = 0 : i64, tpu.core_type = #tpu.core_type<tc>} {
    %c0 = arith.constant 0 : index
    %c0_0 = arith.constant 0 : index
    %0 = vector.load %arg0[%c0, %c0_0] : memref<1800x75xf32, #tpu.memory_space<vmem>>, vector<1800x75xf32>
    %1 = arith.truncf %0 : vector<1800x75xf32> to vector<1800x75xbf16>
    %c0_1 = arith.constant 0 : index
    %c0_2 = arith.constant 0 : index
    %2 = vector.load %arg1[%c0_1, %c0_2] : memref<75x32xbf16, #tpu.memory_space<vmem>>, vector<75x32xbf16>
    %cst = arith.constant dense<0.000000e+00> : vector<1800x32xf32>
    %3 = tpu.matmul %1, %2, %cst {dimension_numbers = #tpu.dot_dimension_numbers<[1], [0], [0], [1], [0, 0, 1, 1], [], []>} : vector<1800x75xbf16>, vector<75x32xbf16>, vector<1800x32xf32> -> vector<1800x32xf32>
    %c0_3 = arith.constant 0 : index
    %c0_4 = arith.constant 0 : index
    %4 = vector.load %arg2[%c0_3, %c0_4] : memref<1x32xf32, #tpu.memory_space<vmem>>, vector<1x32xf32>
    %5 = vector.broadcast %4 : vector<1x32xf32> to vector<1800x32xf32>
    %6 = arith.mulf %3, %5 : vector<1800x32xf32>
    %c0_5 = arith.constant 0 : index
    %c0_6 = arith.constant 0 : index
    %7 = vector.load %arg3[%c0_5, %c0_6] : memref<1x32xf32, #tpu.memory_space<vmem>>, vector<1x32xf32>
    %8 = vector.broadcast %7 : vector<1x32xf32> to vector<1800x32xf32>
    %9 = arith.addf %6, %8 : vector<1800x32xf32>
    %cst_7 = arith.constant 0.000000e+00 : f32
    %10 = vector.broadcast %cst_7 : f32 to vector<1800x32xf32>
    %11 = arith.cmpf ogt, %9, %10 : vector<1800x32xf32>
    %cst_8 = arith.constant 0.00999999977 : f32
    %12 = vector.broadcast %cst_8 : f32 to vector<1800x32xf32>
    %13 = arith.mulf %12, %9 : vector<1800x32xf32>
    %14 = arith.select %11, %9, %13 : vector<1800x32xi1>, vector<1800x32xf32>
    %c0_9 = arith.constant 0 : index
    %c0_10 = arith.constant 0 : index
    %15 = vector.load %arg4[%c0_9, %c0_10] : memref<1800x32xf32, #tpu.memory_space<vmem>>, vector<1800x32xf32>
    tpu.vector_store %arg4[%c0_9, %c0_10], %14 {strides = array<i32>} : memref<1800x32xf32, #tpu.memory_space<vmem>>, vector<1800x32xf32>,
    return
  }
}

</mosaic_0001>

<bundles_post_ra>
// kernel: tpu_custom_call.1
= control target key start
LH: loop header
LB: loop body
LE: loop exit
PB: predicated region body
PF: predicated region fallthrough
CT: control target
= control target key end

     0   :  { %v3773_v0 = vmov 0.0   ;;  %vm3774_vm0 = vmmov 0   ;;  %vm735_vm1 = vcmask 1044480   ;;  %vm736_vm2 = vcmask 1045504   ;;  %s6226_s1 = inlined_call_operand.vmem [shape: bf16[75,32], index: 1, kind: input, shape index: {}]   ;;  %s6227_s0 = inlined_call_operand.vmem [shape: f32[1800,75], index: 0, kind: input, shape index: {}]   ;;  %s6228_s2 = inlined_call_operand.vmem [shape: f32[1,32], index: 2, kind: input, shape index: {}]   ;;  %s6229_s3 = inlined_call_operand.vmem [shape: f32[1,32], index: 3, kind: input, shape index: {}]   ;;  %s6230_s4 = inlined_call_operand.vmem [shape: f32[1800,32], index: 4, kind: output, shape index: {}]  }
   0x1   :  { %3285 = vmatprep.subr.bf16.mxu0 %v3773_v0  ;;  %v3760_v1 = vld [vmem:[%s6226_s1] sm:$0xff]   ;;  %3747 = vmatprep.subr.bf16.mxu1 %v3773_v0  ;;  %v3761_v2 = vld [vmem:[%s6226_s1 + $0x8] sm:$0xff]   ;;  %v3762_v3 = vld [vmem:[%s6226_s1 + $0x10] sm:$0xff]   ;;  %v3775_v4 = vmov 65535   ;;  %vm395_vm3 = vcmask 613376   ;;  %vm2817_vm4 = vcmask 261120  }
   0x2   :  { %3286 = vmatpush3.bf16.msra.mxu0 %v3760_v1  ;;  %3752 = vmatpush3.bf16.msra.mxu1 %v3760_v1  ;;  %v737_v5 = vsel %vm735_vm1, 4294967295, %v3775_v4  ;;  %v3763_v6 = vld [vmem:[%s6226_s1 + $0x18] sm:$0xff]   ;;  %v3764_v7 = vld [vmem:[%s6226_s1 + $0x20] sm:$0x3f]   ;;  %v19_v11 = vld [vmem:[%s6227_s0 + $0x8] sm:$0xff] }
   0x3   :  { %3287 = vmatprep.subr.bf16.mxu0 %v3773_v0  ;;  %3748 = vmatprep.subr.bf16.mxu1 %v3773_v0  ;;  %v738_v8 = vsel %vm736_vm2, %v737_v5, 0  ;;  %v18_v9 = vld [vmem:[%s6227_s0] sm:$0xff]  ;;  %v132_v12 = vld [vmem:[%s6227_s0 + $0x390] sm:$0xff]  ;;  %v133_v13 = vld [vmem:[%s6227_s0 + $0x398] sm:$0xff] }
   0x4   :  { %3295 = vmatprep.mubr.msk.bf16.mxu0 %vm3774_vm0, %v3773_v0  ;;  %3523 = vmatprep.mubr.msk.bf16.mxu1 %vm3774_vm0, %v3773_v0  ;;  %v740_v10 = vand.u32 %v3764_v7, %v738_v8  ;;  %v243_v14 = vpack.c.bf16 %v19_v11, %v18_v9  ;;  %v300_v15 = vpack.c.bf16 %v133_v13, %v132_v12  ;;  %v20_v16 = vld [vmem:[%s6227_s0 + $0x10] sm:$0xff]  ;;  %v21_v17 = vld [vmem:[%s6227_s0 + $0x18] sm:$0xff]  ;;  %v134_v18 = vld [vmem:[%s6227_s0 + $0x3a0] sm:$0xff] }
   0x5   :  { %v135_v19 = vld [vmem:[%s6227_s0 + $0x3a8] sm:$0xff]  ;;  %v244_v20 = vpack.c.bf16 %v21_v17, %v20_v16  ;;  %v22_v22 = vld [vmem:[%s6227_s0 + $0x20] sm:$0xff]  ;;  %v136_v24 = vld [vmem:[%s6227_s0 + $0x3b0] sm:$0xff] }
   0x6   :  { %3288 = vmatpush3.bf16.msra.mxu0 %v3761_v2  ;;  %3753 = vmatpush3.bf16.msra.mxu1 %v3761_v2  ;;  %v301_v21 = vpack.c.bf16 %v135_v19, %v134_v18  ;;  %v23_v23 = vld [vmem:[%s6227_s0 + $0x28] sm:$0xff]  ;;  %v137_v25 = vld [vmem:[%s6227_s0 + $0x3b8] sm:$0xff]  ;;  %v24_v28 = vld [vmem:[%s6227_s0 + $0x30] sm:$0xff] }
   0x7   :  { %3289 = vmatprep.subr.bf16.mxu0 %v3773_v0  ;;  %3749 = vmatprep.subr.bf16.mxu1 %v3773_v0  ;;  %v245_v26 = vpack.c.bf16 %v23_v23, %v22_v22  ;;  %v302_v27 = vpack.c.bf16 %v137_v25, %v136_v24  ;;  %v25_v29 = vld [vmem:[%s6227_s0 + $0x38] sm:$0xff]  ;;  %v138_v30 = vld [vmem:[%s6227_s0 + $0x3c0] sm:$0xff]  ;;  %v139_v31 = vld [vmem:[%s6227_s0 + $0x3c8] sm:$0xff] }
   0x8   :  { %v246_v32 = vpack.c.bf16 %v25_v29, %v24_v28  ;;  %v303_v33 = vpack.c.bf16 %v139_v31, %v138_v30  ;;  %v26_v34 = vld [vmem:[%s6227_s0 + $0x40] sm:$0xff]  ;;  %v27_v35 = vld [vmem:[%s6227_s0 + $0x48] sm:$0xff]  ;;  %v140_v36 = vld [vmem:[%s6227_s0 + $0x3d0] sm:$0xff] }
   0x9   :  { %v141_v37 = vld [vmem:[%s6227_s0 + $0x3d8] sm:$0xff]  ;;  %v247_v38 = vpack.c.bf16 %v27_v35, %v26_v34  ;;  %v28_v40 = vld [vmem:[%s6227_s0 + $0x50] sm:$0xff]  ;;  %v142_v42 = vld [vmem:[%s6227_s0 + $0x3e0] sm:$0xff] }
   0xa   :  { %3290 = vmatpush3.bf16.msra.mxu0 %v3762_v3  ;;  %3754 = vmatpush3.bf16.msra.mxu1 %v3762_v3  ;;  %v304_v39 = vpack.c.bf16 %v141_v37, %v140_v36  ;;  %v29_v41 = vld [vmem:[%s6227_s0 + $0x58] sm:$0xff]  ;;  %v143_v43 = vld [vmem:[%s6227_s0 + $0x3e8] sm:$0xff]  ;;  %v30_v46 = vld [vmem:[%s6227_s0 + $0x60] sm:$0xff] }
   0xb   :  { %3291 = vmatprep.subr.bf16.mxu0 %v3773_v0  ;;  %3750 = vmatprep.subr.bf16.mxu1 %v3773_v0  ;;  %v248_v44 = vpack.c.bf16 %v29_v41, %v28_v40  ;;  %v305_v45 = vpack.c.bf16 %v143_v43, %v142_v42  ;;  %v31_v47 = vld [vmem:[%s6227_s0 + $0x68] sm:$0xff]  ;;  %v144_v48 = vld [vmem:[%s6227_s0 + $0x3f0] sm:$0xff]  ;;  %v145_v49 = vld [vmem:[%s6227_s0 + $0x3f8] sm:$0xff] }
   0xc   :  { %v249_v50 = vpack.c.bf16 %v31_v47, %v30_v46  ;;  %v306_v51 = vpack.c.bf16 %v145_v49, %v144_v48  ;;  %v32_v52 = vld [vmem:[%s6227_s0 + $0x70] sm:$0xff]  ;;  %v33_v53 = vld [vmem:[%s6227_s0 + $0x78] sm:$0xff]  ;;  %v146_v54 = vld [vmem:[%s6227_s0 + $0x400] sm:$0xff] }
   0xd   :  { %v147_v55 = vld [vmem:[%s6227_s0 + $0x408] sm:$0xff]  ;;  %v250_v56 = vpack.c.bf16 %v33_v53, %v32_v52  ;;  %v34_v58 = vld [vmem:[%s6227_s0 + $0x80] sm:$0xff]  ;;  %v148_v60 = vld [vmem:[%s6227_s0 + $0x410] sm:$0xff] }
   0xe   :  { %3292 = vmatpush3.bf16.msra.mxu0 %v3763_v6  ;;  %3755 = vmatpush3.bf16.msra.mxu1 %v3763_v6  ;;  %v307_v57 = vpack.c.bf16 %v147_v55, %v146_v54  ;;  %v35_v59 = vld [vmem:[%s6227_s0 + $0x88] sm:$0xff]  ;;  %v149_v61 = vld [vmem:[%s6227_s0 + $0x418] sm:$0xff]  ;;  %v36_v1 = vld [vmem:[%s6227_s0 + $0x90] sm:$0xff] }
   0xf   :  { %3293 = vmatprep.subr.bf16.mxu0 %v3773_v0  ;;  %3751 = vmatprep.subr.bf16.mxu1 %v3773_v0  ;;  %v251_v62 = vpack.c.bf16 %v35_v59, %v34_v58  ;;  %v308_v63 = vpack.c.bf16 %v149_v61, %v148_v60  ;;  %v37_v2 = vld [vmem:[%s6227_s0 + $0x98] sm:$0xff]  ;;  %v150_v3 = vld [vmem:[%s6227_s0 + $0x420] sm:$0xff]  ;;  %v151_v4 = vld [vmem:[%s6227_s0 + $0x428] sm:$0xff] }
  0x10   :  { %v252_v5 = vpack.c.bf16 %v37_v2, %v36_v1  ;;  %v309_v6 = vpack.c.bf16 %v151_v4, %v150_v3  ;;  %v38_v7 = vld [vmem:[%s6227_s0 + $0xa0] sm:$0xff]  ;;  %v39_v8 = vld [vmem:[%s6227_s0 + $0xa8] sm:$0xff]  ;;  %v152_v9 = vld [vmem:[%s6227_s0 + $0x430] sm:$0xff] }
  0x11   :  { %v253_v11 = vpack.c.bf16 %v39_v8, %v38_v7  ;;  %v40_v13 = vld [vmem:[%s6227_s0 + $0xb0] sm:$0xff]  ;;  %v155_v16 = vld [vmem:[%s6227_s0 + $0x448] sm:$0xff]  ;;  %v42_v19 = vld [vmem:[%s6227_s0 + $0xc0] sm:$0xff] }
  0x12   :  { %3294 = vmatpush3.bf16.msra.mxu0 %v740_v10  ;;  %3756 = vmatpush3.bf16.msra.mxu1 %v740_v10  ;;  %v153_v10 = vld [vmem:[%s6227_s0 + $0x438] sm:$0xff]  ;;  %v44_v25 = vld [vmem:[%s6227_s0 + $0xd0] sm:$0xff]  ;;  %v159_v28 = vld [vmem:[%s6227_s0 + $0x468] sm:$0xff] }
  0x13   :  { %v310_v12 = vpack.c.bf16 %v153_v10, %v152_v9  ;;  %v157_v22 = vld [vmem:[%s6227_s0 + $0x458] sm:$0xff]  ;;  %v46_v31 = vld [vmem:[%s6227_s0 + $0xe0] sm:$0xff]  ;;  %v48_v37 = vld [vmem:[%s6227_s0 + $0xf0] sm:$0xff] }
  0x14   :  { %v161_v34 = vld [vmem:[%s6227_s0 + $0x478] sm:$0xff]  ;;  %v163_v40 = vld [vmem:[%s6227_s0 + $0x488] sm:$0xff]  ;;  %v50_v43 = vld [vmem:[%s6227_s0 + $0x100] sm:$0xff] }
  0x15   :  { %3296 = vmatmul.mubr.msk.bf16.vlgmr.msra.gmra.mrb[0].mxu0 %vm395_vm3, %v243_v14  ;;  %3524 = vmatmul.mubr.msk.bf16.vlgmr.msra.gmra.mrb[0].mxu1 %vm395_vm3, %v300_v15  ;;  %v41_v14 = vld [vmem:[%s6227_s0 + $0xb8] sm:$0xff]  ;;  %v154_v15 = vld [vmem:[%s6227_s0 + $0x440] sm:$0xff]  ;;  %v52_v49 = vld [vmem:[%s6227_s0 + $0x110] sm:$0xff] }
  0x16   :  { %3299 = vmatprep.mubr.msk.bf16.mxu0 %vm3774_vm0, %v3773_v0  ;;  %3527 = vmatprep.mubr.msk.bf16.mxu1 %vm3774_vm0, %v3773_v0  ;;  %v254_v17 = vpack.c.bf16 %v41_v14, %v40_v13  ;;  %v311_v18 = vpack.c.bf16 %v155_v16, %v154_v15  ;;  %v165_v46 = vld [vmem:[%s6227_s0 + $0x498] sm:$0xff]  ;;  %v167_v52 = vld [vmem:[%s6227_s0 + $0x4a8] sm:$0xff]  ;;  %v54_v55 = vld [vmem:[%s6227_s0 + $0x120] sm:$0xff] }
  0x17   :  { %v169_v58 = vld [vmem:[%s6227_s0 + $0x4b8] sm:$0xff]  ;;  %v56_v61 = vld [vmem:[%s6227_s0 + $0x130] sm:$0xff]  ;;  %v171_v1 = vld [vmem:[%s6227_s0 + $0x4c8] sm:$0xff] }
  0x18   :  { %v58_v4 = vld [vmem:[%s6227_s0 + $0x140] sm:$0xff]  ;;  %v173_v7 = vld [vmem:[%s6227_s0 + $0x4d8] sm:$0xff]  ;;  %v60_v10 = vld [vmem:[%s6227_s0 + $0x150] sm:$0xff] }
  0x19   :  { %v175_v13 = vld [vmem:[%s6227_s0 + $0x4e8] sm:$0xff]  ;;  %v62_v16 = vld [vmem:[%s6227_s0 + $0x160] sm:$0xff] }
  0x1d   :  { %3300 = vmatmul.mubr.msk.bf16.gmra.mrb[4].mxu0 %vm395_vm3, %v244_v20  ;;  %3528 = vmatmul.mubr.msk.bf16.gmra.mrb[4].mxu1 %vm395_vm3, %v301_v21  ;;  %v43_v20 = vld [vmem:[%s6227_s0 + $0xc8] sm:$0xff]  ;;  %v156_v21 = vld [vmem:[%s6227_s0 + $0x450] sm:$0xff] }
  0x1e   :  { %3303 = vmatprep.mubr.msk.bf16.mxu0 %vm3774_vm0, %v3773_v0  ;;  %3531 = vmatprep.mubr.msk.bf16.mxu1 %vm3774_vm0, %v3773_v0  ;;  %v255_v23 = vpack.c.bf16 %v43_v20, %v42_v19  ;;  %v312_v24 = vpack.c.bf16 %v157_v22, %v156_v21  ;;  %v177_v19 = vld [vmem:[%s6227_s0 + $0x4f8] sm:$0xff]  ;;  %v64_v22 = vld [vmem:[%s6227_s0 + $0x170] sm:$0xff] }
  0x25   :  { %3304 = vmatmul.mubr.msk.bf16.gmra.mrb[8].mxu0 %vm395_vm3, %v245_v26  ;;  %3532 = vmatmul.mubr.msk.bf16.gmra.mrb[8].mxu1 %vm395_vm3, %v302_v27  ;;  %v45_v26 = vld [vmem:[%s6227_s0 + $0xd8] sm:$0xff]  ;;  %v158_v27 = vld [vmem:[%s6227_s0 + $0x460] sm:$0xff] }
  0x26   :  { %3307 = vmatprep.mubr.msk.bf16.mxu0 %vm3774_vm0, %v3773_v0  ;;  %3535 = vmatprep.mubr.msk.bf16.mxu1 %vm3774_vm0, %v3773_v0  ;;  %v256_v29 = vpack.c.bf16 %v45_v26, %v44_v25  ;;  %v313_v30 = vpack.c.bf16 %v159_v28, %v158_v27  ;;  %v179_v25 = vld [vmem:[%s6227_s0 + $0x508] sm:$0xff]  ;;  %v66_v28 = vld [vmem:[%s6227_s0 + $0x180] sm:$0xff] }
  0x2d   :  { %3308 = vmatmul.mubr.msk.bf16.gmra.mrb[12].mxu0 %vm395_vm3, %v246_v32  ;;  %3536 = vmatmul.mubr.msk.bf16.gmra.mrb[12].mxu1 %vm395_vm3, %v303_v33  ;;  %v47_v32 = vld [vmem:[%s6227_s0 + $0xe8] sm:$0xff]  ;;  %v160_v33 = vld [vmem:[%s6227_s0 + $0x470] sm:$0xff] }
  0x2e   :  { %3311 = vmatprep.mubr.msk.bf16.mxu0 %vm3774_vm0, %v3773_v0  ;;  %3539 = vmatprep.mubr.msk.bf16.mxu1 %vm3774_vm0, %v3773_v0  ;;  %v257_v35 = vpack.c.bf16 %v47_v32, %v46_v31  ;;  %v314_v36 = vpack.c.bf16 %v161_v34, %v160_v33  ;;  %v181_v31 = vld [vmem:[%s6227_s0 + $0x518] sm:$0xff]  ;;  %v68_v34 = vld [vmem:[%s6227_s0 + $0x190] sm:$0xff] }
  0x35   :  { %3312 = vmatmul.mubr.msk.bf16.gmra.mrb[16].mxu0 %vm395_vm3, %v247_v38  ;;  %3540 = vmatmul.mubr.msk.bf16.gmra.mrb[16].mxu1 %vm395_vm3, %v304_v39  ;;  %v49_v38 = vld [vmem:[%s6227_s0 + $0xf8] sm:$0xff]  ;;  %v162_v39 = vld [vmem:[%s6227_s0 + $0x480] sm:$0xff] }
  0x36   :  { %3315 = vmatprep.mubr.msk.bf16.mxu0 %vm3774_vm0, %v3773_v0  ;;  %3543 = vmatprep.mubr.msk.bf16.mxu1 %vm3774_vm0, %v3773_v0  ;;  %v258_v41 = vpack.c.bf16 %v49_v38, %v48_v37  ;;  %v315_v42 = vpack.c.bf16 %v163_v40, %v162_v39  ;;  %v183_v37 = vld [vmem:[%s6227_s0 + $0x528] sm:$0xff]  ;;  %v70_v40 = vld [vmem:[%s6227_s0 + $0x1a0] sm:$0xff] }
  0x3d   :  { %3316 = vmatmul.mubr.msk.bf16.gmra.mrb[20].mxu0 %vm395_vm3, %v248_v44  ;;  %3544 = vmatmul.mubr.msk.bf16.gmra.mrb[20].mxu1 %vm395_vm3, %v305_v45  ;;  %v51_v44 = vld [vmem:[%s6227_s0 + $0x108] sm:$0xff]  ;;  %v164_v45 = vld [vmem:[%s6227_s0 + $0x490] sm:$0xff] }
  0x3e   :  { %3319 = vmatprep.mubr.msk.bf16.mxu0 %vm3774_vm0, %v3773_v0  ;;  %3547 = vmatprep.mubr.msk.bf16.mxu1 %vm3774_vm0, %v3773_v0  ;;  %v259_v47 = vpack.c.bf16 %v51_v44, %v50_v43  ;;  %v316_v48 = vpack.c.bf16 %v165_v46, %v164_v45  ;;  %v185_v43 = vld [vmem:[%s6227_s0 + $0x538] sm:$0xff]  ;;  %v4314_v46 = vld [vmem:[%s6228_s2] ss:$0 sm:$0xff] }
  0x45   :  { %3320 = vmatmul.mubr.msk.bf16.gmra.mrb[24].mxu0 %vm395_vm3, %v249_v50  ;;  %3548 = vmatmul.mubr.msk.bf16.gmra.mrb[24].mxu1 %vm395_vm3, %v306_v51  ;;  %v53_v50 = vld [vmem:[%s6227_s0 + $0x118] sm:$0xff]  ;;  %v166_v51 = vld [vmem:[%s6227_s0 + $0x4a0] sm:$0xff] }
  0x46   :  { %3323 = vmatprep.mubr.msk.bf16.mxu0 %vm3774_vm0, %v3773_v0  ;;  %3551 = vmatprep.mubr.msk.bf16.mxu1 %vm3774_vm0, %v3773_v0  ;;  %v260_v53 = vpack.c.bf16 %v53_v50, %v52_v49  ;;  %v317_v54 = vpack.c.bf16 %v167_v52, %v166_v51  ;;  %v186_v49 = vld [vmem:[%s6227_s0 + $0x540] sm:$0xff]  ;;  %v187_v50 = vld [vmem:[%s6227_s0 + $0x548] sm:$0xff] }
  0x47   :  { %v4336_v52 = vld [vmem:[%s6229_s3] ss:$0 sm:$0xff] }
  0x4d   :  { %3324 = vmatmul.mubr.msk.bf16.gmra.mrb[28].mxu0 %vm395_vm3, %v250_v56  ;;  %3552 = vmatmul.mubr.msk.bf16.gmra.mrb[28].mxu1 %vm395_vm3, %v307_v57  ;;  %v55_v56 = vld [vmem:[%s6227_s0 + $0x128] sm:$0xff]  ;;  %v168_v57 = vld [vmem:[%s6227_s0 + $0x4b0] sm:$0xff] }
  0x4e   :  { %3327 = vmatprep.mubr.msk.bf16.mxu0 %vm3774_vm0, %v3773_v0  ;;  %3555 = vmatprep.mubr.msk.bf16.mxu1 %vm3774_vm0, %v3773_v0  ;;  %v261_v59 = vpack.c.bf16 %v55_v56, %v54_v55  ;;  %v318_v60 = vpack.c.bf16 %v169_v58, %v168_v57 }
  0x55   :  { %3328 = vmatmul.mubr.msk.bf16.gmra.mrb[32].mxu0 %vm395_vm3, %v251_v62  ;;  %3556 = vmatmul.mubr.msk.bf16.gmra.mrb[32].mxu1 %vm395_vm3, %v308_v63  ;;  %v57_v62 = vld [vmem:[%s6227_s0 + $0x138] sm:$0xff]  ;;  %v170_v63 = vld [vmem:[%s6227_s0 + $0x4c0] sm:$0xff] }
  0x56   :  { %3331 = vmatprep.mubr.msk.bf16.mxu0 %vm3774_vm0, %v3773_v0  ;;  %3559 = vmatprep.mubr.msk.bf16.mxu1 %vm3774_vm0, %v3773_v0  ;;  %v262_v2 = vpack.c.bf16 %v57_v62, %v56_v61  ;;  %v319_v3 = vpack.c.bf16 %v171_v1, %v170_v63 }
  0x5d   :  { %3332 = vmatmul.mubr.msk.bf16.gmra.mrb[36].mxu0 %vm395_vm3, %v252_v5  ;;  %3560 = vmatmul.mubr.msk.bf16.gmra.mrb[36].mxu1 %vm395_vm3, %v309_v6  ;;  %v59_v5 = vld [vmem:[%s6227_s0 + $0x148] sm:$0xff]  ;;  %v172_v6 = vld [vmem:[%s6227_s0 + $0x4d0] sm:$0xff] }
  0x5e   :  { %3335 = vmatprep.mubr.msk.bf16.mxu0 %vm3774_vm0, %v3773_v0  ;;  %3563 = vmatprep.mubr.msk.bf16.mxu1 %vm3774_vm0, %v3773_v0  ;;  %v263_v8 = vpack.c.bf16 %v59_v5, %v58_v4  ;;  %v320_v9 = vpack.c.bf16 %v173_v7, %v172_v6  ;;  %v74_v7 = vld [vmem:[%s6227_s0 + $0x1c0] sm:$0xff] }
  0x65   :  { %3336 = vmatmul.mubr.msk.bf16.gmra.mrb[40].mxu0 %vm395_vm3, %v253_v11  ;;  %3564 = vmatmul.mubr.msk.bf16.gmra.mrb[40].mxu1 %vm395_vm3, %v310_v12  ;;  %v61_v11 = vld [vmem:[%s6227_s0 + $0x158] sm:$0xff]  ;;  %v174_v12 = vld [vmem:[%s6227_s0 + $0x4e0] sm:$0xff] }
  0x66   :  { %3339 = vmatprep.mubr.msk.bf16.mxu0 %vm3774_vm0, %v3773_v0  ;;  %3567 = vmatprep.mubr.msk.bf16.mxu1 %vm3774_vm0, %v3773_v0  ;;  %v264_v14 = vpack.c.bf16 %v61_v11, %v60_v10  ;;  %v321_v15 = vpack.c.bf16 %v175_v13, %v174_v12  ;;  %v188_v11 = vld [vmem:[%s6227_s0 + $0x550] sm:$0xff]  ;;  %v189_v12 = vld [vmem:[%s6227_s0 + $0x558] sm:$0xff] }
  0x6d   :  { %3340 = vmatmul.mubr.msk.bf16.gmra.mrb[44].mxu0 %vm395_vm3, %v254_v17  ;;  %3568 = vmatmul.mubr.msk.bf16.gmra.mrb[44].mxu1 %vm395_vm3, %v311_v18  ;;  %v63_v17 = vld [vmem:[%s6227_s0 + $0x168] sm:$0xff]  ;;  %v176_v18 = vld [vmem:[%s6227_s0 + $0x4f0] sm:$0xff] }
  0x6e   :  { %3343 = vmatprep.mubr.msk.bf16.mxu0 %vm3774_vm0, %v3773_v0  ;;  %3571 = vmatprep.mubr.msk.bf16.mxu1 %vm3774_vm0, %v3773_v0  ;;  %v265_v20 = vpack.c.bf16 %v63_v17, %v62_v16  ;;  %v322_v21 = vpack.c.bf16 %v177_v19, %v176_v18 }
  0x75   :  { %3344 = vmatmul.mubr.msk.bf16.gmra.mrb[48].mxu0 %vm395_vm3, %v255_v23  ;;  %3572 = vmatmul.mubr.msk.bf16.gmra.mrb[48].mxu1 %vm395_vm3, %v312_v24  ;;  %v65_v23 = vld [vmem:[%s6227_s0 + $0x178] sm:$0xff]  ;;  %v178_v24 = vld [vmem:[%s6227_s0 + $0x500] sm:$0xff] }
  0x76   :  { %3347 = vmatprep.mubr.msk.bf16.mxu0 %vm3774_vm0, %v3773_v0  ;;  %3575 = vmatprep.mubr.msk.bf16.mxu1 %vm3774_vm0, %v3773_v0  ;;  %v266_v26 = vpack.c.bf16 %v65_v23, %v64_v22  ;;  %v323_v27 = vpack.c.bf16 %v179_v25, %v178_v24  ;;  %v328_v25 = vpack.c.bf16 %v189_v12, %v188_v11  ;;  %v193_v11 = vld [vmem:[%s6227_s0 + $0x578] sm:$0xff] }
  0x7d   :  { %3348 = vmatmul.mubr.msk.bf16.gmra.mrb[52].mxu0 %vm395_vm3, %v256_v29  ;;  %3576 = vmatmul.mubr.msk.bf16.gmra.mrb[52].mxu1 %vm395_vm3, %v313_v30  ;;  %v67_v29 = vld [vmem:[%s6227_s0 + $0x188] sm:$0xff]  ;;  %v180_v30 = vld [vmem:[%s6227_s0 + $0x510] sm:$0xff] }
  0x7e   :  { %3351 = vmatprep.mubr.msk.bf16.mxu0 %vm3774_vm0, %v3773_v0  ;;  %3579 = vmatprep.mubr.msk.bf16.mxu1 %vm3774_vm0, %v3773_v0  ;;  %v267_v32 = vpack.c.bf16 %v67_v29, %v66_v28  ;;  %v324_v33 = vpack.c.bf16 %v181_v31, %v180_v30 }
  0x85   :  { %3352 = vmatmul.mubr.msk.bf16.gmra.mrb[56].mxu0 %vm395_vm3, %v257_v35  ;;  %3580 = vmatmul.mubr.msk.bf16.gmra.mrb[56].mxu1 %vm395_vm3, %v314_v36  ;;  %v69_v35 = vld [vmem:[%s6227_s0 + $0x198] sm:$0xff]  ;;  %v182_v36 = vld [vmem:[%s6227_s0 + $0x520] sm:$0xff] }
  0x86   :  { %3355 = vmatprep.mubr.msk.bf16.mxu0 %vm3774_vm0, %v3773_v0  ;;  %3583 = vmatprep.mubr.msk.bf16.mxu1 %vm3774_vm0, %v3773_v0  ;;  %v268_v38 = vpack.c.bf16 %v69_v35, %v68_v34  ;;  %v325_v39 = vpack.c.bf16 %v183_v37, %v182_v36  ;;  %v76_v37 = vld [vmem:[%s6227_s0 + $0x1d0] sm:$0xff] }
  0x8d   :  { %3356 = vmatmul.mubr.msk.bf16.gmra.mrb[60].mxu0 %vm395_vm3, %v258_v41  ;;  %3584 = vmatmul.mubr.msk.bf16.gmra.mrb[60].mxu1 %vm395_vm3, %v315_v42  ;;  %v71_v41 = vld [vmem:[%s6227_s0 + $0x1a8] sm:$0xff]  ;;  %v184_v42 = vld [vmem:[%s6227_s0 + $0x530] sm:$0xff] }
  0x8e   :  { %3359 = vmatprep.mubr.msk.bf16.mxu0 %vm3774_vm0, %v3773_v0  ;;  %3587 = vmatprep.mubr.msk.bf16.mxu1 %vm3774_vm0, %v3773_v0  ;;  %v269_v44 = vpack.c.bf16 %v71_v41, %v70_v40  ;;  %v326_v45 = vpack.c.bf16 %v185_v43, %v184_v42  ;;  %v190_v41 = vld [vmem:[%s6227_s0 + $0x560] sm:$0xff]  ;;  %v191_v42 = vld [vmem:[%s6227_s0 + $0x568] sm:$0xff] }
  0x95   :  { %3360 = vmatmul.mubr.msk.bf16.gmra.mrb[64].mxu0 %vm395_vm3, %v259_v47  ;;  %3588 = vmatmul.mubr.msk.bf16.gmra.mrb[64].mxu1 %vm395_vm3, %v316_v48  ;;  %v72_v47 = vld [vmem:[%s6227_s0 + $0x1b0] sm:$0xff]  ;;  %v73_v48 = vld [vmem:[%s6227_s0 + $0x1b8] sm:$0xff] }
  0x96   :  { %3363 = vmatprep.mubr.msk.bf16.mxu0 %vm3774_vm0, %v3773_v0  ;;  %3591 = vmatprep.mubr.msk.bf16.mxu1 %vm3774_vm0, %v3773_v0  ;;  %v270_v56 = vpack.c.bf16 %v73_v48, %v72_v47 }
  0x9d   :  { %3364 = vmatmul.mubr.msk.bf16.gmra.mrb[68].mxu0 %vm395_vm3, %v260_v53  ;;  %3592 = vmatmul.mubr.msk.bf16.gmra.mrb[68].mxu1 %vm395_vm3, %v317_v54 }
  0x9e   :  { %3367 = vmatprep.mubr.msk.bf16.mxu0 %vm3774_vm0, %v3773_v0  ;;  %3595 = vmatprep.mubr.msk.bf16.mxu1 %vm3774_vm0, %v3773_v0 }
  0xa5   :  { %3368 = vmatmul.mubr.msk.bf16.gmra.mrb[72].mxu0 %vm395_vm3, %v261_v59  ;;  %3596 = vmatmul.mubr.msk.bf16.gmra.mrb[72].mxu1 %vm395_vm3, %v318_v60  ;;  %v327_v59 = vpack.c.bf16 %v187_v50, %v186_v49 }
  0xa6   :  { %3371 = vmatprep.mubr.msk.bf16.mxu0 %vm3774_vm0, %v3773_v0  ;;  %3599 = vmatprep.mubr.msk.bf16.mxu1 %vm3774_vm0, %v3773_v0 }
  0xad   :  { %3372 = vmatmul.mubr.msk.bf16.gmra.mrb[76].mxu0 %vm395_vm3, %v262_v2  ;;  %3600 = vmatmul.mubr.msk.bf16.gmra.mrb[76].mxu1 %vm395_vm3, %v319_v3 }
  0xae   :  { %3375 = vmatprep.mubr.msk.bf16.mxu0 %vm3774_vm0, %v3773_v0  ;;  %3603 = vmatprep.mubr.msk.bf16.mxu1 %vm3774_vm0, %v3773_v0 }
  0xb5   :  { %3376 = vmatmul.mubr.msk.bf16.gmra.mrb[80].mxu0 %vm395_vm3, %v263_v8  ;;  %3604 = vmatmul.mubr.msk.bf16.gmra.mrb[80].mxu1 %vm395_vm3, %v320_v9  ;;  %v75_v8 = vld [vmem:[%s6227_s0 + $0x1c8] sm:$0xff] }
  0xb6   :  { %3379 = vmatprep.mubr.msk.bf16.mxu0 %vm3774_vm0, %v3773_v0  ;;  %3607 = vmatprep.mubr.msk.bf16.mxu1 %vm3774_vm0, %v3773_v0  ;;  %v271_v18 = vpack.c.bf16 %v75_v8, %v74_v7  ;;  %v79_v7 = vld [vmem:[%s6227_s0 + $0x1e8] sm:$0xff] }
  0xbd   :  { %3380 = vmatmul.mubr.msk.bf16.gmra.mrb[84].mxu0 %vm395_vm3, %v264_v14  ;;  %3608 = vmatmul.mubr.msk.bf16.gmra.mrb[84].mxu1 %vm395_vm3, %v321_v15 }
  0xbe   :  { %3383 = vmatprep.mubr.msk.bf16.mxu0 %vm3774_vm0, %v3773_v0  ;;  %3611 = vmatprep.mubr.msk.bf16.mxu1 %vm3774_vm0, %v3773_v0 }
  0xc5   :  { %3384 = vmatmul.mubr.msk.bf16.gmra.mrb[88].mxu0 %vm395_vm3, %v265_v20  ;;  %3612 = vmatmul.mubr.msk.bf16.gmra.mrb[88].mxu1 %vm395_vm3, %v322_v21 }
  0xc6   :  { %3387 = vmatprep.mubr.msk.bf16.mxu0 %vm3774_vm0, %v3773_v0  ;;  %3615 = vmatprep.mubr.msk.bf16.mxu1 %vm3774_vm0, %v3773_v0 }
  0xcd   :  { %3388 = vmatmul.mubr.msk.bf16.gmra.mrb[92].mxu0 %vm395_vm3, %v266_v26  ;;  %3616 = vmatmul.mubr.msk.bf16.gmra.mrb[92].mxu1 %vm395_vm3, %v323_v27 }
  0xce   :  { %3391 = vmatprep.mubr.msk.bf16.mxu0 %vm3774_vm0, %v3773_v0  ;;  %3619 = vmatprep.mubr.msk.bf16.mxu1 %vm3774_vm0, %v3773_v0 }
  0xd5   :  { %3392 = vmatmul.mubr.msk.bf16.gmra.mrb[96].mxu0 %vm395_vm3, %v267_v32  ;;  %3620 = vmatmul.mubr.msk.bf16.gmra.mrb[96].mxu1 %vm395_vm3, %v324_v33 }
  0xd6   :  { %3395 = vmatprep.mubr.msk.bf16.mxu0 %vm3774_vm0, %v3773_v0  ;;  %3623 = vmatprep.mubr.msk.bf16.mxu1 %vm3774_vm0, %v3773_v0 }
  0xdd   :  { %3396 = vmatmul.mubr.msk.bf16.gmra.mrb[100].mxu0 %vm395_vm3, %v268_v38  ;;  %3624 = vmatmul.mubr.msk.bf16.gmra.mrb[100].mxu1 %vm395_vm3, %v325_v39  ;;  %v77_v38 = vld [vmem:[%s6227_s0 + $0x1d8] sm:$0xff] }
  0xde   :  { %3399 = vmatprep.mubr.msk.bf16.mxu0 %vm3774_vm0, %v3773_v0  ;;  %3627 = vmatprep.mubr.msk.bf16.mxu1 %vm3774_vm0, %v3773_v0  ;;  %v272_v49 = vpack.c.bf16 %v77_v38, %v76_v37  ;;  %v81_v37 = vld [vmem:[%s6227_s0 + $0x1f8] sm:$0xff] }
  0xe5   :  { %3400 = vmatmul.mubr.msk.bf16.gmra.mrb[104].mxu0 %vm395_vm3, %v269_v44  ;;  %3628 = vmatmul.mubr.msk.bf16.gmra.mrb[104].mxu1 %vm395_vm3, %v326_v45 }
  0xe6   :  { %3403 = vmatprep.mubr.msk.bf16.mxu0 %vm3774_vm0, %v3773_v0  ;;  %3631 = vmatprep.mubr.msk.bf16.mxu1 %vm3774_vm0, %v3773_v0 }
  0xe8   :  { %v776_v51 = vpop.f32.mrb[0].mxu0  ;;  %v1232_v53 = vpop.f32.mrb[0].mxu1 }
  0xe9   :  { %v1685_v54 = vmul.f32 %v4314_v46, %v776_v51  ;;  %v3297_v55 = vpop.f32.mrb[1].mxu0  ;;  %v1799_v57 = vmul.f32 %v4314_v46, %v1232_v53  ;;  %v3525_v58 = vpop.f32.mrb[1].mxu1 }
  0xea   :  { %v779_v60 = vpop.f32.mrb[2].mxu0  ;;  %v1235_v61 = vpop.f32.mrb[2].mxu1 }
  0xeb   :  { %v1917_v62 = vadd.f32 %v4336_v52, %v1685_v54  ;;  %v1686_v63 = vmul.f32 %v4314_v46, %v779_v60  ;;  %v3298_v1 = vpop.f32.mrb[3].mxu0  ;;  %v2031_v2 = vadd.f32 %v4336_v52, %v1799_v57  ;;  %v1800_v3 = vmul.f32 %v4314_v46, %v1235_v61  ;;  %v3526_v4 = vpop.f32.mrb[3].mxu1 }
  0xec   :  { %v329_v57 = vpack.c.bf16 %v191_v42, %v190_v41  ;;  %v195_v41 = vld [vmem:[%s6227_s0 + $0x588] sm:$0xff] }
  0xed   :  { %vm2142_vm5 = vcmp.gt.f32.partialorder %v1917_v62, 0.0  ;;  %v2367_v5 = vmul.f32 0.01, %v1917_v62  ;;  %v1918_v6 = vadd.f32 %v4336_v52, %v1686_v63  ;;  %3404 = vmatmul.mubr.msk.bf16.gmra.mrb[108].mxu0 %vm395_vm3, %v270_v56  ;;  %vm2256_vm6 = vcmp.gt.f32.partialorder %v2031_v2, 0.0  ;;  %3632 = vmatmul.mubr.msk.bf16.gmra.mrb[108].mxu1 %vm395_vm3, %v327_v59 }
  0xee   :  { %v2481_v9 = vmul.f32 0.01, %v2031_v2  ;;  %v2032_v10 = vadd.f32 %v4336_v52, %v1800_v3  ;;  %3407 = vmatprep.mubr.msk.bf16.mxu0 %vm3774_vm0, %v3773_v0  ;;  %3635 = vmatprep.mubr.msk.bf16.mxu1 %vm3774_vm0, %v3773_v0 }
  0xef   :  { %v2592_v13 = vsel %vm2142_vm5, %v1917_v62, %v2367_v5  ;;  %vm2143_vm7 = vcmp.gt.f32.partialorder %v1918_v6, 0.0  ;;  %v2368_v14 = vmul.f32 0.01, %v1918_v6 }
  0xf0   :  { %2818 = vst.msk [vmem:[%s6230_s4] sm:$0xff] %vm2817_vm4, %v2592_v13  ;;  %v2706_v15 = vsel %vm2256_vm6, %v2031_v2, %v2481_v9  ;;  %v784_v16 = vpop.f32.mrb[4].mxu0  ;;  %vm2257_vm8 = vcmp.gt.f32.partialorder %v2032_v10, 0.0  ;;  %v2482_v17 = vmul.f32 0.01, %v2032_v10  ;;  %v1240_v19 = vpop.f32.mrb[4].mxu1 }
  0xf1   :  { %v2593_v20 = vsel %vm2143_vm7, %v1918_v6, %v2368_v14  ;;  %2932 = vst.msk [vmem:[%s6230_s4 + $0x390] sm:$0xff] %vm2817_vm4, %v2706_v15  ;;  %v1687_v21 = vmul.f32 %v4314_v46, %v784_v16  ;;  %v3301_v22 = vpop.f32.mrb[5].mxu0  ;;  %v1801_v23 = vmul.f32 %v4314_v46, %v1240_v19  ;;  %v3529_v24 = vpop.f32.mrb[5].mxu1  ;;  %v78_v6 = vld [vmem:[%s6227_s0 + $0x1e0] sm:$0xff] }
  0xf2   :  { %2819 = vst.msk [vmem:[%s6230_s4 + $0x8] sm:$0xff] %vm2817_vm4, %v2593_v20  ;;  %v2707_v26 = vsel %vm2257_vm8, %v2032_v10, %v2482_v17  ;;  %v787_v27 = vpop.f32.mrb[6].mxu0  ;;  %v1243_v28 = vpop.f32.mrb[6].mxu1  ;;  %v192_v10 = vld [vmem:[%s6227_s0 + $0x570] sm:$0xff]  ;;  %v273_v17 = vpack.c.bf16 %v79_v7, %v78_v6  ;;  %v83_v6 = vld [vmem:[%s6227_s0 + $0x208] sm:$0xff] }
  0xf3   :  { %v1919_v29 = vadd.f32 %v4336_v52, %v1687_v21  ;;  %2933 = vst.msk [vmem:[%s6230_s4 + $0x398] sm:$0xff] %vm2817_vm4, %v2707_v26  ;;  %v1688_v30 = vmul.f32 %v4314_v46, %v787_v27  ;;  %v3302_v31 = vpop.f32.mrb[7].mxu0  ;;  %v2033_v32 = vadd.f32 %v4336_v52, %v1801_v23  ;;  %v1802_v33 = vmul.f32 %v4314_v46, %v1243_v28  ;;  %v3530_v34 = vpop.f32.mrb[7].mxu1 }
  0xf4   :  { %v330_v24 = vpack.c.bf16 %v193_v11, %v192_v10  ;;  %v197_v10 = vld [vmem:[%s6227_s0 + $0x598] sm:$0xff] }
  0xf5   :  { %vm2144_vm9 = vcmp.gt.f32.partialorder %v1919_v29, 0.0  ;;  %v2369_v35 = vmul.f32 0.01, %v1919_v29  ;;  %v1920_v36 = vadd.f32 %v4336_v52, %v1688_v30  ;;  %3408 = vmatmul.mubr.msk.bf16.gmra.mrb[112].mxu0 %vm395_vm3, %v271_v18  ;;  %vm2258_vm10 = vcmp.gt.f32.partialorder %v2033_v32, 0.0  ;;  %3636 = vmatmul.mubr.msk.bf16.gmra.mrb[112].mxu1 %vm395_vm3, %v328_v25 }
  0xf6   :  { %v2483_v39 = vmul.f32 0.01, %v2033_v32  ;;  %v2034_v40 = vadd.f32 %v4336_v52, %v1802_v33  ;;  %3411 = vmatprep.mubr.msk.bf16.mxu0 %vm3774_vm0, %v3773_v0  ;;  %3639 = vmatprep.mubr.msk.bf16.mxu1 %vm3774_vm0, %v3773_v0 }
  0xf7   :  { %v2594_v43 = vsel %vm2144_vm9, %v1919_v29, %v2369_v35  ;;  %vm2145_vm11 = vcmp.gt.f32.partialorder %v1920_v36, 0.0  ;;  %v2370_v44 = vmul.f32 0.01, %v1920_v36 }
  0xf8   :  { %2820 = vst.msk [vmem:[%s6230_s4 + $0x10] sm:$0xff] %vm2817_vm4, %v2594_v43  ;;  %v2708_v45 = vsel %vm2258_vm10, %v2033_v32, %v2483_v39  ;;  %v792_v47 = vpop.f32.mrb[8].mxu0  ;;  %vm2259_vm12 = vcmp.gt.f32.partialorder %v2034_v40, 0.0  ;;  %v2484_v48 = vmul.f32 0.01, %v2034_v40  ;;  %v1248_v50 = vpop.f32.mrb[8].mxu1 }
  0xf9   :  { %v2595_v51 = vsel %vm2145_vm11, %v1920_v36, %v2370_v44  ;;  %2934 = vst.msk [vmem:[%s6230_s4 + $0x3a0] sm:$0xff] %vm2817_vm4, %v2708_v45  ;;  %v1689_v53 = vmul.f32 %v4314_v46, %v792_v47  ;;  %v3305_v54 = vpop.f32.mrb[9].mxu0  ;;  %v1803_v55 = vmul.f32 %v4314_v46, %v1248_v50  ;;  %v3533_v56 = vpop.f32.mrb[9].mxu1  ;;  %v80_v36 = vld [vmem:[%s6227_s0 + $0x1f0] sm:$0xff] }
  0xfa   :  { %2821 = vst.msk [vmem:[%s6230_s4 + $0x18] sm:$0xff] %vm2817_vm4, %v2595_v51  ;;  %v2709_v58 = vsel %vm2259_vm12, %v2034_v40, %v2484_v48  ;;  %v795_v59 = vpop.f32.mrb[10].mxu0  ;;  %v1251_v60 = vpop.f32.mrb[10].mxu1  ;;  %v194_v40 = vld [vmem:[%s6227_s0 + $0x580] sm:$0xff]  ;;  %v274_v48 = vpack.c.bf16 %v81_v37, %v80_v36  ;;  %v85_v36 = vld [vmem:[%s6227_s0 + $0x218] sm:$0xff] }
  0xfb   :  { %v1921_v61 = vadd.f32 %v4336_v52, %v1689_v53  ;;  %2935 = vst.msk [vmem:[%s6230_s4 + $0x3a8] sm:$0xff] %vm2817_vm4, %v2709_v58  ;;  %v1690_v62 = vmul.f32 %v4314_v46, %v795_v59  ;;  %v3306_v63 = vpop.f32.mrb[11].mxu0  ;;  %v2035_v1 = vadd.f32 %v4336_v52, %v1803_v55  ;;  %v1804_v2 = vmul.f32 %v4314_v46, %v1251_v60  ;;  %v3534_v3 = vpop.f32.mrb[11].mxu1 }
  0xfc   :  { %v331_v56 = vpack.c.bf16 %v195_v41, %v194_v40  ;;  %v199_v40 = vld [vmem:[%s6227_s0 + $0x5a8] sm:$0xff] }
  0xfd   :  { %vm2146_vm13 = vcmp.gt.f32.partialorder %v1921_v61, 0.0  ;;  %v2371_v4 = vmul.f32 0.01, %v1921_v61  ;;  %v1922_v5 = vadd.f32 %v4336_v52, %v1690_v62  ;;  %3412 = vmatmul.mubr.msk.bf16.gmra.mrb[116].mxu0 %vm395_vm3, %v272_v49  ;;  %vm2260_vm14 = vcmp.gt.f32.partialorder %v2035_v1, 0.0  ;;  %3640 = vmatmul.mubr.msk.bf16.gmra.mrb[116].mxu1 %vm395_vm3, %v329_v57 }
  0xfe   :  { %v2485_v8 = vmul.f32 0.01, %v2035_v1  ;;  %v2036_v9 = vadd.f32 %v4336_v52, %v1804_v2  ;;  %3415 = vmatprep.mubr.msk.bf16.mxu0 %vm3774_vm0, %v3773_v0  ;;  %3643 = vmatprep.mubr.msk.bf16.mxu1 %vm3774_vm0, %v3773_v0 }
  0xff   :  { %v2596_v12 = vsel %vm2146_vm13, %v1921_v61, %v2371_v4  ;;  %vm2147_vm15 = vcmp.gt.f32.partialorder %v1922_v5, 0.0  ;;  %v2372_v13 = vmul.f32 0.01, %v1922_v5 }
 0x100   :  { %2822 = vst.msk [vmem:[%s6230_s4 + $0x20] sm:$0xff] %vm2817_vm4, %v2596_v12  ;;  %v2710_v14 = vsel %vm2260_vm14, %v2035_v1, %v2485_v8  ;;  %v800_v15 = vpop.f32.mrb[12].mxu0  ;;  %vm2261_vm1 = vcmp.gt.f32.partialorder %v2036_v9, 0.0  ;;  %v2486_v16 = vmul.f32 0.01, %v2036_v9  ;;  %v1256_v18 = vpop.f32.mrb[12].mxu1 }
 0x101   :  { %v2597_v19 = vsel %vm2147_vm15, %v1922_v5, %v2372_v13  ;;  %2936 = vst.msk [vmem:[%s6230_s4 + $0x3b0] sm:$0xff] %vm2817_vm4, %v2710_v14  ;;  %v1691_v20 = vmul.f32 %v4314_v46, %v800_v15  ;;  %v3309_v21 = vpop.f32.mrb[13].mxu0  ;;  %v1805_v22 = vmul.f32 %v4314_v46, %v1256_v18  ;;  %v3537_v23 = vpop.f32.mrb[13].mxu1  ;;  %v82_v5 = vld [vmem:[%s6227_s0 + $0x200] sm:$0xff] }
 0x102   :  { %2823 = vst.msk [vmem:[%s6230_s4 + $0x28] sm:$0xff] %vm2817_vm4, %v2597_v19  ;;  %v2711_v25 = vsel %vm2261_vm1, %v2036_v9, %v2486_v16  ;;  %v803_v26 = vpop.f32.mrb[14].mxu0  ;;  %v1259_v27 = vpop.f32.mrb[14].mxu1  ;;  %v196_v9 = vld [vmem:[%s6227_s0 + $0x590] sm:$0xff]  ;;  %v275_v16 = vpack.c.bf16 %v83_v6, %v82_v5  ;;  %v87_v5 = vld [vmem:[%s6227_s0 + $0x228] sm:$0xff] }
 0x103   :  { %v1923_v28 = vadd.f32 %v4336_v52, %v1691_v20  ;;  %2937 = vst.msk [vmem:[%s6230_s4 + $0x3b8] sm:$0xff] %vm2817_vm4, %v2711_v25  ;;  %v1692_v29 = vmul.f32 %v4314_v46, %v803_v26  ;;  %v3310_v30 = vpop.f32.mrb[15].mxu0  ;;  %v2037_v31 = vadd.f32 %v4336_v52, %v1805_v22  ;;  %v1806_v32 = vmul.f32 %v4314_v46, %v1259_v27  ;;  %v3538_v33 = vpop.f32.mrb[15].mxu1 }
 0x104   :  { %v332_v23 = vpack.c.bf16 %v197_v10, %v196_v9  ;;  %v201_v9 = vld [vmem:[%s6227_s0 + $0x5b8] sm:$0xff] }
 0x105   :  { %vm2148_vm2 = vcmp.gt.f32.partialorder %v1923_v28, 0.0  ;;  %v2373_v34 = vmul.f32 0.01, %v1923_v28  ;;  %v1924_v35 = vadd.f32 %v4336_v52, %v1692_v29  ;;  %3416 = vmatmul.mubr.msk.bf16.gmra.mrb[120].mxu0 %vm395_vm3, %v273_v17  ;;  %vm2262_vm5 = vcmp.gt.f32.partialorder %v2037_v31, 0.0  ;;  %3644 = vmatmul.mubr.msk.bf16.gmra.mrb[120].mxu1 %vm395_vm3, %v330_v24 }
 0x106   :  { %v2487_v38 = vmul.f32 0.01, %v2037_v31  ;;  %v2038_v39 = vadd.f32 %v4336_v52, %v1806_v32  ;;  %3419 = vmatprep.mubr.msk.bf16.mxu0 %vm3774_vm0, %v3773_v0  ;;  %3647 = vmatprep.mubr.msk.bf16.mxu1 %vm3774_vm0, %v3773_v0 }
 0x107   :  { %v2598_v42 = vsel %vm2148_vm2, %v1923_v28, %v2373_v34  ;;  %vm2149_vm6 = vcmp.gt.f32.partialorder %v1924_v35, 0.0  ;;  %v2374_v43 = vmul.f32 0.01, %v1924_v35 }
 0x108   :  { %2824 = vst.msk [vmem:[%s6230_s4 + $0x30] sm:$0xff] %vm2817_vm4, %v2598_v42  ;;  %v2712_v44 = vsel %vm2262_vm5, %v2037_v31, %v2487_v38  ;;  %v808_v45 = vpop.f32.mrb[16].mxu0  ;;  %vm2263_vm7 = vcmp.gt.f32.partialorder %v2038_v39, 0.0  ;;  %v2488_v47 = vmul.f32 0.01, %v2038_v39  ;;  %v1264_v49 = vpop.f32.mrb[16].mxu1 }
 0x109   :  { %v2599_v50 = vsel %vm2149_vm6, %v1924_v35, %v2374_v43  ;;  %2938 = vst.msk [vmem:[%s6230_s4 + $0x3c0] sm:$0xff] %vm2817_vm4, %v2712_v44  ;;  %v1693_v51 = vmul.f32 %v4314_v46, %v808_v45  ;;  %v3313_v53 = vpop.f32.mrb[17].mxu0  ;;  %v1807_v54 = vmul.f32 %v4314_v46, %v1264_v49  ;;  %v3541_v55 = vpop.f32.mrb[17].mxu1  ;;  %v84_v35 = vld [vmem:[%s6227_s0 + $0x210] sm:$0xff] }
 0x10a   :  { %2825 = vst.msk [vmem:[%s6230_s4 + $0x38] sm:$0xff] %vm2817_vm4, %v2599_v50  ;;  %v2713_v57 = vsel %vm2263_vm7, %v2038_v39, %v2488_v47  ;;  %v811_v58 = vpop.f32.mrb[18].mxu0  ;;  %v1267_v59 = vpop.f32.mrb[18].mxu1  ;;  %v198_v39 = vld [vmem:[%s6227_s0 + $0x5a0] sm:$0xff]  ;;  %v276_v47 = vpack.c.bf16 %v85_v36, %v84_v35  ;;  %v89_v35 = vld [vmem:[%s6227_s0 + $0x238] sm:$0xff] }
 0x10b   :  { %v1925_v60 = vadd.f32 %v4336_v52, %v1693_v51  ;;  %2939 = vst.msk [vmem:[%s6230_s4 + $0x3c8] sm:$0xff] %vm2817_vm4, %v2713_v57  ;;  %v1694_v61 = vmul.f32 %v4314_v46, %v811_v58  ;;  %v3314_v62 = vpop.f32.mrb[19].mxu0  ;;  %v2039_v63 = vadd.f32 %v4336_v52, %v1807_v54  ;;  %v1808_v1 = vmul.f32 %v4314_v46, %v1267_v59  ;;  %v3542_v2 = vpop.f32.mrb[19].mxu1 }
 0x10c   :  { %v333_v55 = vpack.c.bf16 %v199_v40, %v198_v39  ;;  %v203_v39 = vld [vmem:[%s6227_s0 + $0x5c8] sm:$0xff] }
 0x10d   :  { %vm2150_vm8 = vcmp.gt.f32.partialorder %v1925_v60, 0.0  ;;  %v2375_v3 = vmul.f32 0.01, %v1925_v60  ;;  %v1926_v4 = vadd.f32 %v4336_v52, %v1694_v61  ;;  %3420 = vmatmul.mubr.msk.bf16.gmra.mrb[124].mxu0 %vm395_vm3, %v274_v48  ;;  %vm2264_vm9 = vcmp.gt.f32.partialorder %v2039_v63, 0.0  ;;  %3648 = vmatmul.mubr.msk.bf16.gmra.mrb[124].mxu1 %vm395_vm3, %v331_v56 }
 0x10e   :  { %v2489_v7 = vmul.f32 0.01, %v2039_v63  ;;  %v2040_v8 = vadd.f32 %v4336_v52, %v1808_v1  ;;  %3423 = vmatprep.mubr.msk.bf16.mxu0 %vm3774_vm0, %v3773_v0  ;;  %3651 = vmatprep.mubr.msk.bf16.mxu1 %vm3774_vm0, %v3773_v0 }
 0x10f   :  { %v2600_v11 = vsel %vm2150_vm8, %v1925_v60, %v2375_v3  ;;  %vm2151_vm10 = vcmp.gt.f32.partialorder %v1926_v4, 0.0  ;;  %v2376_v12 = vmul.f32 0.01, %v1926_v4 }
 0x110   :  { %2826 = vst.msk [vmem:[%s6230_s4 + $0x40] sm:$0xff] %vm2817_vm4, %v2600_v11  ;;  %v2714_v13 = vsel %vm2264_vm9, %v2039_v63, %v2489_v7  ;;  %v816_v14 = vpop.f32.mrb[20].mxu0  ;;  %vm2265_vm11 = vcmp.gt.f32.partialorder %v2040_v8, 0.0  ;;  %v2490_v15 = vmul.f32 0.01, %v2040_v8  ;;  %v1272_v17 = vpop.f32.mrb[20].mxu1 }
 0x111   :  { %v2601_v18 = vsel %vm2151_vm10, %v1926_v4, %v2376_v12  ;;  %2940 = vst.msk [vmem:[%s6230_s4 + $0x3d0] sm:$0xff] %vm2817_vm4, %v2714_v13  ;;  %v1695_v19 = vmul.f32 %v4314_v46, %v816_v14  ;;  %v3317_v20 = vpop.f32.mrb[21].mxu0  ;;  %v1809_v21 = vmul.f32 %v4314_v46, %v1272_v17  ;;  %v3545_v22 = vpop.f32.mrb[21].mxu1  ;;  %v86_v4 = vld [vmem:[%s6227_s0 + $0x220] sm:$0xff] }
 0x112   :  { %2827 = vst.msk [vmem:[%s6230_s4 + $0x48] sm:$0xff] %vm2817_vm4, %v2601_v18  ;;  %v2715_v24 = vsel %vm2265_vm11, %v2040_v8, %v2490_v15  ;;  %v819_v25 = vpop.f32.mrb[22].mxu0  ;;  %v1275_v26 = vpop.f32.mrb[22].mxu1  ;;  %v200_v8 = vld [vmem:[%s6227_s0 + $0x5b0] sm:$0xff]  ;;  %v277_v15 = vpack.c.bf16 %v87_v5, %v86_v4  ;;  %v91_v4 = vld [vmem:[%s6227_s0 + $0x248] sm:$0xff] }
 0x113   :  { %v1927_v27 = vadd.f32 %v4336_v52, %v1695_v19  ;;  %2941 = vst.msk [vmem:[%s6230_s4 + $0x3d8] sm:$0xff] %vm2817_vm4, %v2715_v24  ;;  %v1696_v28 = vmul.f32 %v4314_v46, %v819_v25  ;;  %v3318_v29 = vpop.f32.mrb[23].mxu0  ;;  %v2041_v30 = vadd.f32 %v4336_v52, %v1809_v21  ;;  %v1810_v31 = vmul.f32 %v4314_v46, %v1275_v26  ;;  %v3546_v32 = vpop.f32.mrb[23].mxu1 }
 0x114   :  { %v334_v22 = vpack.c.bf16 %v201_v9, %v200_v8  ;;  %v205_v8 = vld [vmem:[%s6227_s0 + $0x5d8] sm:$0xff] }
 0x115   :  { %vm2152_vm12 = vcmp.gt.f32.partialorder %v1927_v27, 0.0  ;;  %v2377_v33 = vmul.f32 0.01, %v1927_v27  ;;  %v1928_v34 = vadd.f32 %v4336_v52, %v1696_v28  ;;  %3424 = vmatmul.mubr.msk.bf16.gmra.mrb[128].mxu0 %vm395_vm3, %v275_v16  ;;  %vm2266_vm13 = vcmp.gt.f32.partialorder %v2041_v30, 0.0  ;;  %3652 = vmatmul.mubr.msk.bf16.gmra.mrb[128].mxu1 %vm395_vm3, %v332_v23 }
 0x116   :  { %v2491_v37 = vmul.f32 0.01, %v2041_v30  ;;  %v2042_v38 = vadd.f32 %v4336_v52, %v1810_v31  ;;  %3427 = vmatprep.mubr.msk.bf16.mxu0 %vm3774_vm0, %v3773_v0  ;;  %3655 = vmatprep.mubr.msk.bf16.mxu1 %vm3774_vm0, %v3773_v0 }
 0x117   :  { %v2602_v41 = vsel %vm2152_vm12, %v1927_v27, %v2377_v33  ;;  %vm2153_vm14 = vcmp.gt.f32.partialorder %v1928_v34, 0.0  ;;  %v2378_v42 = vmul.f32 0.01, %v1928_v34 }
 0x118   :  { %2828 = vst.msk [vmem:[%s6230_s4 + $0x50] sm:$0xff] %vm2817_vm4, %v2602_v41  ;;  %v2716_v43 = vsel %vm2266_vm13, %v2041_v30, %v2491_v37  ;;  %v824_v44 = vpop.f32.mrb[24].mxu0  ;;  %vm2267_vm15 = vcmp.gt.f32.partialorder %v2042_v38, 0.0  ;;  %v2492_v45 = vmul.f32 0.01, %v2042_v38  ;;  %v1280_v48 = vpop.f32.mrb[24].mxu1 }
 0x119   :  { %v2603_v49 = vsel %vm2153_vm14, %v1928_v34, %v2378_v42  ;;  %2942 = vst.msk [vmem:[%s6230_s4 + $0x3e0] sm:$0xff] %vm2817_vm4, %v2716_v43  ;;  %v1697_v50 = vmul.f32 %v4314_v46, %v824_v44  ;;  %v3321_v51 = vpop.f32.mrb[25].mxu0  ;;  %v1811_v53 = vmul.f32 %v4314_v46, %v1280_v48  ;;  %v3549_v54 = vpop.f32.mrb[25].mxu1  ;;  %v88_v34 = vld [vmem:[%s6227_s0 + $0x230] sm:$0xff] }
 0x11a   :  { %2829 = vst.msk [vmem:[%s6230_s4 + $0x58] sm:$0xff] %vm2817_vm4, %v2603_v49  ;;  %v2717_v56 = vsel %vm2267_vm15, %v2042_v38, %v2492_v45  ;;  %v827_v57 = vpop.f32.mrb[26].mxu0  ;;  %v1283_v58 = vpop.f32.mrb[26].mxu1  ;;  %v202_v38 = vld [vmem:[%s6227_s0 + $0x5c0] sm:$0xff]  ;;  %v278_v45 = vpack.c.bf16 %v89_v35, %v88_v34  ;;  %v93_v34 = vld [vmem:[%s6227_s0 + $0x258] sm:$0xff] }
 0x11b   :  { %v1929_v59 = vadd.f32 %v4336_v52, %v1697_v50  ;;  %2943 = vst.msk [vmem:[%s6230_s4 + $0x3e8] sm:$0xff] %vm2817_vm4, %v2717_v56  ;;  %v1698_v60 = vmul.f32 %v4314_v46, %v827_v57  ;;  %v3322_v61 = vpop.f32.mrb[27].mxu0  ;;  %v2043_v62 = vadd.f32 %v4336_v52, %v1811_v53  ;;  %v1812_v63 = vmul.f32 %v4314_v46, %v1283_v58  ;;  %v3550_v1 = vpop.f32.mrb[27].mxu1 }
 0x11c   :  { %v335_v54 = vpack.c.bf16 %v203_v39, %v202_v38  ;;  %v207_v38 = vld [vmem:[%s6227_s0 + $0x5e8] sm:$0xff] }
 0x11d   :  { %vm2154_vm1 = vcmp.gt.f32.partialorder %v1929_v59, 0.0  ;;  %v2379_v2 = vmul.f32 0.01, %v1929_v59  ;;  %v1930_v3 = vadd.f32 %v4336_v52, %v1698_v60  ;;  %3428 = vmatmul.mubr.msk.bf16.gmra.mrb[132].mxu0 %vm395_vm3, %v276_v47  ;;  %vm2268_vm2 = vcmp.gt.f32.partialorder %v2043_v62, 0.0  ;;  %3656 = vmatmul.mubr.msk.bf16.gmra.mrb[132].mxu1 %vm395_vm3, %v333_v55 }
 0x11e   :  { %v2493_v6 = vmul.f32 0.01, %v2043_v62  ;;  %v2044_v7 = vadd.f32 %v4336_v52, %v1812_v63  ;;  %3431 = vmatprep.mubr.msk.bf16.mxu0 %vm3774_vm0, %v3773_v0  ;;  %3659 = vmatprep.mubr.msk.bf16.mxu1 %vm3774_vm0, %v3773_v0 }
 0x11f   :  { %v2604_v10 = vsel %vm2154_vm1, %v1929_v59, %v2379_v2  ;;  %vm2155_vm5 = vcmp.gt.f32.partialorder %v1930_v3, 0.0  ;;  %v2380_v11 = vmul.f32 0.01, %v1930_v3 }
 0x120   :  { %2830 = vst.msk [vmem:[%s6230_s4 + $0x60] sm:$0xff] %vm2817_vm4, %v2604_v10  ;;  %v2718_v12 = vsel %vm2268_vm2, %v2043_v62, %v2493_v6  ;;  %v832_v13 = vpop.f32.mrb[28].mxu0  ;;  %vm2269_vm6 = vcmp.gt.f32.partialorder %v2044_v7, 0.0  ;;  %v2494_v14 = vmul.f32 0.01, %v2044_v7  ;;  %v1288_v16 = vpop.f32.mrb[28].mxu1 }
 0x121   :  { %v2605_v17 = vsel %vm2155_vm5, %v1930_v3, %v2380_v11  ;;  %2944 = vst.msk [vmem:[%s6230_s4 + $0x3f0] sm:$0xff] %vm2817_vm4, %v2718_v12  ;;  %v1699_v18 = vmul.f32 %v4314_v46, %v832_v13  ;;  %v3325_v19 = vpop.f32.mrb[29].mxu0  ;;  %v1813_v20 = vmul.f32 %v4314_v46, %v1288_v16  ;;  %v3553_v21 = vpop.f32.mrb[29].mxu1  ;;  %v90_v3 = vld [vmem:[%s6227_s0 + $0x240] sm:$0xff] }
 0x122   :  { %2831 = vst.msk [vmem:[%s6230_s4 + $0x68] sm:$0xff] %vm2817_vm4, %v2605_v17  ;;  %v2719_v23 = vsel %vm2269_vm6, %v2044_v7, %v2494_v14  ;;  %v835_v24 = vpop.f32.mrb[30].mxu0  ;;  %v1291_v25 = vpop.f32.mrb[30].mxu1  ;;  %v204_v7 = vld [vmem:[%s6227_s0 + $0x5d0] sm:$0xff]  ;;  %v279_v14 = vpack.c.bf16 %v91_v4, %v90_v3  ;;  %v95_v3 = vld [vmem:[%s6227_s0 + $0x268] sm:$0xff] }
 0x123   :  { %v1931_v26 = vadd.f32 %v4336_v52, %v1699_v18  ;;  %2945 = vst.msk [vmem:[%s6230_s4 + $0x3f8] sm:$0xff] %vm2817_vm4, %v2719_v23  ;;  %v1700_v27 = vmul.f32 %v4314_v46, %v835_v24  ;;  %v3326_v28 = vpop.f32.mrb[31].mxu0  ;;  %v2045_v29 = vadd.f32 %v4336_v52, %v1813_v20  ;;  %v1814_v30 = vmul.f32 %v4314_v46, %v1291_v25  ;;  %v3554_v31 = vpop.f32.mrb[31].mxu1 }
 0x124   :  { %v336_v21 = vpack.c.bf16 %v205_v8, %v204_v7  ;;  %v209_v7 = vld [vmem:[%s6227_s0 + $0x5f8] sm:$0xff] }
 0x125   :  { %vm2156_vm7 = vcmp.gt.f32.partialorder %v1931_v26, 0.0  ;;  %v2381_v32 = vmul.f32 0.01, %v1931_v26  ;;  %v1932_v33 = vadd.f32 %v4336_v52, %v1700_v27  ;;  %3432 = vmatmul.mubr.msk.bf16.gmra.mrb[136].mxu0 %vm395_vm3, %v277_v15  ;;  %vm2270_vm8 = vcmp.gt.f32.partialorder %v2045_v29, 0.0  ;;  %3660 = vmatmul.mubr.msk.bf16.gmra.mrb[136].mxu1 %vm395_vm3, %v334_v22 }
 0x126   :  { %v2495_v36 = vmul.f32 0.01, %v2045_v29  ;;  %v2046_v37 = vadd.f32 %v4336_v52, %v1814_v30  ;;  %3435 = vmatprep.mubr.msk.bf16.mxu0 %vm3774_vm0, %v3773_v0  ;;  %3663 = vmatprep.mubr.msk.bf16.mxu1 %vm3774_vm0, %v3773_v0 }
 0x127   :  { %v2606_v40 = vsel %vm2156_vm7, %v1931_v26, %v2381_v32  ;;  %vm2157_vm9 = vcmp.gt.f32.partialorder %v1932_v33, 0.0  ;;  %v2382_v41 = vmul.f32 0.01, %v1932_v33 }
 0x128   :  { %2832 = vst.msk [vmem:[%s6230_s4 + $0x70] sm:$0xff] %vm2817_vm4, %v2606_v40  ;;  %v2720_v42 = vsel %vm2270_vm8, %v2045_v29, %v2495_v36  ;;  %v840_v43 = vpop.f32.mrb[32].mxu0  ;;  %vm2271_vm10 = vcmp.gt.f32.partialorder %v2046_v37, 0.0  ;;  %v2496_v44 = vmul.f32 0.01, %v2046_v37  ;;  %v1296_v47 = vpop.f32.mrb[32].mxu1 }
 0x129   :  { %v2607_v48 = vsel %vm2157_vm9, %v1932_v33, %v2382_v41  ;;  %2946 = vst.msk [vmem:[%s6230_s4 + $0x400] sm:$0xff] %vm2817_vm4, %v2720_v42  ;;  %v1701_v49 = vmul.f32 %v4314_v46, %v840_v43  ;;  %v3329_v50 = vpop.f32.mrb[33].mxu0  ;;  %v1815_v51 = vmul.f32 %v4314_v46, %v1296_v47  ;;  %v3557_v53 = vpop.f32.mrb[33].mxu1  ;;  %v92_v33 = vld [vmem:[%s6227_s0 + $0x250] sm:$0xff] }
 0x12a   :  { %2833 = vst.msk [vmem:[%s6230_s4 + $0x78] sm:$0xff] %vm2817_vm4, %v2607_v48  ;;  %v2721_v55 = vsel %vm2271_vm10, %v2046_v37, %v2496_v44  ;;  %v843_v56 = vpop.f32.mrb[34].mxu0  ;;  %v1299_v57 = vpop.f32.mrb[34].mxu1  ;;  %v206_v37 = vld [vmem:[%s6227_s0 + $0x5e0] sm:$0xff]  ;;  %v280_v44 = vpack.c.bf16 %v93_v34, %v92_v33  ;;  %v97_v33 = vld [vmem:[%s6227_s0 + $0x278] sm:$0xff] }
 0x12b   :  { %v1933_v58 = vadd.f32 %v4336_v52, %v1701_v49  ;;  %2947 = vst.msk [vmem:[%s6230_s4 + $0x408] sm:$0xff] %vm2817_vm4, %v2721_v55  ;;  %v1702_v59 = vmul.f32 %v4314_v46, %v843_v56  ;;  %v3330_v60 = vpop.f32.mrb[35].mxu0  ;;  %v2047_v61 = vadd.f32 %v4336_v52, %v1815_v51  ;;  %v1816_v62 = vmul.f32 %v4314_v46, %v1299_v57  ;;  %v3558_v63 = vpop.f32.mrb[35].mxu1 }
 0x12c   :  { %v337_v53 = vpack.c.bf16 %v207_v38, %v206_v37 }
 0x12d   :  { %vm2158_vm11 = vcmp.gt.f32.partialorder %v1933_v58, 0.0  ;;  %v2383_v1 = vmul.f32 0.01, %v1933_v58  ;;  %v1934_v2 = vadd.f32 %v4336_v52, %v1702_v59  ;;  %3436 = vmatmul.mubr.msk.bf16.gmra.mrb[140].mxu0 %vm395_vm3, %v278_v45  ;;  %vm2272_vm12 = vcmp.gt.f32.partialorder %v2047_v61, 0.0  ;;  %3664 = vmatmul.mubr.msk.bf16.gmra.mrb[140].mxu1 %vm395_vm3, %v335_v54 }
 0x12e   :  { %v2497_v5 = vmul.f32 0.01, %v2047_v61  ;;  %v2048_v6 = vadd.f32 %v4336_v52, %v1816_v62  ;;  %3439 = vmatprep.mubr.msk.bf16.mxu0 %vm3774_vm0, %v3773_v0  ;;  %3667 = vmatprep.mubr.msk.bf16.mxu1 %vm3774_vm0, %v3773_v0 }
 0x12f   :  { %v2608_v9 = vsel %vm2158_vm11, %v1933_v58, %v2383_v1  ;;  %vm2159_vm13 = vcmp.gt.f32.partialorder %v1934_v2, 0.0  ;;  %v2384_v10 = vmul.f32 0.01, %v1934_v2 }
 0x130   :  { %2834 = vst.msk [vmem:[%s6230_s4 + $0x80] sm:$0xff] %vm2817_vm4, %v2608_v9  ;;  %v2722_v11 = vsel %vm2272_vm12, %v2047_v61, %v2497_v5  ;;  %v848_v12 = vpop.f32.mrb[36].mxu0  ;;  %vm2273_vm14 = vcmp.gt.f32.partialorder %v2048_v6, 0.0  ;;  %v2498_v13 = vmul.f32 0.01, %v2048_v6  ;;  %v1304_v15 = vpop.f32.mrb[36].mxu1 }
 0x131   :  { %v2609_v16 = vsel %vm2159_vm13, %v1934_v2, %v2384_v10  ;;  %2948 = vst.msk [vmem:[%s6230_s4 + $0x410] sm:$0xff] %vm2817_vm4, %v2722_v11  ;;  %v1703_v17 = vmul.f32 %v4314_v46, %v848_v12  ;;  %v3333_v18 = vpop.f32.mrb[37].mxu0  ;;  %v1817_v19 = vmul.f32 %v4314_v46, %v1304_v15  ;;  %v3561_v20 = vpop.f32.mrb[37].mxu1  ;;  %v94_v2 = vld [vmem:[%s6227_s0 + $0x260] sm:$0xff] }
 0x132   :  { %2835 = vst.msk [vmem:[%s6230_s4 + $0x88] sm:$0xff] %vm2817_vm4, %v2609_v16  ;;  %v2723_v22 = vsel %vm2273_vm14, %v2048_v6, %v2498_v13  ;;  %v851_v23 = vpop.f32.mrb[38].mxu0  ;;  %v1307_v24 = vpop.f32.mrb[38].mxu1  ;;  %v208_v6 = vld [vmem:[%s6227_s0 + $0x5f0] sm:$0xff]  ;;  %v281_v13 = vpack.c.bf16 %v95_v3, %v94_v2  ;;  %v99_v2 = vld [vmem:[%s6227_s0 + $0x288] sm:$0xff] }
 0x133   :  { %v1935_v25 = vadd.f32 %v4336_v52, %v1703_v17  ;;  %2949 = vst.msk [vmem:[%s6230_s4 + $0x418] sm:$0xff] %vm2817_vm4, %v2723_v22  ;;  %v1704_v26 = vmul.f32 %v4314_v46, %v851_v23  ;;  %v3334_v27 = vpop.f32.mrb[39].mxu0  ;;  %v2049_v28 = vadd.f32 %v4336_v52, %v1817_v19  ;;  %v1818_v29 = vmul.f32 %v4314_v46, %v1307_v24  ;;  %v3562_v30 = vpop.f32.mrb[39].mxu1 }
 0x134   :  { %v338_v20 = vpack.c.bf16 %v209_v7, %v208_v6  ;;  %v213_v6 = vld [vmem:[%s6227_s0 + $0x618] sm:$0xff] }
 0x135   :  { %vm2160_vm15 = vcmp.gt.f32.partialorder %v1935_v25, 0.0  ;;  %v2385_v31 = vmul.f32 0.01, %v1935_v25  ;;  %v1936_v32 = vadd.f32 %v4336_v52, %v1704_v26  ;;  %3440 = vmatmul.mubr.msk.bf16.gmra.mrb[144].mxu0 %vm395_vm3, %v279_v14  ;;  %vm2274_vm1 = vcmp.gt.f32.partialorder %v2049_v28, 0.0  ;;  %3668 = vmatmul.mubr.msk.bf16.gmra.mrb[144].mxu1 %vm395_vm3, %v336_v21 }
 0x136   :  { %v2499_v35 = vmul.f32 0.01, %v2049_v28  ;;  %v2050_v36 = vadd.f32 %v4336_v52, %v1818_v29  ;;  %3443 = vmatprep.mubr.msk.bf16.mxu0 %vm3774_vm0, %v3773_v0  ;;  %3671 = vmatprep.mubr.msk.bf16.mxu1 %vm3774_vm0, %v3773_v0 }
 0x137   :  { %v2610_v39 = vsel %vm2160_vm15, %v1935_v25, %v2385_v31  ;;  %vm2161_vm2 = vcmp.gt.f32.partialorder %v1936_v32, 0.0  ;;  %v2386_v40 = vmul.f32 0.01, %v1936_v32 }
 0x138   :  { %2836 = vst.msk [vmem:[%s6230_s4 + $0x90] sm:$0xff] %vm2817_vm4, %v2610_v39  ;;  %v2724_v41 = vsel %vm2274_vm1, %v2049_v28, %v2499_v35  ;;  %v856_v42 = vpop.f32.mrb[40].mxu0  ;;  %vm2275_vm5 = vcmp.gt.f32.partialorder %v2050_v36, 0.0  ;;  %v2500_v43 = vmul.f32 0.01, %v2050_v36  ;;  %v1312_v45 = vpop.f32.mrb[40].mxu1 }
 0x139   :  { %v2611_v47 = vsel %vm2161_vm2, %v1936_v32, %v2386_v40  ;;  %2950 = vst.msk [vmem:[%s6230_s4 + $0x420] sm:$0xff] %vm2817_vm4, %v2724_v41  ;;  %v1705_v48 = vmul.f32 %v4314_v46, %v856_v42  ;;  %v3337_v49 = vpop.f32.mrb[41].mxu0  ;;  %v1819_v50 = vmul.f32 %v4314_v46, %v1312_v45  ;;  %v3565_v51 = vpop.f32.mrb[41].mxu1  ;;  %v96_v32 = vld [vmem:[%s6227_s0 + $0x270] sm:$0xff]  ;;  %v210_v35 = vld [vmem:[%s6227_s0 + $0x600] sm:$0xff] }
 0x13a   :  { %2837 = vst.msk [vmem:[%s6230_s4 + $0x98] sm:$0xff] %vm2817_vm4, %v2611_v47  ;;  %v2725_v54 = vsel %vm2275_vm5, %v2050_v36, %v2500_v43  ;;  %v859_v55 = vpop.f32.mrb[42].mxu0  ;;  %v1315_v56 = vpop.f32.mrb[42].mxu1  ;;  %v211_v36 = vld [vmem:[%s6227_s0 + $0x608] sm:$0xff]  ;;  %v282_v41 = vpack.c.bf16 %v97_v33, %v96_v32  ;;  %v101_v32 = vld [vmem:[%s6227_s0 + $0x298] sm:$0xff] }
 0x13b   :  { %v1937_v57 = vadd.f32 %v4336_v52, %v1705_v48  ;;  %2951 = vst.msk [vmem:[%s6230_s4 + $0x428] sm:$0xff] %vm2817_vm4, %v2725_v54  ;;  %v1706_v58 = vmul.f32 %v4314_v46, %v859_v55  ;;  %v3338_v59 = vpop.f32.mrb[43].mxu0  ;;  %v2051_v60 = vadd.f32 %v4336_v52, %v1819_v50  ;;  %v1820_v61 = vmul.f32 %v4314_v46, %v1315_v56  ;;  %v3566_v62 = vpop.f32.mrb[43].mxu1  ;;  %v4848_v55 = vld [vmem:[%s6229_s3] ss:$0 sm:$0xff] }
 0x13c   :  { %v339_v50 = vpack.c.bf16 %v211_v36, %v210_v35  ;;  %v215_v35 = vld [vmem:[%s6227_s0 + $0x628] sm:$0xff] }
 0x13d   :  { %vm2162_vm6 = vcmp.gt.f32.partialorder %v1937_v57, 0.0  ;;  %v2387_v63 = vmul.f32 0.01, %v1937_v57  ;;  %v1938_v1 = vadd.f32 %v4336_v52, %v1706_v58  ;;  %3444 = vmatmul.mubr.msk.bf16.gmra.mrb[148].mxu0 %vm395_vm3, %v280_v44  ;;  %vm2276_vm7 = vcmp.gt.f32.partialorder %v2051_v60, 0.0  ;;  %3672 = vmatmul.mubr.msk.bf16.gmra.mrb[148].mxu1 %vm395_vm3, %v337_v53  ;;  %v4837_v44 = vld [vmem:[%s6228_s2] ss:$0 sm:$0xff] }
 0x13e   :  { %v2501_v4 = vmul.f32 0.01, %v2051_v60  ;;  %v2052_v5 = vadd.f32 %v4336_v52, %v1820_v61  ;;  %3447 = vmatprep.mubr.msk.bf16.mxu0 %vm3774_vm0, %v3773_v0  ;;  %3675 = vmatprep.mubr.msk.bf16.mxu1 %vm3774_vm0, %v3773_v0 }
 0x13f   :  { %v2612_v8 = vsel %vm2162_vm6, %v1937_v57, %v2387_v63  ;;  %vm2163_vm8 = vcmp.gt.f32.partialorder %v1938_v1, 0.0  ;;  %v2388_v9 = vmul.f32 0.01, %v1938_v1 }
 0x140   :  { %2838 = vst.msk [vmem:[%s6230_s4 + $0xa0] sm:$0xff] %vm2817_vm4, %v2612_v8  ;;  %v2726_v10 = vsel %vm2276_vm7, %v2051_v60, %v2501_v4  ;;  %v864_v11 = vpop.f32.mrb[44].mxu0  ;;  %vm2277_vm9 = vcmp.gt.f32.partialorder %v2052_v5, 0.0  ;;  %v2502_v12 = vmul.f32 0.01, %v2052_v5  ;;  %v1320_v14 = vpop.f32.mrb[44].mxu1 }
 0x141   :  { %v2613_v15 = vsel %vm2163_vm8, %v1938_v1, %v2388_v9  ;;  %2952 = vst.msk [vmem:[%s6230_s4 + $0x430] sm:$0xff] %vm2817_vm4, %v2726_v10  ;;  %v1707_v16 = vmul.f32 %v4314_v46, %v864_v11  ;;  %v3341_v17 = vpop.f32.mrb[45].mxu0  ;;  %v1821_v18 = vmul.f32 %v4314_v46, %v1320_v14  ;;  %v3569_v19 = vpop.f32.mrb[45].mxu1  ;;  %v98_v1 = vld [vmem:[%s6227_s0 + $0x280] sm:$0xff] }
 0x142   :  { %2839 = vst.msk [vmem:[%s6230_s4 + $0xa8] sm:$0xff] %vm2817_vm4, %v2613_v15  ;;  %v2727_v21 = vsel %vm2277_vm9, %v2052_v5, %v2502_v12  ;;  %v867_v22 = vpop.f32.mrb[46].mxu0  ;;  %v1323_v23 = vpop.f32.mrb[46].mxu1  ;;  %v212_v5 = vld [vmem:[%s6227_s0 + $0x610] sm:$0xff]  ;;  %v283_v12 = vpack.c.bf16 %v99_v2, %v98_v1  ;;  %v103_v1 = vld [vmem:[%s6227_s0 + $0x2a8] sm:$0xff] }
 0x143   :  { %v1939_v24 = vadd.f32 %v4336_v52, %v1707_v16  ;;  %2953 = vst.msk [vmem:[%s6230_s4 + $0x438] sm:$0xff] %vm2817_vm4, %v2727_v21  ;;  %v1708_v25 = vmul.f32 %v4314_v46, %v867_v22  ;;  %v3342_v26 = vpop.f32.mrb[47].mxu0  ;;  %v2053_v27 = vadd.f32 %v4336_v52, %v1821_v18  ;;  %v1822_v28 = vmul.f32 %v4314_v46, %v1323_v23  ;;  %v3570_v29 = vpop.f32.mrb[47].mxu1 }
 0x144   :  { %v340_v19 = vpack.c.bf16 %v213_v6, %v212_v5  ;;  %v217_v5 = vld [vmem:[%s6227_s0 + $0x638] sm:$0xff] }
 0x145   :  { %vm2164_vm10 = vcmp.gt.f32.partialorder %v1939_v24, 0.0  ;;  %v2389_v30 = vmul.f32 0.01, %v1939_v24  ;;  %v1940_v31 = vadd.f32 %v4336_v52, %v1708_v25  ;;  %3448 = vmatmul.mubr.msk.bf16.gmra.mrb[152].mxu0 %vm395_vm3, %v281_v13  ;;  %vm2278_vm11 = vcmp.gt.f32.partialorder %v2053_v27, 0.0  ;;  %3676 = vmatmul.mubr.msk.bf16.gmra.mrb[152].mxu1 %vm395_vm3, %v338_v20 }
 0x146   :  { %v2503_v34 = vmul.f32 0.01, %v2053_v27  ;;  %v2054_v46 = vadd.f32 %v4336_v52, %v1822_v28  ;;  %3451 = vmatprep.mubr.msk.bf16.mxu0 %vm3774_vm0, %v3773_v0  ;;  %3679 = vmatprep.mubr.msk.bf16.mxu1 %vm3774_vm0, %v3773_v0 }
 0x147   :  { %v2614_v37 = vsel %vm2164_vm10, %v1939_v24, %v2389_v30  ;;  %vm2165_vm12 = vcmp.gt.f32.partialorder %v1940_v31, 0.0  ;;  %v2390_v38 = vmul.f32 0.01, %v1940_v31 }
 0x148   :  { %2840 = vst.msk [vmem:[%s6230_s4 + $0xb0] sm:$0xff] %vm2817_vm4, %v2614_v37  ;;  %v2728_v52 = vsel %vm2278_vm11, %v2053_v27, %v2503_v34  ;;  %v872_v39 = vpop.f32.mrb[48].mxu0  ;;  %vm2279_vm13 = vcmp.gt.f32.partialorder %v2054_v46, 0.0  ;;  %v2504_v40 = vmul.f32 0.01, %v2054_v46  ;;  %v1328_v42 = vpop.f32.mrb[48].mxu1 }
 0x149   :  { %v2615_v43 = vsel %vm2165_vm12, %v1940_v31, %v2390_v38  ;;  %2954 = vst.msk [vmem:[%s6230_s4 + $0x440] sm:$0xff] %vm2817_vm4, %v2728_v52  ;;  %v1709_v45 = vmul.f32 %v4837_v44, %v872_v39  ;;  %v3345_v47 = vpop.f32.mrb[49].mxu0  ;;  %v1823_v48 = vmul.f32 %v4837_v44, %v1328_v42  ;;  %v3573_v49 = vpop.f32.mrb[49].mxu1  ;;  %v100_v31 = vld [vmem:[%s6227_s0 + $0x290] sm:$0xff] }
 0x14a   :  { %2841 = vst.msk [vmem:[%s6230_s4 + $0xb8] sm:$0xff] %vm2817_vm4, %v2615_v43  ;;  %v2729_v51 = vsel %vm2279_vm13, %v2054_v46, %v2504_v40  ;;  %v875_v53 = vpop.f32.mrb[50].mxu0  ;;  %v1331_v54 = vpop.f32.mrb[50].mxu1  ;;  %v214_v46 = vld [vmem:[%s6227_s0 + $0x620] sm:$0xff]  ;;  %v284_v40 = vpack.c.bf16 %v101_v32, %v100_v31  ;;  %v105_v31 = vld [vmem:[%s6227_s0 + $0x2b8] sm:$0xff] }
 0x14b   :  { %v1941_v56 = vadd.f32 %v4848_v55, %v1709_v45  ;;  %2955 = vst.msk [vmem:[%s6230_s4 + $0x448] sm:$0xff] %vm2817_vm4, %v2729_v51  ;;  %v1710_v57 = vmul.f32 %v4837_v44, %v875_v53  ;;  %v3346_v58 = vpop.f32.mrb[51].mxu0  ;;  %v2055_v59 = vadd.f32 %v4848_v55, %v1823_v48  ;;  %v1824_v60 = vmul.f32 %v4837_v44, %v1331_v54  ;;  %v3574_v61 = vpop.f32.mrb[51].mxu1 }
 0x14c   :  { %v341_v49 = vpack.c.bf16 %v215_v35, %v214_v46  ;;  %v219_v46 = vld [vmem:[%s6227_s0 + $0x648] sm:$0xff] }
 0x14d   :  { %vm2166_vm14 = vcmp.gt.f32.partialorder %v1941_v56, 0.0  ;;  %v2391_v62 = vmul.f32 0.01, %v1941_v56  ;;  %v1942_v63 = vadd.f32 %v4848_v55, %v1710_v57  ;;  %3452 = vmatmul.mubr.msk.bf16.gmra.mrb[156].mxu0 %vm395_vm3, %v282_v41  ;;  %vm2280_vm15 = vcmp.gt.f32.partialorder %v2055_v59, 0.0  ;;  %3680 = vmatmul.mubr.msk.bf16.gmra.mrb[156].mxu1 %vm395_vm3, %v339_v50 }
 0x14e   :  { %v2505_v3 = vmul.f32 0.01, %v2055_v59  ;;  %v2056_v4 = vadd.f32 %v4848_v55, %v1824_v60  ;;  %3455 = vmatprep.mubr.msk.bf16.mxu0 %vm3774_vm0, %v3773_v0  ;;  %3683 = vmatprep.mubr.msk.bf16.mxu1 %vm3774_vm0, %v3773_v0 }
 0x14f   :  { %v2616_v7 = vsel %vm2166_vm14, %v1941_v56, %v2391_v62  ;;  %vm2167_vm1 = vcmp.gt.f32.partialorder %v1942_v63, 0.0  ;;  %v2392_v8 = vmul.f32 0.01, %v1942_v63 }
 0x150   :  { %2842 = vst.msk [vmem:[%s6230_s4 + $0xc0] sm:$0xff] %vm2817_vm4, %v2616_v7  ;;  %v2730_v9 = vsel %vm2280_vm15, %v2055_v59, %v2505_v3  ;;  %v880_v10 = vpop.f32.mrb[52].mxu0  ;;  %vm2281_vm2 = vcmp.gt.f32.partialorder %v2056_v4, 0.0  ;;  %v2506_v11 = vmul.f32 0.01, %v2056_v4  ;;  %v1336_v13 = vpop.f32.mrb[52].mxu1 }
 0x151   :  { %v2617_v14 = vsel %vm2167_vm1, %v1942_v63, %v2392_v8  ;;  %2956 = vst.msk [vmem:[%s6230_s4 + $0x450] sm:$0xff] %vm2817_vm4, %v2730_v9  ;;  %v1711_v15 = vmul.f32 %v4837_v44, %v880_v10  ;;  %v3349_v16 = vpop.f32.mrb[53].mxu0  ;;  %v1825_v17 = vmul.f32 %v4837_v44, %v1336_v13  ;;  %v3577_v18 = vpop.f32.mrb[53].mxu1  ;;  %v102_v63 = vld [vmem:[%s6227_s0 + $0x2a0] sm:$0xff] }
 0x152   :  { %2843 = vst.msk [vmem:[%s6230_s4 + $0xc8] sm:$0xff] %vm2817_vm4, %v2617_v14  ;;  %v2731_v20 = vsel %vm2281_vm2, %v2056_v4, %v2506_v11  ;;  %v883_v21 = vpop.f32.mrb[54].mxu0  ;;  %v1339_v22 = vpop.f32.mrb[54].mxu1  ;;  %v216_v4 = vld [vmem:[%s6227_s0 + $0x630] sm:$0xff]  ;;  %v285_v11 = vpack.c.bf16 %v103_v1, %v102_v63  ;;  %v107_v63 = vld [vmem:[%s6227_s0 + $0x2c8] sm:$0xff] }
 0x153   :  { %v1943_v23 = vadd.f32 %v4848_v55, %v1711_v15  ;;  %2957 = vst.msk [vmem:[%s6230_s4 + $0x458] sm:$0xff] %vm2817_vm4, %v2731_v20  ;;  %v1712_v24 = vmul.f32 %v4837_v44, %v883_v21  ;;  %v3350_v25 = vpop.f32.mrb[55].mxu0  ;;  %v2057_v26 = vadd.f32 %v4848_v55, %v1825_v17  ;;  %v1826_v27 = vmul.f32 %v4837_v44, %v1339_v22  ;;  %v3578_v28 = vpop.f32.mrb[55].mxu1 }
 0x154   :  { %v342_v18 = vpack.c.bf16 %v217_v5, %v216_v4  ;;  %v221_v4 = vld [vmem:[%s6227_s0 + $0x658] sm:$0xff] }
 0x155   :  { %vm2168_vm5 = vcmp.gt.f32.partialorder %v1943_v23, 0.0  ;;  %v2393_v29 = vmul.f32 0.01, %v1943_v23  ;;  %v1944_v30 = vadd.f32 %v4848_v55, %v1712_v24  ;;  %3456 = vmatmul.mubr.msk.bf16.gmra.mrb[160].mxu0 %vm395_vm3, %v283_v12  ;;  %vm2282_vm6 = vcmp.gt.f32.partialorder %v2057_v26, 0.0  ;;  %3684 = vmatmul.mubr.msk.bf16.gmra.mrb[160].mxu1 %vm395_vm3, %v340_v19 }
 0x156   :  { %v2507_v33 = vmul.f32 0.01, %v2057_v26  ;;  %v2058_v34 = vadd.f32 %v4848_v55, %v1826_v27  ;;  %3459 = vmatprep.mubr.msk.bf16.mxu0 %vm3774_vm0, %v3773_v0  ;;  %3687 = vmatprep.mubr.msk.bf16.mxu1 %vm3774_vm0, %v3773_v0 }
 0x157   :  { %v2618_v36 = vsel %vm2168_vm5, %v1943_v23, %v2393_v29  ;;  %vm2169_vm7 = vcmp.gt.f32.partialorder %v1944_v30, 0.0  ;;  %v2394_v37 = vmul.f32 0.01, %v1944_v30 }
 0x158   :  { %2844 = vst.msk [vmem:[%s6230_s4 + $0xd0] sm:$0xff] %vm2817_vm4, %v2618_v36  ;;  %v2732_v38 = vsel %vm2282_vm6, %v2057_v26, %v2507_v33  ;;  %v888_v52 = vpop.f32.mrb[56].mxu0  ;;  %vm2283_vm8 = vcmp.gt.f32.partialorder %v2058_v34, 0.0  ;;  %v2508_v39 = vmul.f32 0.01, %v2058_v34  ;;  %v1344_v41 = vpop.f32.mrb[56].mxu1 }
 0x159   :  { %v2619_v42 = vsel %vm2169_vm7, %v1944_v30, %v2394_v37  ;;  %2958 = vst.msk [vmem:[%s6230_s4 + $0x460] sm:$0xff] %vm2817_vm4, %v2732_v38  ;;  %v1713_v43 = vmul.f32 %v4837_v44, %v888_v52  ;;  %v3353_v45 = vpop.f32.mrb[57].mxu0  ;;  %v1827_v47 = vmul.f32 %v4837_v44, %v1344_v41  ;;  %v3581_v48 = vpop.f32.mrb[57].mxu1  ;;  %v104_v30 = vld [vmem:[%s6227_s0 + $0x2b0] sm:$0xff] }
 0x15a   :  { %2845 = vst.msk [vmem:[%s6230_s4 + $0xd8] sm:$0xff] %vm2817_vm4, %v2619_v42  ;;  %v2733_v50 = vsel %vm2283_vm8, %v2058_v34, %v2508_v39  ;;  %v891_v51 = vpop.f32.mrb[58].mxu0  ;;  %v1347_v53 = vpop.f32.mrb[58].mxu1  ;;  %v218_v34 = vld [vmem:[%s6227_s0 + $0x640] sm:$0xff]  ;;  %v286_v39 = vpack.c.bf16 %v105_v31, %v104_v30  ;;  %v109_v30 = vld [vmem:[%s6227_s0 + $0x2d8] sm:$0xff] }
 0x15b   :  { %v1945_v54 = vadd.f32 %v4848_v55, %v1713_v43  ;;  %2959 = vst.msk [vmem:[%s6230_s4 + $0x468] sm:$0xff] %vm2817_vm4, %v2733_v50  ;;  %v1714_v56 = vmul.f32 %v4837_v44, %v891_v51  ;;  %v3354_v57 = vpop.f32.mrb[59].mxu0  ;;  %v2059_v58 = vadd.f32 %v4848_v55, %v1827_v47  ;;  %v1828_v59 = vmul.f32 %v4837_v44, %v1347_v53  ;;  %v3582_v60 = vpop.f32.mrb[59].mxu1 }
 0x15c   :  { %v343_v48 = vpack.c.bf16 %v219_v46, %v218_v34  ;;  %v223_v34 = vld [vmem:[%s6227_s0 + $0x668] sm:$0xff] }
 0x15d   :  { %vm2170_vm9 = vcmp.gt.f32.partialorder %v1945_v54, 0.0  ;;  %v2395_v61 = vmul.f32 0.01, %v1945_v54  ;;  %v1946_v62 = vadd.f32 %v4848_v55, %v1714_v56  ;;  %3460 = vmatmul.mubr.msk.bf16.gmra.mrb[164].mxu0 %vm395_vm3, %v284_v40  ;;  %vm2284_vm10 = vcmp.gt.f32.partialorder %v2059_v58, 0.0  ;;  %3688 = vmatmul.mubr.msk.bf16.gmra.mrb[164].mxu1 %vm395_vm3, %v341_v49 }
 0x15e   :  { %v2509_v2 = vmul.f32 0.01, %v2059_v58  ;;  %v2060_v3 = vadd.f32 %v4848_v55, %v1828_v59  ;;  %3463 = vmatprep.mubr.msk.bf16.mxu0 %vm3774_vm0, %v3773_v0  ;;  %3691 = vmatprep.mubr.msk.bf16.mxu1 %vm3774_vm0, %v3773_v0 }
 0x15f   :  { %v2620_v6 = vsel %vm2170_vm9, %v1945_v54, %v2395_v61  ;;  %vm2171_vm11 = vcmp.gt.f32.partialorder %v1946_v62, 0.0  ;;  %v2396_v7 = vmul.f32 0.01, %v1946_v62 }
 0x160   :  { %2846 = vst.msk [vmem:[%s6230_s4 + $0xe0] sm:$0xff] %vm2817_vm4, %v2620_v6  ;;  %v2734_v8 = vsel %vm2284_vm10, %v2059_v58, %v2509_v2  ;;  %v896_v9 = vpop.f32.mrb[60].mxu0  ;;  %vm2285_vm12 = vcmp.gt.f32.partialorder %v2060_v3, 0.0  ;;  %v2510_v10 = vmul.f32 0.01, %v2060_v3  ;;  %v1352_v12 = vpop.f32.mrb[60].mxu1 }
 0x161   :  { %v2621_v13 = vsel %vm2171_vm11, %v1946_v62, %v2396_v7  ;;  %2960 = vst.msk [vmem:[%s6230_s4 + $0x470] sm:$0xff] %vm2817_vm4, %v2734_v8  ;;  %v1715_v14 = vmul.f32 %v4837_v44, %v896_v9  ;;  %v3357_v15 = vpop.f32.mrb[61].mxu0  ;;  %v1829_v16 = vmul.f32 %v4837_v44, %v1352_v12  ;;  %v3585_v17 = vpop.f32.mrb[61].mxu1  ;;  %v106_v62 = vld [vmem:[%s6227_s0 + $0x2c0] sm:$0xff] }
 0x162   :  { %2847 = vst.msk [vmem:[%s6230_s4 + $0xe8] sm:$0xff] %vm2817_vm4, %v2621_v13  ;;  %v2735_v19 = vsel %vm2285_vm12, %v2060_v3, %v2510_v10  ;;  %v899_v20 = vpop.f32.mrb[62].mxu0  ;;  %v1355_v21 = vpop.f32.mrb[62].mxu1  ;;  %v220_v3 = vld [vmem:[%s6227_s0 + $0x650] sm:$0xff]  ;;  %v287_v10 = vpack.c.bf16 %v107_v63, %v106_v62  ;;  %v111_v62 = vld [vmem:[%s6227_s0 + $0x2e8] sm:$0xff] }
 0x163   :  { %v1947_v22 = vadd.f32 %v4848_v55, %v1715_v14  ;;  %2961 = vst.msk [vmem:[%s6230_s4 + $0x478] sm:$0xff] %vm2817_vm4, %v2735_v19  ;;  %v1716_v23 = vmul.f32 %v4837_v44, %v899_v20  ;;  %v3358_v24 = vpop.f32.mrb[63].mxu0  ;;  %v2061_v25 = vadd.f32 %v4848_v55, %v1829_v16  ;;  %v1830_v26 = vmul.f32 %v4837_v44, %v1355_v21  ;;  %v3586_v27 = vpop.f32.mrb[63].mxu1 }
 0x164   :  { %v344_v17 = vpack.c.bf16 %v221_v4, %v220_v3  ;;  %v225_v3 = vld [vmem:[%s6227_s0 + $0x678] sm:$0xff] }
 0x165   :  { %vm2172_vm13 = vcmp.gt.f32.partialorder %v1947_v22, 0.0  ;;  %v2397_v28 = vmul.f32 0.01, %v1947_v22  ;;  %v1948_v29 = vadd.f32 %v4848_v55, %v1716_v23  ;;  %3464 = vmatmul.mubr.msk.bf16.gmra.mrb[168].mxu0 %vm395_vm3, %v285_v11  ;;  %vm2286_vm14 = vcmp.gt.f32.partialorder %v2061_v25, 0.0  ;;  %3692 = vmatmul.mubr.msk.bf16.gmra.mrb[168].mxu1 %vm395_vm3, %v342_v18 }
 0x166   :  { %v2511_v32 = vmul.f32 0.01, %v2061_v25  ;;  %v2062_v33 = vadd.f32 %v4848_v55, %v1830_v26  ;;  %3467 = vmatprep.mubr.msk.bf16.mxu0 %vm3774_vm0, %v3773_v0  ;;  %3695 = vmatprep.mubr.msk.bf16.mxu1 %vm3774_vm0, %v3773_v0 }
 0x167   :  { %v2622_v35 = vsel %vm2172_vm13, %v1947_v22, %v2397_v28  ;;  %vm2173_vm15 = vcmp.gt.f32.partialorder %v1948_v29, 0.0  ;;  %v2398_v36 = vmul.f32 0.01, %v1948_v29 }
 0x168   :  { %2848 = vst.msk [vmem:[%s6230_s4 + $0xf0] sm:$0xff] %vm2817_vm4, %v2622_v35  ;;  %v2736_v37 = vsel %vm2286_vm14, %v2061_v25, %v2511_v32  ;;  %v904_v38 = vpop.f32.mrb[64].mxu0  ;;  %vm2287_vm1 = vcmp.gt.f32.partialorder %v2062_v33, 0.0  ;;  %v2512_v52 = vmul.f32 0.01, %v2062_v33  ;;  %v1360_v40 = vpop.f32.mrb[64].mxu1 }
 0x169   :  { %v2623_v41 = vsel %vm2173_vm15, %v1948_v29, %v2398_v36  ;;  %2962 = vst.msk [vmem:[%s6230_s4 + $0x480] sm:$0xff] %vm2817_vm4, %v2736_v37  ;;  %v1717_v42 = vmul.f32 %v4837_v44, %v904_v38  ;;  %v3361_v43 = vpop.f32.mrb[65].mxu0  ;;  %v1831_v45 = vmul.f32 %v4837_v44, %v1360_v40  ;;  %v3589_v47 = vpop.f32.mrb[65].mxu1  ;;  %v108_v29 = vld [vmem:[%s6227_s0 + $0x2d0] sm:$0xff] }
 0x16a   :  { %2849 = vst.msk [vmem:[%s6230_s4 + $0xf8] sm:$0xff] %vm2817_vm4, %v2623_v41  ;;  %v2737_v49 = vsel %vm2287_vm1, %v2062_v33, %v2512_v52  ;;  %v907_v50 = vpop.f32.mrb[66].mxu0  ;;  %v1363_v51 = vpop.f32.mrb[66].mxu1  ;;  %v222_v33 = vld [vmem:[%s6227_s0 + $0x660] sm:$0xff]  ;;  %v288_v52 = vpack.c.bf16 %v109_v30, %v108_v29  ;;  %v113_v29 = vld [vmem:[%s6227_s0 + $0x2f8] sm:$0xff] }
 0x16b   :  { %v1949_v53 = vadd.f32 %v4848_v55, %v1717_v42  ;;  %2963 = vst.msk [vmem:[%s6230_s4 + $0x488] sm:$0xff] %vm2817_vm4, %v2737_v49  ;;  %v1718_v54 = vmul.f32 %v4837_v44, %v907_v50  ;;  %v3362_v56 = vpop.f32.mrb[67].mxu0  ;;  %v2063_v57 = vadd.f32 %v4848_v55, %v1831_v45  ;;  %v1832_v58 = vmul.f32 %v4837_v44, %v1363_v51  ;;  %v3590_v59 = vpop.f32.mrb[67].mxu1 }
 0x16c   :  { %v345_v47 = vpack.c.bf16 %v223_v34, %v222_v33  ;;  %v227_v33 = vld [vmem:[%s6227_s0 + $0x688] sm:$0xff] }
 0x16d   :  { %vm2174_vm2 = vcmp.gt.f32.partialorder %v1949_v53, 0.0  ;;  %v2399_v60 = vmul.f32 0.01, %v1949_v53  ;;  %v1950_v61 = vadd.f32 %v4848_v55, %v1718_v54  ;;  %3468 = vmatmul.mubr.msk.bf16.gmra.mrb[172].mxu0 %vm395_vm3, %v286_v39  ;;  %vm2288_vm5 = vcmp.gt.f32.partialorder %v2063_v57, 0.0  ;;  %3696 = vmatmul.mubr.msk.bf16.gmra.mrb[172].mxu1 %vm395_vm3, %v343_v48 }
 0x16e   :  { %v2513_v1 = vmul.f32 0.01, %v2063_v57  ;;  %v2064_v2 = vadd.f32 %v4848_v55, %v1832_v58  ;;  %3471 = vmatprep.mubr.msk.bf16.mxu0 %vm3774_vm0, %v3773_v0  ;;  %3699 = vmatprep.mubr.msk.bf16.mxu1 %vm3774_vm0, %v3773_v0 }
 0x16f   :  { %v2624_v5 = vsel %vm2174_vm2, %v1949_v53, %v2399_v60  ;;  %vm2175_vm6 = vcmp.gt.f32.partialorder %v1950_v61, 0.0  ;;  %v2400_v6 = vmul.f32 0.01, %v1950_v61 }
 0x170   :  { %2850 = vst.msk [vmem:[%s6230_s4 + $0x100] sm:$0xff] %vm2817_vm4, %v2624_v5  ;;  %v2738_v7 = vsel %vm2288_vm5, %v2063_v57, %v2513_v1  ;;  %v912_v8 = vpop.f32.mrb[68].mxu0  ;;  %vm2289_vm7 = vcmp.gt.f32.partialorder %v2064_v2, 0.0  ;;  %v2514_v9 = vmul.f32 0.01, %v2064_v2  ;;  %v1368_v11 = vpop.f32.mrb[68].mxu1 }
 0x171   :  { %v2625_v12 = vsel %vm2175_vm6, %v1950_v61, %v2400_v6  ;;  %2964 = vst.msk [vmem:[%s6230_s4 + $0x490] sm:$0xff] %vm2817_vm4, %v2738_v7  ;;  %v1719_v13 = vmul.f32 %v4837_v44, %v912_v8  ;;  %v3365_v14 = vpop.f32.mrb[69].mxu0  ;;  %v1833_v15 = vmul.f32 %v4837_v44, %v1368_v11  ;;  %v3593_v16 = vpop.f32.mrb[69].mxu1  ;;  %v110_v61 = vld [vmem:[%s6227_s0 + $0x2e0] sm:$0xff] }
 0x172   :  { %2851 = vst.msk [vmem:[%s6230_s4 + $0x108] sm:$0xff] %vm2817_vm4, %v2625_v12  ;;  %v2739_v18 = vsel %vm2289_vm7, %v2064_v2, %v2514_v9  ;;  %v915_v19 = vpop.f32.mrb[70].mxu0  ;;  %v1371_v20 = vpop.f32.mrb[70].mxu1  ;;  %v224_v2 = vld [vmem:[%s6227_s0 + $0x670] sm:$0xff]  ;;  %v289_v9 = vpack.c.bf16 %v111_v62, %v110_v61  ;;  %v115_v61 = vld [vmem:[%s6227_s0 + $0x308] sm:$0xff] }
 0x173   :  { %v1951_v21 = vadd.f32 %v4848_v55, %v1719_v13  ;;  %2965 = vst.msk [vmem:[%s6230_s4 + $0x498] sm:$0xff] %vm2817_vm4, %v2739_v18  ;;  %v1720_v22 = vmul.f32 %v4837_v44, %v915_v19  ;;  %v3366_v23 = vpop.f32.mrb[71].mxu0  ;;  %v2065_v24 = vadd.f32 %v4848_v55, %v1833_v15  ;;  %v1834_v25 = vmul.f32 %v4837_v44, %v1371_v20  ;;  %v3594_v26 = vpop.f32.mrb[71].mxu1 }
 0x174   :  { %v346_v16 = vpack.c.bf16 %v225_v3, %v224_v2  ;;  %v229_v2 = vld [vmem:[%s6227_s0 + $0x698] sm:$0xff] }
 0x175   :  { %vm2176_vm8 = vcmp.gt.f32.partialorder %v1951_v21, 0.0  ;;  %v2401_v27 = vmul.f32 0.01, %v1951_v21  ;;  %v1952_v28 = vadd.f32 %v4848_v55, %v1720_v22  ;;  %3472 = vmatmul.mubr.msk.bf16.gmra.mrb[176].mxu0 %vm395_vm3, %v287_v10  ;;  %vm2290_vm9 = vcmp.gt.f32.partialorder %v2065_v24, 0.0  ;;  %3700 = vmatmul.mubr.msk.bf16.gmra.mrb[176].mxu1 %vm395_vm3, %v344_v17 }
 0x176   :  { %v2515_v31 = vmul.f32 0.01, %v2065_v24  ;;  %v2066_v32 = vadd.f32 %v4848_v55, %v1834_v25  ;;  %3475 = vmatprep.mubr.msk.bf16.mxu0 %vm3774_vm0, %v3773_v0  ;;  %3703 = vmatprep.mubr.msk.bf16.mxu1 %vm3774_vm0, %v3773_v0 }
 0x177   :  { %v2626_v46 = vsel %vm2176_vm8, %v1951_v21, %v2401_v27  ;;  %vm2177_vm10 = vcmp.gt.f32.partialorder %v1952_v28, 0.0  ;;  %v2402_v35 = vmul.f32 0.01, %v1952_v28 }
 0x178   :  { %2852 = vst.msk [vmem:[%s6230_s4 + $0x110] sm:$0xff] %vm2817_vm4, %v2626_v46  ;;  %v2740_v36 = vsel %vm2290_vm9, %v2065_v24, %v2515_v31  ;;  %v920_v37 = vpop.f32.mrb[72].mxu0  ;;  %vm2291_vm11 = vcmp.gt.f32.partialorder %v2066_v32, 0.0  ;;  %v2516_v38 = vmul.f32 0.01, %v2066_v32  ;;  %v1376_v39 = vpop.f32.mrb[72].mxu1 }
 0x179   :  { %v2627_v40 = vsel %vm2177_vm10, %v1952_v28, %v2402_v35  ;;  %2966 = vst.msk [vmem:[%s6230_s4 + $0x4a0] sm:$0xff] %vm2817_vm4, %v2740_v36  ;;  %v1721_v41 = vmul.f32 %v4837_v44, %v920_v37  ;;  %v3369_v42 = vpop.f32.mrb[73].mxu0  ;;  %v1835_v43 = vmul.f32 %v4837_v44, %v1376_v39  ;;  %v3597_v45 = vpop.f32.mrb[73].mxu1  ;;  %v112_v28 = vld [vmem:[%s6227_s0 + $0x2f0] sm:$0xff] }
 0x17a   :  { %2853 = vst.msk [vmem:[%s6230_s4 + $0x118] sm:$0xff] %vm2817_vm4, %v2627_v40  ;;  %v2741_v48 = vsel %vm2291_vm11, %v2066_v32, %v2516_v38  ;;  %v923_v49 = vpop.f32.mrb[74].mxu0  ;;  %v1379_v50 = vpop.f32.mrb[74].mxu1  ;;  %v226_v32 = vld [vmem:[%s6227_s0 + $0x680] sm:$0xff]  ;;  %v290_v38 = vpack.c.bf16 %v113_v29, %v112_v28  ;;  %v117_v28 = vld [vmem:[%s6227_s0 + $0x318] sm:$0xff] }
 0x17b   :  { %v1953_v51 = vadd.f32 %v4848_v55, %v1721_v41  ;;  %2967 = vst.msk [vmem:[%s6230_s4 + $0x4a8] sm:$0xff] %vm2817_vm4, %v2741_v48  ;;  %v1722_v53 = vmul.f32 %v4837_v44, %v923_v49  ;;  %v3370_v54 = vpop.f32.mrb[75].mxu0  ;;  %v2067_v56 = vadd.f32 %v4848_v55, %v1835_v43  ;;  %v1836_v57 = vmul.f32 %v4837_v44, %v1379_v50  ;;  %v3598_v58 = vpop.f32.mrb[75].mxu1 }
 0x17c   :  { %v347_v45 = vpack.c.bf16 %v227_v33, %v226_v32  ;;  %v231_v32 = vld [vmem:[%s6227_s0 + $0x6a8] sm:$0xff] }
 0x17d   :  { %vm2178_vm12 = vcmp.gt.f32.partialorder %v1953_v51, 0.0  ;;  %v2403_v59 = vmul.f32 0.01, %v1953_v51  ;;  %v1954_v60 = vadd.f32 %v4848_v55, %v1722_v53  ;;  %3476 = vmatmul.mubr.msk.bf16.gmra.mrb[180].mxu0 %vm395_vm3, %v288_v52  ;;  %vm2292_vm13 = vcmp.gt.f32.partialorder %v2067_v56, 0.0  ;;  %3704 = vmatmul.mubr.msk.bf16.gmra.mrb[180].mxu1 %vm395_vm3, %v345_v47 }
 0x17e   :  { %v2517_v63 = vmul.f32 0.01, %v2067_v56  ;;  %v2068_v1 = vadd.f32 %v4848_v55, %v1836_v57  ;;  %3479 = vmatprep.mubr.msk.bf16.mxu0 %vm3774_vm0, %v3773_v0  ;;  %3707 = vmatprep.mubr.msk.bf16.mxu1 %vm3774_vm0, %v3773_v0 }
 0x17f   :  { %v2628_v4 = vsel %vm2178_vm12, %v1953_v51, %v2403_v59  ;;  %vm2179_vm14 = vcmp.gt.f32.partialorder %v1954_v60, 0.0  ;;  %v2404_v5 = vmul.f32 0.01, %v1954_v60 }
 0x180   :  { %2854 = vst.msk [vmem:[%s6230_s4 + $0x120] sm:$0xff] %vm2817_vm4, %v2628_v4  ;;  %v2742_v6 = vsel %vm2292_vm13, %v2067_v56, %v2517_v63  ;;  %v928_v7 = vpop.f32.mrb[76].mxu0  ;;  %vm2293_vm15 = vcmp.gt.f32.partialorder %v2068_v1, 0.0  ;;  %v2518_v8 = vmul.f32 0.01, %v2068_v1  ;;  %v1384_v10 = vpop.f32.mrb[76].mxu1 }
 0x181   :  { %v2629_v11 = vsel %vm2179_vm14, %v1954_v60, %v2404_v5  ;;  %2968 = vst.msk [vmem:[%s6230_s4 + $0x4b0] sm:$0xff] %vm2817_vm4, %v2742_v6  ;;  %v1723_v12 = vmul.f32 %v4837_v44, %v928_v7  ;;  %v3373_v13 = vpop.f32.mrb[77].mxu0  ;;  %v1837_v14 = vmul.f32 %v4837_v44, %v1384_v10  ;;  %v3601_v15 = vpop.f32.mrb[77].mxu1  ;;  %v114_v60 = vld [vmem:[%s6227_s0 + $0x300] sm:$0xff] }
 0x182   :  { %2855 = vst.msk [vmem:[%s6230_s4 + $0x128] sm:$0xff] %vm2817_vm4, %v2629_v11  ;;  %v2743_v17 = vsel %vm2293_vm15, %v2068_v1, %v2518_v8  ;;  %v931_v18 = vpop.f32.mrb[78].mxu0  ;;  %v1387_v19 = vpop.f32.mrb[78].mxu1  ;;  %v228_v1 = vld [vmem:[%s6227_s0 + $0x690] sm:$0xff]  ;;  %v291_v8 = vpack.c.bf16 %v115_v61, %v114_v60  ;;  %v119_v60 = vld [vmem:[%s6227_s0 + $0x328] sm:$0xff] }
 0x183   :  { %v1955_v20 = vadd.f32 %v4848_v55, %v1723_v12  ;;  %2969 = vst.msk [vmem:[%s6230_s4 + $0x4b8] sm:$0xff] %vm2817_vm4, %v2743_v17  ;;  %v1724_v21 = vmul.f32 %v4837_v44, %v931_v18  ;;  %v3374_v22 = vpop.f32.mrb[79].mxu0  ;;  %v2069_v23 = vadd.f32 %v4848_v55, %v1837_v14  ;;  %v1838_v24 = vmul.f32 %v4837_v44, %v1387_v19  ;;  %v3602_v25 = vpop.f32.mrb[79].mxu1 }
 0x184   :  { %v348_v15 = vpack.c.bf16 %v229_v2, %v228_v1  ;;  %v233_v1 = vld [vmem:[%s6227_s0 + $0x6b8] sm:$0xff] }
 0x185   :  { %vm2180_vm1 = vcmp.gt.f32.partialorder %v1955_v20, 0.0  ;;  %v2405_v26 = vmul.f32 0.01, %v1955_v20  ;;  %v1956_v27 = vadd.f32 %v4848_v55, %v1724_v21  ;;  %3480 = vmatmul.mubr.msk.bf16.gmra.mrb[184].mxu0 %vm395_vm3, %v289_v9  ;;  %vm2294_vm2 = vcmp.gt.f32.partialorder %v2069_v23, 0.0  ;;  %3708 = vmatmul.mubr.msk.bf16.gmra.mrb[184].mxu1 %vm395_vm3, %v346_v16 }
 0x186   :  { %v2519_v30 = vmul.f32 0.01, %v2069_v23  ;;  %v2070_v31 = vadd.f32 %v4848_v55, %v1838_v24  ;;  %3483 = vmatprep.mubr.msk.bf16.mxu0 %vm3774_vm0, %v3773_v0  ;;  %3711 = vmatprep.mubr.msk.bf16.mxu1 %vm3774_vm0, %v3773_v0 }
 0x187   :  { %v2630_v34 = vsel %vm2180_vm1, %v1955_v20, %v2405_v26  ;;  %vm2181_vm5 = vcmp.gt.f32.partialorder %v1956_v27, 0.0  ;;  %v2406_v46 = vmul.f32 0.01, %v1956_v27 }
 0x188   :  { %2856 = vst.msk [vmem:[%s6230_s4 + $0x130] sm:$0xff] %vm2817_vm4, %v2630_v34  ;;  %v2744_v35 = vsel %vm2294_vm2, %v2069_v23, %v2519_v30  ;;  %v936_v36 = vpop.f32.mrb[80].mxu0  ;;  %vm2295_vm6 = vcmp.gt.f32.partialorder %v2070_v31, 0.0  ;;  %v2520_v37 = vmul.f32 0.01, %v2070_v31  ;;  %v1392_v52 = vpop.f32.mrb[80].mxu1 }
 0x189   :  { %v2631_v39 = vsel %vm2181_vm5, %v1956_v27, %v2406_v46  ;;  %2970 = vst.msk [vmem:[%s6230_s4 + $0x4c0] sm:$0xff] %vm2817_vm4, %v2744_v35  ;;  %v1725_v40 = vmul.f32 %v4837_v44, %v936_v36  ;;  %v3377_v41 = vpop.f32.mrb[81].mxu0  ;;  %v1839_v42 = vmul.f32 %v4837_v44, %v1392_v52  ;;  %v3605_v43 = vpop.f32.mrb[81].mxu1  ;;  %v116_v27 = vld [vmem:[%s6227_s0 + $0x310] sm:$0xff] }
 0x18a   :  { %2857 = vst.msk [vmem:[%s6230_s4 + $0x138] sm:$0xff] %vm2817_vm4, %v2631_v39  ;;  %v2745_v47 = vsel %vm2295_vm6, %v2070_v31, %v2520_v37  ;;  %v939_v48 = vpop.f32.mrb[82].mxu0  ;;  %v1395_v49 = vpop.f32.mrb[82].mxu1  ;;  %v230_v31 = vld [vmem:[%s6227_s0 + $0x6a0] sm:$0xff]  ;;  %v292_v37 = vpack.c.bf16 %v117_v28, %v116_v27  ;;  %v121_v27 = vld [vmem:[%s6227_s0 + $0x338] sm:$0xff] }
 0x18b   :  { %v1957_v50 = vadd.f32 %v4848_v55, %v1725_v40  ;;  %2971 = vst.msk [vmem:[%s6230_s4 + $0x4c8] sm:$0xff] %vm2817_vm4, %v2745_v47  ;;  %v1726_v51 = vmul.f32 %v4837_v44, %v939_v48  ;;  %v3378_v53 = vpop.f32.mrb[83].mxu0  ;;  %v2071_v54 = vadd.f32 %v4848_v55, %v1839_v42  ;;  %v1840_v56 = vmul.f32 %v4837_v44, %v1395_v49  ;;  %v3606_v57 = vpop.f32.mrb[83].mxu1 }
 0x18c   :  { %v349_v43 = vpack.c.bf16 %v231_v32, %v230_v31  ;;  %v235_v31 = vld [vmem:[%s6227_s0 + $0x6c8] sm:$0xff] }
 0x18d   :  { %vm2182_vm7 = vcmp.gt.f32.partialorder %v1957_v50, 0.0  ;;  %v2407_v58 = vmul.f32 0.01, %v1957_v50  ;;  %v1958_v59 = vadd.f32 %v4848_v55, %v1726_v51  ;;  %3484 = vmatmul.mubr.msk.bf16.gmra.mrb[188].mxu0 %vm395_vm3, %v290_v38  ;;  %vm2296_vm8 = vcmp.gt.f32.partialorder %v2071_v54, 0.0  ;;  %3712 = vmatmul.mubr.msk.bf16.gmra.mrb[188].mxu1 %vm395_vm3, %v347_v45 }
 0x18e   :  { %v2521_v62 = vmul.f32 0.01, %v2071_v54  ;;  %v2072_v63 = vadd.f32 %v4848_v55, %v1840_v56  ;;  %3487 = vmatprep.mubr.msk.bf16.mxu0 %vm3774_vm0, %v3773_v0  ;;  %3715 = vmatprep.mubr.msk.bf16.mxu1 %vm3774_vm0, %v3773_v0 }
 0x18f   :  { %v2632_v3 = vsel %vm2182_vm7, %v1957_v50, %v2407_v58  ;;  %vm2183_vm9 = vcmp.gt.f32.partialorder %v1958_v59, 0.0  ;;  %v2408_v4 = vmul.f32 0.01, %v1958_v59 }
 0x190   :  { %2858 = vst.msk [vmem:[%s6230_s4 + $0x140] sm:$0xff] %vm2817_vm4, %v2632_v3  ;;  %v2746_v5 = vsel %vm2296_vm8, %v2071_v54, %v2521_v62  ;;  %v944_v6 = vpop.f32.mrb[84].mxu0  ;;  %vm2297_vm10 = vcmp.gt.f32.partialorder %v2072_v63, 0.0  ;;  %v2522_v7 = vmul.f32 0.01, %v2072_v63  ;;  %v1400_v9 = vpop.f32.mrb[84].mxu1 }
 0x191   :  { %v2633_v10 = vsel %vm2183_vm9, %v1958_v59, %v2408_v4  ;;  %2972 = vst.msk [vmem:[%s6230_s4 + $0x4d0] sm:$0xff] %vm2817_vm4, %v2746_v5  ;;  %v1727_v11 = vmul.f32 %v4837_v44, %v944_v6  ;;  %v3381_v12 = vpop.f32.mrb[85].mxu0  ;;  %v1841_v13 = vmul.f32 %v4837_v44, %v1400_v9  ;;  %v3609_v14 = vpop.f32.mrb[85].mxu1  ;;  %v118_v59 = vld [vmem:[%s6227_s0 + $0x320] sm:$0xff] }
 0x192   :  { %2859 = vst.msk [vmem:[%s6230_s4 + $0x148] sm:$0xff] %vm2817_vm4, %v2633_v10  ;;  %v2747_v16 = vsel %vm2297_vm10, %v2072_v63, %v2522_v7  ;;  %v947_v17 = vpop.f32.mrb[86].mxu0  ;;  %v1403_v18 = vpop.f32.mrb[86].mxu1  ;;  %v232_v63 = vld [vmem:[%s6227_s0 + $0x6b0] sm:$0xff]  ;;  %v293_v7 = vpack.c.bf16 %v119_v60, %v118_v59  ;;  %v123_v59 = vld [vmem:[%s6227_s0 + $0x348] sm:$0xff] }
 0x193   :  { %v1959_v19 = vadd.f32 %v4848_v55, %v1727_v11  ;;  %2973 = vst.msk [vmem:[%s6230_s4 + $0x4d8] sm:$0xff] %vm2817_vm4, %v2747_v16  ;;  %v1728_v20 = vmul.f32 %v4837_v44, %v947_v17  ;;  %v3382_v21 = vpop.f32.mrb[87].mxu0  ;;  %v2073_v22 = vadd.f32 %v4848_v55, %v1841_v13  ;;  %v1842_v23 = vmul.f32 %v4837_v44, %v1403_v18  ;;  %v3610_v24 = vpop.f32.mrb[87].mxu1 }
 0x194   :  { %v350_v14 = vpack.c.bf16 %v233_v1, %v232_v63  ;;  %v237_v63 = vld [vmem:[%s6227_s0 + $0x6d8] sm:$0xff] }
 0x195   :  { %vm2184_vm11 = vcmp.gt.f32.partialorder %v1959_v19, 0.0  ;;  %v2409_v25 = vmul.f32 0.01, %v1959_v19  ;;  %v1960_v26 = vadd.f32 %v4848_v55, %v1728_v20  ;;  %3488 = vmatmul.mubr.msk.bf16.gmra.mrb[192].mxu0 %vm395_vm3, %v291_v8  ;;  %vm2298_vm12 = vcmp.gt.f32.partialorder %v2073_v22, 0.0  ;;  %3716 = vmatmul.mubr.msk.bf16.gmra.mrb[192].mxu1 %vm395_vm3, %v348_v15 }
 0x196   :  { %v2523_v29 = vmul.f32 0.01, %v2073_v22  ;;  %v2074_v30 = vadd.f32 %v4848_v55, %v1842_v23  ;;  %3491 = vmatprep.mubr.msk.bf16.mxu0 %vm3774_vm0, %v3773_v0  ;;  %3719 = vmatprep.mubr.msk.bf16.mxu1 %vm3774_vm0, %v3773_v0 }
 0x197   :  { %v2634_v33 = vsel %vm2184_vm11, %v1959_v19, %v2409_v25  ;;  %vm2185_vm13 = vcmp.gt.f32.partialorder %v1960_v26, 0.0  ;;  %v2410_v34 = vmul.f32 0.01, %v1960_v26 }
 0x198   :  { %2860 = vst.msk [vmem:[%s6230_s4 + $0x150] sm:$0xff] %vm2817_vm4, %v2634_v33  ;;  %v2748_v46 = vsel %vm2298_vm12, %v2073_v22, %v2523_v29  ;;  %v952_v35 = vpop.f32.mrb[88].mxu0  ;;  %vm2299_vm14 = vcmp.gt.f32.partialorder %v2074_v30, 0.0  ;;  %v2524_v36 = vmul.f32 0.01, %v2074_v30  ;;  %v1408_v38 = vpop.f32.mrb[88].mxu1 }
 0x199   :  { %v2635_v52 = vsel %vm2185_vm13, %v1960_v26, %v2410_v34  ;;  %2974 = vst.msk [vmem:[%s6230_s4 + $0x4e0] sm:$0xff] %vm2817_vm4, %v2748_v46  ;;  %v1729_v39 = vmul.f32 %v4837_v44, %v952_v35  ;;  %v3385_v40 = vpop.f32.mrb[89].mxu0  ;;  %v1843_v41 = vmul.f32 %v4837_v44, %v1408_v38  ;;  %v3613_v42 = vpop.f32.mrb[89].mxu1  ;;  %v120_v26 = vld [vmem:[%s6227_s0 + $0x330] sm:$0xff] }
 0x19a   :  { %2861 = vst.msk [vmem:[%s6230_s4 + $0x158] sm:$0xff] %vm2817_vm4, %v2635_v52  ;;  %v2749_v45 = vsel %vm2299_vm14, %v2074_v30, %v2524_v36  ;;  %v955_v47 = vpop.f32.mrb[90].mxu0  ;;  %v1411_v48 = vpop.f32.mrb[90].mxu1  ;;  %v234_v30 = vld [vmem:[%s6227_s0 + $0x6c0] sm:$0xff]  ;;  %v294_v36 = vpack.c.bf16 %v121_v27, %v120_v26  ;;  %v125_v26 = vld [vmem:[%s6227_s0 + $0x358] sm:$0xff] }
 0x19b   :  { %v1961_v49 = vadd.f32 %v4848_v55, %v1729_v39  ;;  %2975 = vst.msk [vmem:[%s6230_s4 + $0x4e8] sm:$0xff] %vm2817_vm4, %v2749_v45  ;;  %v1730_v50 = vmul.f32 %v4837_v44, %v955_v47  ;;  %v3386_v51 = vpop.f32.mrb[91].mxu0  ;;  %v2075_v53 = vadd.f32 %v4848_v55, %v1843_v41  ;;  %v1844_v54 = vmul.f32 %v4837_v44, %v1411_v48  ;;  %v3614_v56 = vpop.f32.mrb[91].mxu1 }
 0x19c   :  { %v351_v42 = vpack.c.bf16 %v235_v31, %v234_v30  ;;  %v239_v30 = vld [vmem:[%s6227_s0 + $0x6e8] sm:$0xff] }
 0x19d   :  { %vm2186_vm15 = vcmp.gt.f32.partialorder %v1961_v49, 0.0  ;;  %v2411_v57 = vmul.f32 0.01, %v1961_v49  ;;  %v1962_v58 = vadd.f32 %v4848_v55, %v1730_v50  ;;  %3492 = vmatmul.mubr.msk.bf16.gmra.mrb[196].mxu0 %vm395_vm3, %v292_v37  ;;  %vm2300_vm1 = vcmp.gt.f32.partialorder %v2075_v53, 0.0  ;;  %3720 = vmatmul.mubr.msk.bf16.gmra.mrb[196].mxu1 %vm395_vm3, %v349_v43 }
 0x19e   :  { %v2525_v61 = vmul.f32 0.01, %v2075_v53  ;;  %v2076_v62 = vadd.f32 %v4848_v55, %v1844_v54  ;;  %3495 = vmatprep.mubr.msk.bf16.mxu0 %vm3774_vm0, %v3773_v0  ;;  %3723 = vmatprep.mubr.msk.bf16.mxu1 %vm3774_vm0, %v3773_v0 }
 0x19f   :  { %v2636_v2 = vsel %vm2186_vm15, %v1961_v49, %v2411_v57  ;;  %vm2187_vm2 = vcmp.gt.f32.partialorder %v1962_v58, 0.0  ;;  %v2412_v3 = vmul.f32 0.01, %v1962_v58  ;;  %v5370_v57 = vld [vmem:[%s6229_s3] ss:$0 sm:$0xff] }
 0x1a0   :  { %2862 = vst.msk [vmem:[%s6230_s4 + $0x160] sm:$0xff] %vm2817_vm4, %v2636_v2  ;;  %v2750_v4 = vsel %vm2300_vm1, %v2075_v53, %v2525_v61  ;;  %v960_v5 = vpop.f32.mrb[92].mxu0  ;;  %vm2301_vm5 = vcmp.gt.f32.partialorder %v2076_v62, 0.0  ;;  %v2526_v6 = vmul.f32 0.01, %v2076_v62  ;;  %v1416_v8 = vpop.f32.mrb[92].mxu1 }
 0x1a1   :  { %v2637_v9 = vsel %vm2187_vm2, %v1962_v58, %v2412_v3  ;;  %2976 = vst.msk [vmem:[%s6230_s4 + $0x4f0] sm:$0xff] %vm2817_vm4, %v2750_v4  ;;  %v1731_v10 = vmul.f32 %v4837_v44, %v960_v5  ;;  %v3389_v11 = vpop.f32.mrb[93].mxu0  ;;  %v1845_v12 = vmul.f32 %v4837_v44, %v1416_v8  ;;  %v3617_v13 = vpop.f32.mrb[93].mxu1 }
 0x1a2   :  { %2863 = vst.msk [vmem:[%s6230_s4 + $0x168] sm:$0xff] %vm2817_vm4, %v2637_v9  ;;  %v2751_v15 = vsel %vm2301_vm5, %v2076_v62, %v2526_v6  ;;  %v963_v16 = vpop.f32.mrb[94].mxu0  ;;  %v1419_v17 = vpop.f32.mrb[94].mxu1  ;;  %v236_v62 = vld [vmem:[%s6227_s0 + $0x6d0] sm:$0xff] }
 0x1a3   :  { %v1963_v18 = vadd.f32 %v4848_v55, %v1731_v10  ;;  %2977 = vst.msk [vmem:[%s6230_s4 + $0x4f8] sm:$0xff] %vm2817_vm4, %v2751_v15  ;;  %v1732_v19 = vmul.f32 %v4837_v44, %v963_v16  ;;  %v3390_v20 = vpop.f32.mrb[95].mxu0  ;;  %v2077_v21 = vadd.f32 %v4848_v55, %v1845_v12  ;;  %v1846_v22 = vmul.f32 %v4837_v44, %v1419_v17  ;;  %v3618_v23 = vpop.f32.mrb[95].mxu1 }
 0x1a4   :  { %v352_v13 = vpack.c.bf16 %v237_v63, %v236_v62  ;;  %v241_v62 = vld [vmem:[%s6227_s0 + $0x6f8] sm:$0xff] }
 0x1a5   :  { %vm2188_vm6 = vcmp.gt.f32.partialorder %v1963_v18, 0.0  ;;  %v2413_v24 = vmul.f32 0.01, %v1963_v18  ;;  %v1964_v25 = vadd.f32 %v4848_v55, %v1732_v19  ;;  %3496 = vmatmul.mubr.msk.bf16.gmra.mrb[200].mxu0 %vm395_vm3, %v293_v7  ;;  %vm2302_vm7 = vcmp.gt.f32.partialorder %v2077_v21, 0.0  ;;  %3724 = vmatmul.mubr.msk.bf16.gmra.mrb[200].mxu1 %vm395_vm3, %v350_v14 }
 0x1a6   :  { %v2527_v28 = vmul.f32 0.01, %v2077_v21  ;;  %v2078_v29 = vadd.f32 %v4848_v55, %v1846_v22  ;;  %3499 = vmatprep.mubr.msk.bf16.mxu0 %vm3774_vm0, %v3773_v0  ;;  %3727 = vmatprep.mubr.msk.bf16.mxu1 %vm3774_vm0, %v3773_v0 }
 0x1a7   :  { %v2638_v32 = vsel %vm2188_vm6, %v1963_v18, %v2413_v24  ;;  %vm2189_vm8 = vcmp.gt.f32.partialorder %v1964_v25, 0.0  ;;  %v2414_v33 = vmul.f32 0.01, %v1964_v25 }
 0x1a8   :  { %2864 = vst.msk [vmem:[%s6230_s4 + $0x170] sm:$0xff] %vm2817_vm4, %v2638_v32  ;;  %v2752_v34 = vsel %vm2302_vm7, %v2077_v21, %v2527_v28  ;;  %v968_v46 = vpop.f32.mrb[96].mxu0  ;;  %vm2303_vm9 = vcmp.gt.f32.partialorder %v2078_v29, 0.0  ;;  %v2528_v35 = vmul.f32 0.01, %v2078_v29  ;;  %v1424_v37 = vpop.f32.mrb[96].mxu1 }
 0x1a9   :  { %v2639_v38 = vsel %vm2189_vm8, %v1964_v25, %v2414_v33  ;;  %2978 = vst.msk [vmem:[%s6230_s4 + $0x500] sm:$0xff] %vm2817_vm4, %v2752_v34  ;;  %v1733_v52 = vmul.f32 %v4837_v44, %v968_v46  ;;  %v3393_v39 = vpop.f32.mrb[97].mxu0  ;;  %v1847_v40 = vmul.f32 %v4837_v44, %v1424_v37  ;;  %v3621_v41 = vpop.f32.mrb[97].mxu1  ;;  %v5362_v44 = vld [vmem:[%s6228_s2] ss:$0 sm:$0xff]  ;;  %v124_v25 = vld [vmem:[%s6227_s0 + $0x350] sm:$0xff] }
 0x1aa   :  { %2865 = vst.msk [vmem:[%s6230_s4 + $0x178] sm:$0xff] %vm2817_vm4, %v2639_v38  ;;  %v2753_v43 = vsel %vm2303_vm9, %v2078_v29, %v2528_v35  ;;  %v971_v45 = vpop.f32.mrb[98].mxu0  ;;  %v1427_v47 = vpop.f32.mrb[98].mxu1  ;;  %v238_v29 = vld [vmem:[%s6227_s0 + $0x6e0] sm:$0xff]  ;;  %v296_v35 = vpack.c.bf16 %v125_v26, %v124_v25  ;;  %v129_v25 = vld [vmem:[%s6227_s0 + $0x378] sm:$0xff] }
 0x1ab   :  { %v1965_v48 = vadd.f32 %v4848_v55, %v1733_v52  ;;  %2979 = vst.msk [vmem:[%s6230_s4 + $0x508] sm:$0xff] %vm2817_vm4, %v2753_v43  ;;  %v1734_v49 = vmul.f32 %v5362_v44, %v971_v45  ;;  %v3394_v50 = vpop.f32.mrb[99].mxu0  ;;  %v2079_v51 = vadd.f32 %v4848_v55, %v1847_v40  ;;  %v1848_v53 = vmul.f32 %v5362_v44, %v1427_v47  ;;  %v3622_v54 = vpop.f32.mrb[99].mxu1  ;;  %v122_v55 = vld [vmem:[%s6227_s0 + $0x340] sm:$0xff] }
 0x1ac   :  { %v295_v6 = vpack.c.bf16 %v123_v59, %v122_v55  ;;  %v353_v41 = vpack.c.bf16 %v239_v30, %v238_v29  ;;  %v127_v55 = vld [vmem:[%s6227_s0 + $0x368] sm:$0xff] }
 0x1ad   :  { %vm2190_vm10 = vcmp.gt.f32.partialorder %v1965_v48, 0.0  ;;  %v2415_v56 = vmul.f32 0.01, %v1965_v48  ;;  %v1966_v58 = vadd.f32 %v5370_v57, %v1734_v49  ;;  %3500 = vmatmul.mubr.msk.bf16.gmra.mrb[204].mxu0 %vm395_vm3, %v294_v36  ;;  %vm2304_vm11 = vcmp.gt.f32.partialorder %v2079_v51, 0.0  ;;  %3728 = vmatmul.mubr.msk.bf16.gmra.mrb[204].mxu1 %vm395_vm3, %v351_v42 }
 0x1ae   :  { %v2529_v60 = vmul.f32 0.01, %v2079_v51  ;;  %v2080_v61 = vadd.f32 %v5370_v57, %v1848_v53  ;;  %3503 = vmatprep.mubr.msk.bf16.mxu0 %vm3774_vm0, %v3773_v0  ;;  %3731 = vmatprep.mubr.msk.bf16.mxu1 %vm3774_vm0, %v3773_v0 }
 0x1af   :  { %v2640_v1 = vsel %vm2190_vm10, %v1965_v48, %v2415_v56  ;;  %vm2191_vm12 = vcmp.gt.f32.partialorder %v1966_v58, 0.0  ;;  %v2416_v2 = vmul.f32 0.01, %v1966_v58 }
 0x1b0   :  { %2866 = vst.msk [vmem:[%s6230_s4 + $0x180] sm:$0xff] %vm2817_vm4, %v2640_v1  ;;  %v2754_v3 = vsel %vm2304_vm11, %v2079_v51, %v2529_v60  ;;  %v976_v4 = vpop.f32.mrb[100].mxu0  ;;  %vm2305_vm13 = vcmp.gt.f32.partialorder %v2080_v61, 0.0  ;;  %v2530_v5 = vmul.f32 0.01, %v2080_v61  ;;  %v1432_v7 = vpop.f32.mrb[100].mxu1 }
 0x1b1   :  { %v2641_v8 = vsel %vm2191_vm12, %v1966_v58, %v2416_v2  ;;  %2980 = vst.msk [vmem:[%s6230_s4 + $0x510] sm:$0xff] %vm2817_vm4, %v2754_v3  ;;  %v1735_v9 = vmul.f32 %v5362_v44, %v976_v4  ;;  %v3397_v10 = vpop.f32.mrb[101].mxu0  ;;  %v1849_v11 = vmul.f32 %v5362_v44, %v1432_v7  ;;  %v3625_v12 = vpop.f32.mrb[101].mxu1  ;;  %v126_v58 = vld [vmem:[%s6227_s0 + $0x360] sm:$0xff] }
 0x1b2   :  { %2867 = vst.msk [vmem:[%s6230_s4 + $0x188] sm:$0xff] %vm2817_vm4, %v2641_v8  ;;  %v2755_v14 = vsel %vm2305_vm13, %v2080_v61, %v2530_v5  ;;  %v979_v15 = vpop.f32.mrb[102].mxu0  ;;  %v1435_v16 = vpop.f32.mrb[102].mxu1  ;;  %v240_v61 = vld [vmem:[%s6227_s0 + $0x6f0] sm:$0xff]  ;;  %v297_v5 = vpack.c.bf16 %v127_v55, %v126_v58  ;;  %v130_v58 = vld [vmem:[%s6227_s0 + $0x380] sm:$0xff]  ;;  %v131_v55 = vld [vmem:[%s6227_s0 + $0x388] sm:$0xff] }
 0x1b3   :  { %v1967_v17 = vadd.f32 %v5370_v57, %v1735_v9  ;;  %2981 = vst.msk [vmem:[%s6230_s4 + $0x518] sm:$0xff] %vm2817_vm4, %v2755_v14  ;;  %v1736_v18 = vmul.f32 %v5362_v44, %v979_v15  ;;  %v3398_v19 = vpop.f32.mrb[103].mxu0  ;;  %v2081_v20 = vadd.f32 %v5370_v57, %v1849_v11  ;;  %v1850_v21 = vmul.f32 %v5362_v44, %v1435_v16  ;;  %v3626_v22 = vpop.f32.mrb[103].mxu1 }
 0x1b4   :  { %v354_v12 = vpack.c.bf16 %v241_v62, %v240_v61 }
 0x1b5   :  { %vm2192_vm14 = vcmp.gt.f32.partialorder %v1967_v17, 0.0  ;;  %v2417_v23 = vmul.f32 0.01, %v1967_v17  ;;  %v1968_v24 = vadd.f32 %v5370_v57, %v1736_v18  ;;  %3504 = vmatmul.mubr.msk.bf16.gmra.mrb[208].mxu0 %vm395_vm3, %v295_v6  ;;  %vm2306_vm15 = vcmp.gt.f32.partialorder %v2081_v20, 0.0  ;;  %3732 = vmatmul.mubr.msk.bf16.gmra.mrb[208].mxu1 %vm395_vm3, %v352_v13 }
 0x1b6   :  { %v2531_v27 = vmul.f32 0.01, %v2081_v20  ;;  %v2082_v28 = vadd.f32 %v5370_v57, %v1850_v21  ;;  %3507 = vmatprep.mubr.msk.bf16.mxu0 %vm3774_vm0, %v3773_v0  ;;  %3735 = vmatprep.mubr.msk.bf16.mxu1 %vm3774_vm0, %v3773_v0 }
 0x1b7   :  { %v2642_v31 = vsel %vm2192_vm14, %v1967_v17, %v2417_v23  ;;  %vm2193_vm1 = vcmp.gt.f32.partialorder %v1968_v24, 0.0  ;;  %v2418_v32 = vmul.f32 0.01, %v1968_v24 }
 0x1b8   :  { %2868 = vst.msk [vmem:[%s6230_s4 + $0x190] sm:$0xff] %vm2817_vm4, %v2642_v31  ;;  %v2756_v33 = vsel %vm2306_vm15, %v2081_v20, %v2531_v27  ;;  %v984_v34 = vpop.f32.mrb[104].mxu0  ;;  %vm2307_vm2 = vcmp.gt.f32.partialorder %v2082_v28, 0.0  ;;  %v2532_v46 = vmul.f32 0.01, %v2082_v28  ;;  %v1440_v36 = vpop.f32.mrb[104].mxu1 }
 0x1b9   :  { %v2643_v37 = vsel %vm2193_vm1, %v1968_v24, %v2418_v32  ;;  %2982 = vst.msk [vmem:[%s6230_s4 + $0x520] sm:$0xff] %vm2817_vm4, %v2756_v33  ;;  %v1737_v38 = vmul.f32 %v5362_v44, %v984_v34  ;;  %v3401_v52 = vpop.f32.mrb[105].mxu0  ;;  %v1851_v39 = vmul.f32 %v5362_v44, %v1440_v36  ;;  %v3629_v40 = vpop.f32.mrb[105].mxu1  ;;  %v128_v24 = vld [vmem:[%s6227_s0 + $0x370] sm:$0xff] }
 0x1ba   :  { %2869 = vst.msk [vmem:[%s6230_s4 + $0x198] sm:$0xff] %vm2817_vm4, %v2643_v37  ;;  %v2757_v42 = vsel %vm2307_vm2, %v2082_v28, %v2532_v46  ;;  %v987_v43 = vpop.f32.mrb[106].mxu0  ;;  %v1443_v45 = vpop.f32.mrb[106].mxu1  ;;  %v242_v28 = vld [vmem:[%s6227_s0 + $0x700] sm:$0xff]  ;;  %v298_v34 = vpack.c.bf16 %v129_v25, %v128_v24 }
 0x1bb   :  { %v1969_v47 = vadd.f32 %v5370_v57, %v1737_v38  ;;  %2983 = vst.msk [vmem:[%s6230_s4 + $0x528] sm:$0xff] %vm2817_vm4, %v2757_v42  ;;  %v1738_v48 = vmul.f32 %v5362_v44, %v987_v43  ;;  %v3402_v49 = vpop.f32.mrb[107].mxu0  ;;  %v2083_v50 = vadd.f32 %v5370_v57, %v1851_v39  ;;  %v1852_v51 = vmul.f32 %v5362_v44, %v1443_v45  ;;  %v3630_v53 = vpop.f32.mrb[107].mxu1 }
 0x1bc   :  { %v355_v39 = vpack.c.bf16 %v242_v28, %v242_v28 }
 0x1bd   :  { %vm2194_vm5 = vcmp.gt.f32.partialorder %v1969_v47, 0.0  ;;  %v2419_v54 = vmul.f32 0.01, %v1969_v47  ;;  %v1970_v56 = vadd.f32 %v5370_v57, %v1738_v48  ;;  %3508 = vmatmul.mubr.msk.bf16.gmra.mrb[212].mxu0 %vm395_vm3, %v296_v35  ;;  %vm2308_vm6 = vcmp.gt.f32.partialorder %v2083_v50, 0.0  ;;  %3736 = vmatmul.mubr.msk.bf16.gmra.mrb[212].mxu1 %vm395_vm3, %v353_v41 }
 0x1be   :  { %v2533_v59 = vmul.f32 0.01, %v2083_v50  ;;  %v2084_v60 = vadd.f32 %v5370_v57, %v1852_v51  ;;  %3511 = vmatprep.mubr.msk.bf16.mxu0 %vm3774_vm0, %v3773_v0  ;;  %3739 = vmatprep.mubr.msk.bf16.mxu1 %vm3774_vm0, %v3773_v0 }
 0x1bf   :  { %v2644_v63 = vsel %vm2194_vm5, %v1969_v47, %v2419_v54  ;;  %vm2195_vm7 = vcmp.gt.f32.partialorder %v1970_v56, 0.0  ;;  %v2420_v1 = vmul.f32 0.01, %v1970_v56 }
 0x1c0   :  { %2870 = vst.msk [vmem:[%s6230_s4 + $0x1a0] sm:$0xff] %vm2817_vm4, %v2644_v63  ;;  %v2758_v2 = vsel %vm2308_vm6, %v2083_v50, %v2533_v59  ;;  %v992_v3 = vpop.f32.mrb[108].mxu0  ;;  %vm2309_vm8 = vcmp.gt.f32.partialorder %v2084_v60, 0.0  ;;  %v2534_v4 = vmul.f32 0.01, %v2084_v60  ;;  %v1448_v6 = vpop.f32.mrb[108].mxu1 }
 0x1c1   :  { %v2645_v7 = vsel %vm2195_vm7, %v1970_v56, %v2420_v1  ;;  %2984 = vst.msk [vmem:[%s6230_s4 + $0x530] sm:$0xff] %vm2817_vm4, %v2758_v2  ;;  %v1739_v8 = vmul.f32 %v5362_v44, %v992_v3  ;;  %v3405_v9 = vpop.f32.mrb[109].mxu0  ;;  %v1853_v10 = vmul.f32 %v5362_v44, %v1448_v6  ;;  %v3633_v11 = vpop.f32.mrb[109].mxu1 }
 0x1c2   :  { %2871 = vst.msk [vmem:[%s6230_s4 + $0x1a8] sm:$0xff] %vm2817_vm4, %v2645_v7  ;;  %v2759_v13 = vsel %vm2309_vm8, %v2084_v60, %v2534_v4  ;;  %v995_v14 = vpop.f32.mrb[110].mxu0  ;;  %v1451_v15 = vpop.f32.mrb[110].mxu1  ;;  %v299_v4 = vpack.c.bf16 %v131_v55, %v130_v58 }
 0x1c3   :  { %v1971_v16 = vadd.f32 %v5370_v57, %v1739_v8  ;;  %2985 = vst.msk [vmem:[%s6230_s4 + $0x538] sm:$0xff] %vm2817_vm4, %v2759_v13  ;;  %v1740_v17 = vmul.f32 %v5362_v44, %v995_v14  ;;  %v3406_v18 = vpop.f32.mrb[111].mxu0  ;;  %v2085_v19 = vadd.f32 %v5370_v57, %v1853_v10  ;;  %v1854_v20 = vmul.f32 %v5362_v44, %v1451_v15  ;;  %v3634_v21 = vpop.f32.mrb[111].mxu1 }
 0x1c5   :  { %vm2196_vm9 = vcmp.gt.f32.partialorder %v1971_v16, 0.0  ;;  %v2421_v22 = vmul.f32 0.01, %v1971_v16  ;;  %v1972_v23 = vadd.f32 %v5370_v57, %v1740_v17  ;;  %3512 = vmatmul.mubr.msk.bf16.gmra.mrb[216].mxu0 %vm395_vm3, %v297_v5  ;;  %vm2310_vm10 = vcmp.gt.f32.partialorder %v2085_v19, 0.0  ;;  %3740 = vmatmul.mubr.msk.bf16.gmra.mrb[216].mxu1 %vm395_vm3, %v354_v12 }
 0x1c6   :  { %v2535_v26 = vmul.f32 0.01, %v2085_v19  ;;  %v2086_v27 = vadd.f32 %v5370_v57, %v1854_v20  ;;  %3515 = vmatprep.mubr.msk.bf16.mxu0 %vm3774_vm0, %v3773_v0  ;;  %3743 = vmatprep.mubr.msk.bf16.mxu1 %vm3774_vm0, %v3773_v0 }
 0x1c7   :  { %v2646_v29 = vsel %vm2196_vm9, %v1971_v16, %v2421_v22  ;;  %vm2197_vm11 = vcmp.gt.f32.partialorder %v1972_v23, 0.0  ;;  %v2422_v30 = vmul.f32 0.01, %v1972_v23 }
 0x1c8   :  { %2872 = vst.msk [vmem:[%s6230_s4 + $0x1b0] sm:$0xff] %vm2817_vm4, %v2646_v29  ;;  %v2760_v31 = vsel %vm2310_vm10, %v2085_v19, %v2535_v26  ;;  %v1000_v32 = vpop.f32.mrb[112].mxu0  ;;  %vm2311_vm12 = vcmp.gt.f32.partialorder %v2086_v27, 0.0  ;;  %v2536_v33 = vmul.f32 0.01, %v2086_v27  ;;  %v1456_v46 = vpop.f32.mrb[112].mxu1 }
 0x1c9   :  { %v2647_v35 = vsel %vm2197_vm11, %v1972_v23, %v2422_v30  ;;  %2986 = vst.msk [vmem:[%s6230_s4 + $0x540] sm:$0xff] %vm2817_vm4, %v2760_v31  ;;  %v1741_v36 = vmul.f32 %v5362_v44, %v1000_v32  ;;  %v3409_v37 = vpop.f32.mrb[113].mxu0  ;;  %v1855_v38 = vmul.f32 %v5362_v44, %v1456_v46  ;;  %v3637_v52 = vpop.f32.mrb[113].mxu1 }
 0x1ca   :  { %2873 = vst.msk [vmem:[%s6230_s4 + $0x1b8] sm:$0xff] %vm2817_vm4, %v2647_v35  ;;  %v2761_v40 = vsel %vm2311_vm12, %v2086_v27, %v2536_v33  ;;  %v1003_v41 = vpop.f32.mrb[114].mxu0  ;;  %v1459_v42 = vpop.f32.mrb[114].mxu1 }
 0x1cb   :  { %v1973_v43 = vadd.f32 %v5370_v57, %v1741_v36  ;;  %2987 = vst.msk [vmem:[%s6230_s4 + $0x548] sm:$0xff] %vm2817_vm4, %v2761_v40  ;;  %v1742_v45 = vmul.f32 %v5362_v44, %v1003_v41  ;;  %v3410_v47 = vpop.f32.mrb[115].mxu0  ;;  %v2087_v48 = vadd.f32 %v5370_v57, %v1855_v38  ;;  %v1856_v49 = vmul.f32 %v5362_v44, %v1459_v42  ;;  %v3638_v50 = vpop.f32.mrb[115].mxu1 }
 0x1cd   :  { %vm2198_vm13 = vcmp.gt.f32.partialorder %v1973_v43, 0.0  ;;  %v2423_v51 = vmul.f32 0.01, %v1973_v43  ;;  %v1974_v53 = vadd.f32 %v5370_v57, %v1742_v45  ;;  %3516 = vmatmul.mubr.msk.bf16.gmra.mrb[220].mxu0 %vm395_vm3, %v298_v34  ;;  %vm2312_vm14 = vcmp.gt.f32.partialorder %v2087_v48, 0.0  ;;  %3744 = vmatmul.mubr.msk.bf16.gmra.mrb[220].mxu1 %vm395_vm3, %v355_v39 }
 0x1ce   :  { %v2537_v54 = vmul.f32 0.01, %v2087_v48  ;;  %v2088_v56 = vadd.f32 %v5370_v57, %v1856_v49  ;;  %3519 = vmatprep.mubr.msk.bf16.mxu0 %vm3774_vm0, %v3773_v0 }
 0x1cf   :  { %v2648_v59 = vsel %vm2198_vm13, %v1973_v43, %v2423_v51  ;;  %vm2199_vm15 = vcmp.gt.f32.partialorder %v1974_v53, 0.0  ;;  %v2424_v60 = vmul.f32 0.01, %v1974_v53 }
 0x1d0   :  { %2874 = vst.msk [vmem:[%s6230_s4 + $0x1c0] sm:$0xff] %vm2817_vm4, %v2648_v59  ;;  %v2762_v61 = vsel %vm2312_vm14, %v2087_v48, %v2537_v54  ;;  %v1008_v62 = vpop.f32.mrb[116].mxu0  ;;  %vm2313_vm1 = vcmp.gt.f32.partialorder %v2088_v56, 0.0  ;;  %v2538_v0 = vmul.f32 0.01, %v2088_v56  ;;  %v1464_v63 = vpop.f32.mrb[116].mxu1 }
 0x1d1   :  { %v2649_v1 = vsel %vm2199_vm15, %v1974_v53, %v2424_v60  ;;  %2988 = vst.msk [vmem:[%s6230_s4 + $0x550] sm:$0xff] %vm2817_vm4, %v2762_v61  ;;  %v1743_v2 = vmul.f32 %v5362_v44, %v1008_v62  ;;  %v3413_v3 = vpop.f32.mrb[117].mxu0  ;;  %v1857_v5 = vmul.f32 %v5362_v44, %v1464_v63  ;;  %v3641_v6 = vpop.f32.mrb[117].mxu1 }
 0x1d2   :  { %2875 = vst.msk [vmem:[%s6230_s4 + $0x1c8] sm:$0xff] %vm2817_vm4, %v2649_v1  ;;  %v2763_v7 = vsel %vm2313_vm1, %v2088_v56, %v2538_v0  ;;  %v1011_v8 = vpop.f32.mrb[118].mxu0  ;;  %v1467_v9 = vpop.f32.mrb[118].mxu1 }
 0x1d3   :  { %v1975_v10 = vadd.f32 %v5370_v57, %v1743_v2  ;;  %2989 = vst.msk [vmem:[%s6230_s4 + $0x558] sm:$0xff] %vm2817_vm4, %v2763_v7  ;;  %v1744_v11 = vmul.f32 %v5362_v44, %v1011_v8  ;;  %v3414_v12 = vpop.f32.mrb[119].mxu0  ;;  %v2089_v13 = vadd.f32 %v5370_v57, %v1857_v5  ;;  %v1858_v14 = vmul.f32 %v5362_v44, %v1467_v9  ;;  %v3642_v15 = vpop.f32.mrb[119].mxu1 }
 0x1d5   :  { %vm2200_vm0 = vcmp.gt.f32.partialorder %v1975_v10, 0.0  ;;  %v2425_v16 = vmul.f32 0.01, %v1975_v10  ;;  %v1976_v17 = vadd.f32 %v5370_v57, %v1744_v11  ;;  %3520 = vmatmul.mubr.msk.bf16.gmra.mrb[224].mxu0 %vm395_vm3, %v299_v4  ;;  %vm2314_vm2 = vcmp.gt.f32.partialorder %v2089_v13, 0.0 }
 0x1d6   :  { %v2539_v18 = vmul.f32 0.01, %v2089_v13  ;;  %v2090_v19 = vadd.f32 %v5370_v57, %v1858_v14 }
 0x1d7   :  { %v2650_v20 = vsel %vm2200_vm0, %v1975_v10, %v2425_v16  ;;  %vm2201_vm5 = vcmp.gt.f32.partialorder %v1976_v17, 0.0  ;;  %v2426_v21 = vmul.f32 0.01, %v1976_v17 }
 0x1d8   :  { %2876 = vst.msk [vmem:[%s6230_s4 + $0x1d0] sm:$0xff] %vm2817_vm4, %v2650_v20  ;;  %v2764_v22 = vsel %vm2314_vm2, %v2089_v13, %v2539_v18  ;;  %v1016_v23 = vpop.f32.mrb[120].mxu0  ;;  %vm2315_vm6 = vcmp.gt.f32.partialorder %v2090_v19, 0.0  ;;  %v2540_v24 = vmul.f32 0.01, %v2090_v19  ;;  %v1472_v25 = vpop.f32.mrb[120].mxu1 }
 0x1d9   :  { %v2651_v26 = vsel %vm2201_vm5, %v1976_v17, %v2426_v21  ;;  %2990 = vst.msk [vmem:[%s6230_s4 + $0x560] sm:$0xff] %vm2817_vm4, %v2764_v22  ;;  %v1745_v27 = vmul.f32 %v5362_v44, %v1016_v23  ;;  %v3417_v28 = vpop.f32.mrb[121].mxu0  ;;  %v1859_v29 = vmul.f32 %v5362_v44, %v1472_v25  ;;  %v3645_v30 = vpop.f32.mrb[121].mxu1 }
 0x1da   :  { %2877 = vst.msk [vmem:[%s6230_s4 + $0x1d8] sm:$0xff] %vm2817_vm4, %v2651_v26  ;;  %v2765_v31 = vsel %vm2315_vm6, %v2090_v19, %v2540_v24  ;;  %v1019_v32 = vpop.f32.mrb[122].mxu0  ;;  %v1475_v33 = vpop.f32.mrb[122].mxu1 }
 0x1db   :  { %v1977_v34 = vadd.f32 %v5370_v57, %v1745_v27  ;;  %2991 = vst.msk [vmem:[%s6230_s4 + $0x568] sm:$0xff] %vm2817_vm4, %v2765_v31  ;;  %v1746_v46 = vmul.f32 %v5362_v44, %v1019_v32  ;;  %v3418_v35 = vpop.f32.mrb[123].mxu0  ;;  %v2091_v36 = vadd.f32 %v5370_v57, %v1859_v29  ;;  %v1860_v37 = vmul.f32 %v5362_v44, %v1475_v33  ;;  %v3646_v38 = vpop.f32.mrb[123].mxu1 }
 0x1dd   :  { %vm2202_vm3 = vcmp.gt.f32.partialorder %v1977_v34, 0.0  ;;  %v2427_v52 = vmul.f32 0.01, %v1977_v34  ;;  %v1978_v39 = vadd.f32 %v5370_v57, %v1746_v46  ;;  %vm2316_vm7 = vcmp.gt.f32.partialorder %v2091_v36, 0.0 }
 0x1de   :  { %v2541_v40 = vmul.f32 0.01, %v2091_v36  ;;  %v2092_v41 = vadd.f32 %v5370_v57, %v1860_v37 }
 0x1df   :  { %v2652_v42 = vsel %vm2202_vm3, %v1977_v34, %v2427_v52  ;;  %vm2203_vm8 = vcmp.gt.f32.partialorder %v1978_v39, 0.0  ;;  %v2428_v43 = vmul.f32 0.01, %v1978_v39 }
 0x1e0   :  { %2878 = vst.msk [vmem:[%s6230_s4 + $0x1e0] sm:$0xff] %vm2817_vm4, %v2652_v42  ;;  %v2766_v45 = vsel %vm2316_vm7, %v2091_v36, %v2541_v40  ;;  %v1024_v47 = vpop.f32.mrb[124].mxu0  ;;  %vm2317_vm9 = vcmp.gt.f32.partialorder %v2092_v41, 0.0  ;;  %v2542_v48 = vmul.f32 0.01, %v2092_v41  ;;  %v1480_v49 = vpop.f32.mrb[124].mxu1 }
 0x1e1   :  { %v2653_v50 = vsel %vm2203_vm8, %v1978_v39, %v2428_v43  ;;  %2992 = vst.msk [vmem:[%s6230_s4 + $0x570] sm:$0xff] %vm2817_vm4, %v2766_v45  ;;  %v1747_v51 = vmul.f32 %v5362_v44, %v1024_v47  ;;  %v3421_v53 = vpop.f32.mrb[125].mxu0  ;;  %v1861_v54 = vmul.f32 %v5362_v44, %v1480_v49  ;;  %v3649_v56 = vpop.f32.mrb[125].mxu1 }
 0x1e2   :  { %2879 = vst.msk [vmem:[%s6230_s4 + $0x1e8] sm:$0xff] %vm2817_vm4, %v2653_v50  ;;  %v2767_v58 = vsel %vm2317_vm9, %v2092_v41, %v2542_v48  ;;  %v1027_v55 = vpop.f32.mrb[126].mxu0  ;;  %v1483_v59 = vpop.f32.mrb[126].mxu1 }
 0x1e3   :  { %v1979_v60 = vadd.f32 %v5370_v57, %v1747_v51  ;;  %2993 = vst.msk [vmem:[%s6230_s4 + $0x578] sm:$0xff] %vm2817_vm4, %v2767_v58  ;;  %v1748_v61 = vmul.f32 %v5362_v44, %v1027_v55  ;;  %v3422_v62 = vpop.f32.mrb[127].mxu0  ;;  %v2093_v0 = vadd.f32 %v5370_v57, %v1861_v54  ;;  %v1862_v63 = vmul.f32 %v5362_v44, %v1483_v59  ;;  %v3650_v1 = vpop.f32.mrb[127].mxu1 }
 0x1e5   :  { %vm2204_vm10 = vcmp.gt.f32.partialorder %v1979_v60, 0.0  ;;  %v2429_v2 = vmul.f32 0.01, %v1979_v60  ;;  %v1980_v3 = vadd.f32 %v5370_v57, %v1748_v61  ;;  %vm2318_vm11 = vcmp.gt.f32.partialorder %v2093_v0, 0.0 }
 0x1e6   :  { %v2543_v4 = vmul.f32 0.01, %v2093_v0  ;;  %v2094_v5 = vadd.f32 %v5370_v57, %v1862_v63 }
 0x1e7   :  { %v2654_v6 = vsel %vm2204_vm10, %v1979_v60, %v2429_v2  ;;  %vm2205_vm12 = vcmp.gt.f32.partialorder %v1980_v3, 0.0  ;;  %v2430_v7 = vmul.f32 0.01, %v1980_v3 }
 0x1e8   :  { %2880 = vst.msk [vmem:[%s6230_s4 + $0x1f0] sm:$0xff] %vm2817_vm4, %v2654_v6  ;;  %v2768_v8 = vsel %vm2318_vm11, %v2093_v0, %v2543_v4  ;;  %v1032_v9 = vpop.f32.mrb[128].mxu0  ;;  %vm2319_vm13 = vcmp.gt.f32.partialorder %v2094_v5, 0.0  ;;  %v2544_v10 = vmul.f32 0.01, %v2094_v5  ;;  %v1488_v11 = vpop.f32.mrb[128].mxu1 }
 0x1e9   :  { %v2655_v12 = vsel %vm2205_vm12, %v1980_v3, %v2430_v7  ;;  %2994 = vst.msk [vmem:[%s6230_s4 + $0x580] sm:$0xff] %vm2817_vm4, %v2768_v8  ;;  %v1749_v13 = vmul.f32 %v5362_v44, %v1032_v9  ;;  %v3425_v14 = vpop.f32.mrb[129].mxu0  ;;  %v1863_v15 = vmul.f32 %v5362_v44, %v1488_v11  ;;  %v3653_v16 = vpop.f32.mrb[129].mxu1 }
 0x1ea   :  { %2881 = vst.msk [vmem:[%s6230_s4 + $0x1f8] sm:$0xff] %vm2817_vm4, %v2655_v12  ;;  %v2769_v17 = vsel %vm2319_vm13, %v2094_v5, %v2544_v10  ;;  %v1035_v18 = vpop.f32.mrb[130].mxu0  ;;  %v1491_v19 = vpop.f32.mrb[130].mxu1 }
 0x1eb   :  { %v1981_v20 = vadd.f32 %v5370_v57, %v1749_v13  ;;  %2995 = vst.msk [vmem:[%s6230_s4 + $0x588] sm:$0xff] %vm2817_vm4, %v2769_v17  ;;  %v1750_v21 = vmul.f32 %v5362_v44, %v1035_v18  ;;  %v3426_v22 = vpop.f32.mrb[131].mxu0  ;;  %v2095_v23 = vadd.f32 %v5370_v57, %v1863_v15  ;;  %v1864_v24 = vmul.f32 %v5362_v44, %v1491_v19  ;;  %v3654_v25 = vpop.f32.mrb[131].mxu1 }
 0x1ed   :  { %vm2206_vm14 = vcmp.gt.f32.partialorder %v1981_v20, 0.0  ;;  %v2431_v26 = vmul.f32 0.01, %v1981_v20  ;;  %v1982_v27 = vadd.f32 %v5370_v57, %v1750_v21  ;;  %vm2320_vm15 = vcmp.gt.f32.partialorder %v2095_v23, 0.0 }
 0x1ee   :  { %v2545_v28 = vmul.f32 0.01, %v2095_v23  ;;  %v2096_v29 = vadd.f32 %v5370_v57, %v1864_v24 }
 0x1ef   :  { %v2656_v30 = vsel %vm2206_vm14, %v1981_v20, %v2431_v26  ;;  %vm2207_vm1 = vcmp.gt.f32.partialorder %v1982_v27, 0.0  ;;  %v2432_v31 = vmul.f32 0.01, %v1982_v27 }
 0x1f0   :  { %2882 = vst.msk [vmem:[%s6230_s4 + $0x200] sm:$0xff] %vm2817_vm4, %v2656_v30  ;;  %v2770_v32 = vsel %vm2320_vm15, %v2095_v23, %v2545_v28  ;;  %v1040_v33 = vpop.f32.mrb[132].mxu0  ;;  %vm2321_vm0 = vcmp.gt.f32.partialorder %v2096_v29, 0.0  ;;  %v2546_v34 = vmul.f32 0.01, %v2096_v29  ;;  %v1496_v46 = vpop.f32.mrb[132].mxu1 }
 0x1f1   :  { %v2657_v35 = vsel %vm2207_vm1, %v1982_v27, %v2432_v31  ;;  %2996 = vst.msk [vmem:[%s6230_s4 + $0x590] sm:$0xff] %vm2817_vm4, %v2770_v32  ;;  %v1751_v36 = vmul.f32 %v5362_v44, %v1040_v33  ;;  %v3429_v37 = vpop.f32.mrb[133].mxu0  ;;  %v1865_v38 = vmul.f32 %v5362_v44, %v1496_v46  ;;  %v3657_v52 = vpop.f32.mrb[133].mxu1 }
 0x1f2   :  { %2883 = vst.msk [vmem:[%s6230_s4 + $0x208] sm:$0xff] %vm2817_vm4, %v2657_v35  ;;  %v2771_v39 = vsel %vm2321_vm0, %v2096_v29, %v2546_v34  ;;  %v1043_v40 = vpop.f32.mrb[134].mxu0  ;;  %v1499_v41 = vpop.f32.mrb[134].mxu1 }
 0x1f3   :  { %v1983_v42 = vadd.f32 %v5370_v57, %v1751_v36  ;;  %2997 = vst.msk [vmem:[%s6230_s4 + $0x598] sm:$0xff] %vm2817_vm4, %v2771_v39  ;;  %v1752_v43 = vmul.f32 %v5362_v44, %v1043_v40  ;;  %v3430_v45 = vpop.f32.mrb[135].mxu0  ;;  %v2097_v47 = vadd.f32 %v5370_v57, %v1865_v38  ;;  %v1866_v48 = vmul.f32 %v5362_v44, %v1499_v41  ;;  %v3658_v49 = vpop.f32.mrb[135].mxu1 }
 0x1f5   :  { %vm2208_vm2 = vcmp.gt.f32.partialorder %v1983_v42, 0.0  ;;  %v2433_v50 = vmul.f32 0.01, %v1983_v42  ;;  %v1984_v51 = vadd.f32 %v5370_v57, %v1752_v43  ;;  %vm2322_vm5 = vcmp.gt.f32.partialorder %v2097_v47, 0.0 }
 0x1f6   :  { %v2547_v53 = vmul.f32 0.01, %v2097_v47  ;;  %v2098_v54 = vadd.f32 %v5370_v57, %v1866_v48 }
 0x1f7   :  { %v2658_v56 = vsel %vm2208_vm2, %v1983_v42, %v2433_v50  ;;  %vm2209_vm6 = vcmp.gt.f32.partialorder %v1984_v51, 0.0  ;;  %v2434_v58 = vmul.f32 0.01, %v1984_v51 }
 0x1f8   :  { %2884 = vst.msk [vmem:[%s6230_s4 + $0x210] sm:$0xff] %vm2817_vm4, %v2658_v56  ;;  %v2772_v55 = vsel %vm2322_vm5, %v2097_v47, %v2547_v53  ;;  %v1048_v59 = vpop.f32.mrb[136].mxu0  ;;  %vm2323_vm3 = vcmp.gt.f32.partialorder %v2098_v54, 0.0  ;;  %v2548_v60 = vmul.f32 0.01, %v2098_v54  ;;  %v1504_v61 = vpop.f32.mrb[136].mxu1 }
 0x1f9   :  { %v2659_v62 = vsel %vm2209_vm6, %v1984_v51, %v2434_v58  ;;  %2998 = vst.msk [vmem:[%s6230_s4 + $0x5a0] sm:$0xff] %vm2817_vm4, %v2772_v55  ;;  %v1753_v0 = vmul.f32 %v5362_v44, %v1048_v59  ;;  %v3433_v63 = vpop.f32.mrb[137].mxu0  ;;  %v1867_v1 = vmul.f32 %v5362_v44, %v1504_v61  ;;  %v3661_v2 = vpop.f32.mrb[137].mxu1 }
 0x1fa   :  { %2885 = vst.msk [vmem:[%s6230_s4 + $0x218] sm:$0xff] %vm2817_vm4, %v2659_v62  ;;  %v2773_v3 = vsel %vm2323_vm3, %v2098_v54, %v2548_v60  ;;  %v1051_v4 = vpop.f32.mrb[138].mxu0  ;;  %v1507_v5 = vpop.f32.mrb[138].mxu1 }
 0x1fb   :  { %v1985_v6 = vadd.f32 %v5370_v57, %v1753_v0  ;;  %2999 = vst.msk [vmem:[%s6230_s4 + $0x5a8] sm:$0xff] %vm2817_vm4, %v2773_v3  ;;  %v1754_v7 = vmul.f32 %v5362_v44, %v1051_v4  ;;  %v3434_v8 = vpop.f32.mrb[139].mxu0  ;;  %v2099_v9 = vadd.f32 %v5370_v57, %v1867_v1  ;;  %v1868_v10 = vmul.f32 %v5362_v44, %v1507_v5  ;;  %v3662_v11 = vpop.f32.mrb[139].mxu1 }
 0x1fd   :  { %vm2210_vm7 = vcmp.gt.f32.partialorder %v1985_v6, 0.0  ;;  %v2435_v12 = vmul.f32 0.01, %v1985_v6  ;;  %v1986_v13 = vadd.f32 %v5370_v57, %v1754_v7  ;;  %vm2324_vm8 = vcmp.gt.f32.partialorder %v2099_v9, 0.0 }
 0x1fe   :  { %v2549_v14 = vmul.f32 0.01, %v2099_v9  ;;  %v2100_v15 = vadd.f32 %v5370_v57, %v1868_v10 }
 0x1ff   :  { %v2660_v16 = vsel %vm2210_vm7, %v1985_v6, %v2435_v12  ;;  %vm2211_vm9 = vcmp.gt.f32.partialorder %v1986_v13, 0.0  ;;  %v2436_v17 = vmul.f32 0.01, %v1986_v13 }
 0x200   :  { %2886 = vst.msk [vmem:[%s6230_s4 + $0x220] sm:$0xff] %vm2817_vm4, %v2660_v16  ;;  %v2774_v18 = vsel %vm2324_vm8, %v2099_v9, %v2549_v14  ;;  %v1056_v19 = vpop.f32.mrb[140].mxu0  ;;  %vm2325_vm10 = vcmp.gt.f32.partialorder %v2100_v15, 0.0  ;;  %v2550_v20 = vmul.f32 0.01, %v2100_v15  ;;  %v1512_v21 = vpop.f32.mrb[140].mxu1 }
 0x201   :  { %v2661_v22 = vsel %vm2211_vm9, %v1986_v13, %v2436_v17  ;;  %3000 = vst.msk [vmem:[%s6230_s4 + $0x5b0] sm:$0xff] %vm2817_vm4, %v2774_v18  ;;  %v1755_v23 = vmul.f32 %v5362_v44, %v1056_v19  ;;  %v3437_v24 = vpop.f32.mrb[141].mxu0  ;;  %v1869_v25 = vmul.f32 %v5362_v44, %v1512_v21  ;;  %v3665_v26 = vpop.f32.mrb[141].mxu1 }
 0x202   :  { %2887 = vst.msk [vmem:[%s6230_s4 + $0x228] sm:$0xff] %vm2817_vm4, %v2661_v22  ;;  %v2775_v27 = vsel %vm2325_vm10, %v2100_v15, %v2550_v20  ;;  %v1059_v28 = vpop.f32.mrb[142].mxu0  ;;  %v1515_v29 = vpop.f32.mrb[142].mxu1 }
 0x203   :  { %v1987_v30 = vadd.f32 %v5370_v57, %v1755_v23  ;;  %3001 = vst.msk [vmem:[%s6230_s4 + $0x5b8] sm:$0xff] %vm2817_vm4, %v2775_v27  ;;  %v1756_v31 = vmul.f32 %v5362_v44, %v1059_v28  ;;  %v3438_v32 = vpop.f32.mrb[143].mxu0  ;;  %v2101_v33 = vadd.f32 %v5370_v57, %v1869_v25  ;;  %v1870_v34 = vmul.f32 %v5362_v44, %v1515_v29  ;;  %v3666_v46 = vpop.f32.mrb[143].mxu1 }
 0x205   :  { %vm2212_vm11 = vcmp.gt.f32.partialorder %v1987_v30, 0.0  ;;  %v2437_v35 = vmul.f32 0.01, %v1987_v30  ;;  %v1988_v36 = vadd.f32 %v5370_v57, %v1756_v31  ;;  %vm2326_vm12 = vcmp.gt.f32.partialorder %v2101_v33, 0.0 }
 0x206   :  { %v2551_v37 = vmul.f32 0.01, %v2101_v33  ;;  %v2102_v38 = vadd.f32 %v5370_v57, %v1870_v34 }
 0x207   :  { %v2662_v52 = vsel %vm2212_vm11, %v1987_v30, %v2437_v35  ;;  %vm2213_vm13 = vcmp.gt.f32.partialorder %v1988_v36, 0.0  ;;  %v2438_v39 = vmul.f32 0.01, %v1988_v36 }
 0x208   :  { %2888 = vst.msk [vmem:[%s6230_s4 + $0x230] sm:$0xff] %vm2817_vm4, %v2662_v52  ;;  %v2776_v40 = vsel %vm2326_vm12, %v2101_v33, %v2551_v37  ;;  %v1064_v41 = vpop.f32.mrb[144].mxu0  ;;  %vm2327_vm14 = vcmp.gt.f32.partialorder %v2102_v38, 0.0  ;;  %v2552_v42 = vmul.f32 0.01, %v2102_v38  ;;  %v1520_v43 = vpop.f32.mrb[144].mxu1 }
 0x209   :  { %v2663_v45 = vsel %vm2213_vm13, %v1988_v36, %v2438_v39  ;;  %3002 = vst.msk [vmem:[%s6230_s4 + $0x5c0] sm:$0xff] %vm2817_vm4, %v2776_v40  ;;  %v1757_v47 = vmul.f32 %v5362_v44, %v1064_v41  ;;  %v3441_v48 = vpop.f32.mrb[145].mxu0  ;;  %v1871_v49 = vmul.f32 %v5362_v44, %v1520_v43  ;;  %v3669_v50 = vpop.f32.mrb[145].mxu1 }
 0x20a   :  { %2889 = vst.msk [vmem:[%s6230_s4 + $0x238] sm:$0xff] %vm2817_vm4, %v2663_v45  ;;  %v2777_v51 = vsel %vm2327_vm14, %v2102_v38, %v2552_v42  ;;  %v1067_v53 = vpop.f32.mrb[146].mxu0  ;;  %v1523_v54 = vpop.f32.mrb[146].mxu1 }
 0x20b   :  { %v1989_v56 = vadd.f32 %v5370_v57, %v1757_v47  ;;  %3003 = vst.msk [vmem:[%s6230_s4 + $0x5c8] sm:$0xff] %vm2817_vm4, %v2777_v51  ;;  %v1758_v58 = vmul.f32 %v5362_v44, %v1067_v53  ;;  %v3442_v55 = vpop.f32.mrb[147].mxu0  ;;  %v2103_v59 = vadd.f32 %v5370_v57, %v1871_v49  ;;  %v1872_v60 = vmul.f32 %v5362_v44, %v1523_v54  ;;  %v3670_v61 = vpop.f32.mrb[147].mxu1 }
 0x20d   :  { %vm2214_vm15 = vcmp.gt.f32.partialorder %v1989_v56, 0.0  ;;  %v2439_v62 = vmul.f32 0.01, %v1989_v56  ;;  %v1990_v0 = vadd.f32 %v5370_v57, %v1758_v58  ;;  %vm2328_vm1 = vcmp.gt.f32.partialorder %v2103_v59, 0.0 }
 0x20e   :  { %v2553_v63 = vmul.f32 0.01, %v2103_v59  ;;  %v2104_v1 = vadd.f32 %v5370_v57, %v1872_v60 }
 0x20f   :  { %v2664_v2 = vsel %vm2214_vm15, %v1989_v56, %v2439_v62  ;;  %vm2215_vm0 = vcmp.gt.f32.partialorder %v1990_v0, 0.0  ;;  %v2440_v3 = vmul.f32 0.01, %v1990_v0 }
 0x210   :  { %2890 = vst.msk [vmem:[%s6230_s4 + $0x240] sm:$0xff] %vm2817_vm4, %v2664_v2  ;;  %v2778_v4 = vsel %vm2328_vm1, %v2103_v59, %v2553_v63  ;;  %v1072_v5 = vpop.f32.mrb[148].mxu0  ;;  %vm2329_vm2 = vcmp.gt.f32.partialorder %v2104_v1, 0.0  ;;  %v2554_v6 = vmul.f32 0.01, %v2104_v1  ;;  %v1528_v7 = vpop.f32.mrb[148].mxu1 }
 0x211   :  { %v2665_v8 = vsel %vm2215_vm0, %v1990_v0, %v2440_v3  ;;  %3004 = vst.msk [vmem:[%s6230_s4 + $0x5d0] sm:$0xff] %vm2817_vm4, %v2778_v4  ;;  %v1759_v9 = vmul.f32 %v5362_v44, %v1072_v5  ;;  %v3445_v10 = vpop.f32.mrb[149].mxu0  ;;  %v1873_v11 = vmul.f32 %v5362_v44, %v1528_v7  ;;  %v3673_v12 = vpop.f32.mrb[149].mxu1 }
 0x212   :  { %2891 = vst.msk [vmem:[%s6230_s4 + $0x248] sm:$0xff] %vm2817_vm4, %v2665_v8  ;;  %v2779_v13 = vsel %vm2329_vm2, %v2104_v1, %v2554_v6  ;;  %v1075_v14 = vpop.f32.mrb[150].mxu0  ;;  %v1531_v15 = vpop.f32.mrb[150].mxu1  ;;  %v5812_v1 = vld [vmem:[%s6229_s3] ss:$0 sm:$0xff] }
 0x213   :  { %v1991_v16 = vadd.f32 %v5370_v57, %v1759_v9  ;;  %3005 = vst.msk [vmem:[%s6230_s4 + $0x5d8] sm:$0xff] %vm2817_vm4, %v2779_v13  ;;  %v1760_v17 = vmul.f32 %v5362_v44, %v1075_v14  ;;  %v3446_v18 = vpop.f32.mrb[151].mxu0  ;;  %v2105_v19 = vadd.f32 %v5370_v57, %v1873_v11  ;;  %v1874_v20 = vmul.f32 %v5362_v44, %v1531_v15  ;;  %v3674_v21 = vpop.f32.mrb[151].mxu1 }
 0x215   :  { %vm2216_vm5 = vcmp.gt.f32.partialorder %v1991_v16, 0.0  ;;  %v2441_v22 = vmul.f32 0.01, %v1991_v16  ;;  %v1992_v23 = vadd.f32 %v5370_v57, %v1760_v17  ;;  %vm2330_vm6 = vcmp.gt.f32.partialorder %v2105_v19, 0.0 }
 0x216   :  { %v2555_v24 = vmul.f32 0.01, %v2105_v19  ;;  %v2106_v25 = vadd.f32 %v5370_v57, %v1874_v20 }
 0x217   :  { %v2666_v26 = vsel %vm2216_vm5, %v1991_v16, %v2441_v22  ;;  %vm2217_vm3 = vcmp.gt.f32.partialorder %v1992_v23, 0.0  ;;  %v2442_v27 = vmul.f32 0.01, %v1992_v23 }
 0x218   :  { %2892 = vst.msk [vmem:[%s6230_s4 + $0x250] sm:$0xff] %vm2817_vm4, %v2666_v26  ;;  %v2780_v28 = vsel %vm2330_vm6, %v2105_v19, %v2555_v24  ;;  %v1080_v29 = vpop.f32.mrb[152].mxu0  ;;  %vm2331_vm7 = vcmp.gt.f32.partialorder %v2106_v25, 0.0  ;;  %v2556_v30 = vmul.f32 0.01, %v2106_v25  ;;  %v1536_v31 = vpop.f32.mrb[152].mxu1 }
 0x219   :  { %v2667_v32 = vsel %vm2217_vm3, %v1992_v23, %v2442_v27  ;;  %3006 = vst.msk [vmem:[%s6230_s4 + $0x5e0] sm:$0xff] %vm2817_vm4, %v2780_v28  ;;  %v1761_v33 = vmul.f32 %v5362_v44, %v1080_v29  ;;  %v3449_v34 = vpop.f32.mrb[153].mxu0  ;;  %v1875_v46 = vmul.f32 %v5362_v44, %v1536_v31  ;;  %v3677_v35 = vpop.f32.mrb[153].mxu1 }
 0x21a   :  { %2893 = vst.msk [vmem:[%s6230_s4 + $0x258] sm:$0xff] %vm2817_vm4, %v2667_v32  ;;  %v2781_v36 = vsel %vm2331_vm7, %v2106_v25, %v2556_v30  ;;  %v1083_v37 = vpop.f32.mrb[154].mxu0  ;;  %v1539_v38 = vpop.f32.mrb[154].mxu1 }
 0x21b   :  { %v1993_v52 = vadd.f32 %v5370_v57, %v1761_v33  ;;  %3007 = vst.msk [vmem:[%s6230_s4 + $0x5e8] sm:$0xff] %vm2817_vm4, %v2781_v36  ;;  %v1762_v39 = vmul.f32 %v5362_v44, %v1083_v37  ;;  %v3450_v40 = vpop.f32.mrb[155].mxu0  ;;  %v2107_v41 = vadd.f32 %v5370_v57, %v1875_v46  ;;  %v1876_v42 = vmul.f32 %v5362_v44, %v1539_v38  ;;  %v3678_v43 = vpop.f32.mrb[155].mxu1 }
 0x21d   :  { %vm2218_vm8 = vcmp.gt.f32.partialorder %v1993_v52, 0.0  ;;  %v2443_v45 = vmul.f32 0.01, %v1993_v52  ;;  %v1994_v47 = vadd.f32 %v5370_v57, %v1762_v39  ;;  %vm2332_vm9 = vcmp.gt.f32.partialorder %v2107_v41, 0.0 }
 0x21e   :  { %v2557_v48 = vmul.f32 0.01, %v2107_v41  ;;  %v2108_v49 = vadd.f32 %v5370_v57, %v1876_v42  ;;  %v5801_v57 = vld [vmem:[%s6228_s2] ss:$0 sm:$0xff] }
 0x21f   :  { %v2668_v50 = vsel %vm2218_vm8, %v1993_v52, %v2443_v45  ;;  %vm2219_vm10 = vcmp.gt.f32.partialorder %v1994_v47, 0.0  ;;  %v2444_v51 = vmul.f32 0.01, %v1994_v47 }
 0x220   :  { %2894 = vst.msk [vmem:[%s6230_s4 + $0x260] sm:$0xff] %vm2817_vm4, %v2668_v50  ;;  %v2782_v53 = vsel %vm2332_vm9, %v2107_v41, %v2557_v48  ;;  %v1088_v54 = vpop.f32.mrb[156].mxu0  ;;  %vm2333_vm11 = vcmp.gt.f32.partialorder %v2108_v49, 0.0  ;;  %v2558_v44 = vmul.f32 0.01, %v2108_v49  ;;  %v1544_v56 = vpop.f32.mrb[156].mxu1 }
 0x221   :  { %v2669_v58 = vsel %vm2219_vm10, %v1994_v47, %v2444_v51  ;;  %3008 = vst.msk [vmem:[%s6230_s4 + $0x5f0] sm:$0xff] %vm2817_vm4, %v2782_v53  ;;  %v1763_v55 = vmul.f32 %v5801_v57, %v1088_v54  ;;  %v3453_v59 = vpop.f32.mrb[157].mxu0  ;;  %v1877_v60 = vmul.f32 %v5801_v57, %v1544_v56  ;;  %v3681_v61 = vpop.f32.mrb[157].mxu1 }
 0x222   :  { %2895 = vst.msk [vmem:[%s6230_s4 + $0x268] sm:$0xff] %vm2817_vm4, %v2669_v58  ;;  %v2783_v62 = vsel %vm2333_vm11, %v2108_v49, %v2558_v44  ;;  %v1091_v0 = vpop.f32.mrb[158].mxu0  ;;  %v1547_v63 = vpop.f32.mrb[158].mxu1 }
 0x223   :  { %v1995_v2 = vadd.f32 %v5812_v1, %v1763_v55  ;;  %3009 = vst.msk [vmem:[%s6230_s4 + $0x5f8] sm:$0xff] %vm2817_vm4, %v2783_v62  ;;  %v1764_v3 = vmul.f32 %v5801_v57, %v1091_v0  ;;  %v3454_v4 = vpop.f32.mrb[159].mxu0  ;;  %v2109_v5 = vadd.f32 %v5812_v1, %v1877_v60  ;;  %v1878_v6 = vmul.f32 %v5801_v57, %v1547_v63  ;;  %v3682_v7 = vpop.f32.mrb[159].mxu1 }
 0x225   :  { %vm2220_vm12 = vcmp.gt.f32.partialorder %v1995_v2, 0.0  ;;  %v2445_v8 = vmul.f32 0.01, %v1995_v2  ;;  %v1996_v9 = vadd.f32 %v5812_v1, %v1764_v3  ;;  %vm2334_vm13 = vcmp.gt.f32.partialorder %v2109_v5, 0.0 }
 0x226   :  { %v2559_v10 = vmul.f32 0.01, %v2109_v5  ;;  %v2110_v11 = vadd.f32 %v5812_v1, %v1878_v6 }
 0x227   :  { %v2670_v12 = vsel %vm2220_vm12, %v1995_v2, %v2445_v8  ;;  %vm2221_vm14 = vcmp.gt.f32.partialorder %v1996_v9, 0.0  ;;  %v2446_v13 = vmul.f32 0.01, %v1996_v9 }
 0x228   :  { %2896 = vst.msk [vmem:[%s6230_s4 + $0x270] sm:$0xff] %vm2817_vm4, %v2670_v12  ;;  %v2784_v14 = vsel %vm2334_vm13, %v2109_v5, %v2559_v10  ;;  %v1096_v15 = vpop.f32.mrb[160].mxu0  ;;  %vm2335_vm15 = vcmp.gt.f32.partialorder %v2110_v11, 0.0  ;;  %v2560_v16 = vmul.f32 0.01, %v2110_v11  ;;  %v1552_v17 = vpop.f32.mrb[160].mxu1 }
 0x229   :  { %v2671_v18 = vsel %vm2221_vm14, %v1996_v9, %v2446_v13  ;;  %3010 = vst.msk [vmem:[%s6230_s4 + $0x600] sm:$0xff] %vm2817_vm4, %v2784_v14  ;;  %v1765_v19 = vmul.f32 %v5801_v57, %v1096_v15  ;;  %v3457_v20 = vpop.f32.mrb[161].mxu0  ;;  %v1879_v21 = vmul.f32 %v5801_v57, %v1552_v17  ;;  %v3685_v22 = vpop.f32.mrb[161].mxu1 }
 0x22a   :  { %2897 = vst.msk [vmem:[%s6230_s4 + $0x278] sm:$0xff] %vm2817_vm4, %v2671_v18  ;;  %v2785_v23 = vsel %vm2335_vm15, %v2110_v11, %v2560_v16  ;;  %v1099_v24 = vpop.f32.mrb[162].mxu0  ;;  %v1555_v25 = vpop.f32.mrb[162].mxu1 }
 0x22b   :  { %v1997_v26 = vadd.f32 %v5812_v1, %v1765_v19  ;;  %3011 = vst.msk [vmem:[%s6230_s4 + $0x608] sm:$0xff] %vm2817_vm4, %v2785_v23  ;;  %v1766_v27 = vmul.f32 %v5801_v57, %v1099_v24  ;;  %v3458_v28 = vpop.f32.mrb[163].mxu0  ;;  %v2111_v29 = vadd.f32 %v5812_v1, %v1879_v21  ;;  %v1880_v30 = vmul.f32 %v5801_v57, %v1555_v25  ;;  %v3686_v31 = vpop.f32.mrb[163].mxu1 }
 0x22d   :  { %vm2222_vm1 = vcmp.gt.f32.partialorder %v1997_v26, 0.0  ;;  %v2447_v32 = vmul.f32 0.01, %v1997_v26  ;;  %v1998_v33 = vadd.f32 %v5812_v1, %v1766_v27  ;;  %vm2336_vm0 = vcmp.gt.f32.partialorder %v2111_v29, 0.0 }
 0x22e   :  { %v2561_v34 = vmul.f32 0.01, %v2111_v29  ;;  %v2112_v46 = vadd.f32 %v5812_v1, %v1880_v30 }
 0x22f   :  { %v2672_v35 = vsel %vm2222_vm1, %v1997_v26, %v2447_v32  ;;  %vm2223_vm2 = vcmp.gt.f32.partialorder %v1998_v33, 0.0  ;;  %v2448_v36 = vmul.f32 0.01, %v1998_v33 }
 0x230   :  { %2898 = vst.msk [vmem:[%s6230_s4 + $0x280] sm:$0xff] %vm2817_vm4, %v2672_v35  ;;  %v2786_v37 = vsel %vm2336_vm0, %v2111_v29, %v2561_v34  ;;  %v1104_v38 = vpop.f32.mrb[164].mxu0  ;;  %vm2337_vm5 = vcmp.gt.f32.partialorder %v2112_v46, 0.0  ;;  %v2562_v52 = vmul.f32 0.01, %v2112_v46  ;;  %v1560_v39 = vpop.f32.mrb[164].mxu1 }
 0x231   :  { %v2673_v40 = vsel %vm2223_vm2, %v1998_v33, %v2448_v36  ;;  %3012 = vst.msk [vmem:[%s6230_s4 + $0x610] sm:$0xff] %vm2817_vm4, %v2786_v37  ;;  %v1767_v41 = vmul.f32 %v5801_v57, %v1104_v38  ;;  %v3461_v42 = vpop.f32.mrb[165].mxu0  ;;  %v1881_v43 = vmul.f32 %v5801_v57, %v1560_v39  ;;  %v3689_v45 = vpop.f32.mrb[165].mxu1 }
 0x232   :  { %2899 = vst.msk [vmem:[%s6230_s4 + $0x288] sm:$0xff] %vm2817_vm4, %v2673_v40  ;;  %v2787_v47 = vsel %vm2337_vm5, %v2112_v46, %v2562_v52  ;;  %v1107_v48 = vpop.f32.mrb[166].mxu0  ;;  %v1563_v49 = vpop.f32.mrb[166].mxu1 }
 0x233   :  { %v1999_v50 = vadd.f32 %v5812_v1, %v1767_v41  ;;  %3013 = vst.msk [vmem:[%s6230_s4 + $0x618] sm:$0xff] %vm2817_vm4, %v2787_v47  ;;  %v1768_v51 = vmul.f32 %v5801_v57, %v1107_v48  ;;  %v3462_v53 = vpop.f32.mrb[167].mxu0  ;;  %v2113_v54 = vadd.f32 %v5812_v1, %v1881_v43  ;;  %v1882_v44 = vmul.f32 %v5801_v57, %v1563_v49  ;;  %v3690_v56 = vpop.f32.mrb[167].mxu1 }
 0x235   :  { %vm2224_vm6 = vcmp.gt.f32.partialorder %v1999_v50, 0.0  ;;  %v2449_v58 = vmul.f32 0.01, %v1999_v50  ;;  %v2000_v55 = vadd.f32 %v5812_v1, %v1768_v51  ;;  %vm2338_vm3 = vcmp.gt.f32.partialorder %v2113_v54, 0.0 }
 0x236   :  { %v2563_v59 = vmul.f32 0.01, %v2113_v54  ;;  %v2114_v60 = vadd.f32 %v5812_v1, %v1882_v44 }
 0x237   :  { %v2674_v61 = vsel %vm2224_vm6, %v1999_v50, %v2449_v58  ;;  %vm2225_vm7 = vcmp.gt.f32.partialorder %v2000_v55, 0.0  ;;  %v2450_v62 = vmul.f32 0.01, %v2000_v55 }
 0x238   :  { %2900 = vst.msk [vmem:[%s6230_s4 + $0x290] sm:$0xff] %vm2817_vm4, %v2674_v61  ;;  %v2788_v0 = vsel %vm2338_vm3, %v2113_v54, %v2563_v59  ;;  %v1112_v63 = vpop.f32.mrb[168].mxu0  ;;  %vm2339_vm8 = vcmp.gt.f32.partialorder %v2114_v60, 0.0  ;;  %v2564_v2 = vmul.f32 0.01, %v2114_v60  ;;  %v1568_v3 = vpop.f32.mrb[168].mxu1 }
 0x239   :  { %v2675_v4 = vsel %vm2225_vm7, %v2000_v55, %v2450_v62  ;;  %3014 = vst.msk [vmem:[%s6230_s4 + $0x620] sm:$0xff] %vm2817_vm4, %v2788_v0  ;;  %v1769_v5 = vmul.f32 %v5801_v57, %v1112_v63  ;;  %v3465_v6 = vpop.f32.mrb[169].mxu0  ;;  %v1883_v7 = vmul.f32 %v5801_v57, %v1568_v3  ;;  %v3693_v8 = vpop.f32.mrb[169].mxu1 }
 0x23a   :  { %2901 = vst.msk [vmem:[%s6230_s4 + $0x298] sm:$0xff] %vm2817_vm4, %v2675_v4  ;;  %v2789_v9 = vsel %vm2339_vm8, %v2114_v60, %v2564_v2  ;;  %v1115_v10 = vpop.f32.mrb[170].mxu0  ;;  %v1571_v11 = vpop.f32.mrb[170].mxu1 }
 0x23b   :  { %v2001_v12 = vadd.f32 %v5812_v1, %v1769_v5  ;;  %3015 = vst.msk [vmem:[%s6230_s4 + $0x628] sm:$0xff] %vm2817_vm4, %v2789_v9  ;;  %v1770_v13 = vmul.f32 %v5801_v57, %v1115_v10  ;;  %v3466_v14 = vpop.f32.mrb[171].mxu0  ;;  %v2115_v15 = vadd.f32 %v5812_v1, %v1883_v7  ;;  %v1884_v16 = vmul.f32 %v5801_v57, %v1571_v11  ;;  %v3694_v17 = vpop.f32.mrb[171].mxu1 }
 0x23d   :  { %vm2226_vm9 = vcmp.gt.f32.partialorder %v2001_v12, 0.0  ;;  %v2451_v18 = vmul.f32 0.01, %v2001_v12  ;;  %v2002_v19 = vadd.f32 %v5812_v1, %v1770_v13  ;;  %vm2340_vm10 = vcmp.gt.f32.partialorder %v2115_v15, 0.0 }
 0x23e   :  { %v2565_v20 = vmul.f32 0.01, %v2115_v15  ;;  %v2116_v21 = vadd.f32 %v5812_v1, %v1884_v16 }
 0x23f   :  { %v2676_v22 = vsel %vm2226_vm9, %v2001_v12, %v2451_v18  ;;  %vm2227_vm11 = vcmp.gt.f32.partialorder %v2002_v19, 0.0  ;;  %v2452_v23 = vmul.f32 0.01, %v2002_v19 }
 0x240   :  { %2902 = vst.msk [vmem:[%s6230_s4 + $0x2a0] sm:$0xff] %vm2817_vm4, %v2676_v22  ;;  %v2790_v24 = vsel %vm2340_vm10, %v2115_v15, %v2565_v20  ;;  %v1120_v25 = vpop.f32.mrb[172].mxu0  ;;  %vm2341_vm12 = vcmp.gt.f32.partialorder %v2116_v21, 0.0  ;;  %v2566_v26 = vmul.f32 0.01, %v2116_v21  ;;  %v1576_v27 = vpop.f32.mrb[172].mxu1 }
 0x241   :  { %v2677_v28 = vsel %vm2227_vm11, %v2002_v19, %v2452_v23  ;;  %3016 = vst.msk [vmem:[%s6230_s4 + $0x630] sm:$0xff] %vm2817_vm4, %v2790_v24  ;;  %v1771_v29 = vmul.f32 %v5801_v57, %v1120_v25  ;;  %v3469_v30 = vpop.f32.mrb[173].mxu0  ;;  %v1885_v31 = vmul.f32 %v5801_v57, %v1576_v27  ;;  %v3697_v32 = vpop.f32.mrb[173].mxu1 }
 0x242   :  { %2903 = vst.msk [vmem:[%s6230_s4 + $0x2a8] sm:$0xff] %vm2817_vm4, %v2677_v28  ;;  %v2791_v33 = vsel %vm2341_vm12, %v2116_v21, %v2566_v26  ;;  %v1123_v34 = vpop.f32.mrb[174].mxu0  ;;  %v1579_v46 = vpop.f32.mrb[174].mxu1 }
 0x243   :  { %v2003_v35 = vadd.f32 %v5812_v1, %v1771_v29  ;;  %3017 = vst.msk [vmem:[%s6230_s4 + $0x638] sm:$0xff] %vm2817_vm4, %v2791_v33  ;;  %v1772_v36 = vmul.f32 %v5801_v57, %v1123_v34  ;;  %v3470_v37 = vpop.f32.mrb[175].mxu0  ;;  %v2117_v38 = vadd.f32 %v5812_v1, %v1885_v31  ;;  %v1886_v52 = vmul.f32 %v5801_v57, %v1579_v46  ;;  %v3698_v39 = vpop.f32.mrb[175].mxu1 }
 0x245   :  { %vm2228_vm13 = vcmp.gt.f32.partialorder %v2003_v35, 0.0  ;;  %v2453_v40 = vmul.f32 0.01, %v2003_v35  ;;  %v2004_v41 = vadd.f32 %v5812_v1, %v1772_v36  ;;  %vm2342_vm14 = vcmp.gt.f32.partialorder %v2117_v38, 0.0 }
 0x246   :  { %v2567_v42 = vmul.f32 0.01, %v2117_v38  ;;  %v2118_v43 = vadd.f32 %v5812_v1, %v1886_v52 }
 0x247   :  { %v2678_v45 = vsel %vm2228_vm13, %v2003_v35, %v2453_v40  ;;  %vm2229_vm15 = vcmp.gt.f32.partialorder %v2004_v41, 0.0  ;;  %v2454_v47 = vmul.f32 0.01, %v2004_v41 }
 0x248   :  { %2904 = vst.msk [vmem:[%s6230_s4 + $0x2b0] sm:$0xff] %vm2817_vm4, %v2678_v45  ;;  %v2792_v48 = vsel %vm2342_vm14, %v2117_v38, %v2567_v42  ;;  %v1128_v49 = vpop.f32.mrb[176].mxu0  ;;  %vm2343_vm1 = vcmp.gt.f32.partialorder %v2118_v43, 0.0  ;;  %v2568_v50 = vmul.f32 0.01, %v2118_v43  ;;  %v1584_v51 = vpop.f32.mrb[176].mxu1 }
 0x249   :  { %v2679_v53 = vsel %vm2229_vm15, %v2004_v41, %v2454_v47  ;;  %3018 = vst.msk [vmem:[%s6230_s4 + $0x640] sm:$0xff] %vm2817_vm4, %v2792_v48  ;;  %v1773_v54 = vmul.f32 %v5801_v57, %v1128_v49  ;;  %v3473_v44 = vpop.f32.mrb[177].mxu0  ;;  %v1887_v56 = vmul.f32 %v5801_v57, %v1584_v51  ;;  %v3701_v58 = vpop.f32.mrb[177].mxu1 }
 0x24a   :  { %2905 = vst.msk [vmem:[%s6230_s4 + $0x2b8] sm:$0xff] %vm2817_vm4, %v2679_v53  ;;  %v2793_v55 = vsel %vm2343_vm1, %v2118_v43, %v2568_v50  ;;  %v1131_v59 = vpop.f32.mrb[178].mxu0  ;;  %v1587_v60 = vpop.f32.mrb[178].mxu1 }
 0x24b   :  { %v2005_v61 = vadd.f32 %v5812_v1, %v1773_v54  ;;  %3019 = vst.msk [vmem:[%s6230_s4 + $0x648] sm:$0xff] %vm2817_vm4, %v2793_v55  ;;  %v1774_v62 = vmul.f32 %v5801_v57, %v1131_v59  ;;  %v3474_v0 = vpop.f32.mrb[179].mxu0  ;;  %v2119_v63 = vadd.f32 %v5812_v1, %v1887_v56  ;;  %v1888_v2 = vmul.f32 %v5801_v57, %v1587_v60  ;;  %v3702_v3 = vpop.f32.mrb[179].mxu1 }
 0x24d   :  { %vm2230_vm0 = vcmp.gt.f32.partialorder %v2005_v61, 0.0  ;;  %v2455_v4 = vmul.f32 0.01, %v2005_v61  ;;  %v2006_v5 = vadd.f32 %v5812_v1, %v1774_v62  ;;  %vm2344_vm2 = vcmp.gt.f32.partialorder %v2119_v63, 0.0 }
 0x24e   :  { %v2569_v6 = vmul.f32 0.01, %v2119_v63  ;;  %v2120_v7 = vadd.f32 %v5812_v1, %v1888_v2 }
 0x24f   :  { %v2680_v8 = vsel %vm2230_vm0, %v2005_v61, %v2455_v4  ;;  %vm2231_vm5 = vcmp.gt.f32.partialorder %v2006_v5, 0.0  ;;  %v2456_v9 = vmul.f32 0.01, %v2006_v5 }
 0x250   :  { %2906 = vst.msk [vmem:[%s6230_s4 + $0x2c0] sm:$0xff] %vm2817_vm4, %v2680_v8  ;;  %v2794_v10 = vsel %vm2344_vm2, %v2119_v63, %v2569_v6  ;;  %v1136_v11 = vpop.f32.mrb[180].mxu0  ;;  %vm2345_vm6 = vcmp.gt.f32.partialorder %v2120_v7, 0.0  ;;  %v2570_v12 = vmul.f32 0.01, %v2120_v7  ;;  %v1592_v13 = vpop.f32.mrb[180].mxu1 }
 0x251   :  { %v2681_v14 = vsel %vm2231_vm5, %v2006_v5, %v2456_v9  ;;  %3020 = vst.msk [vmem:[%s6230_s4 + $0x650] sm:$0xff] %vm2817_vm4, %v2794_v10  ;;  %v1775_v15 = vmul.f32 %v5801_v57, %v1136_v11  ;;  %v3477_v16 = vpop.f32.mrb[181].mxu0  ;;  %v1889_v17 = vmul.f32 %v5801_v57, %v1592_v13  ;;  %v3705_v18 = vpop.f32.mrb[181].mxu1 }
 0x252   :  { %2907 = vst.msk [vmem:[%s6230_s4 + $0x2c8] sm:$0xff] %vm2817_vm4, %v2681_v14  ;;  %v2795_v19 = vsel %vm2345_vm6, %v2120_v7, %v2570_v12  ;;  %v1139_v20 = vpop.f32.mrb[182].mxu0  ;;  %v1595_v21 = vpop.f32.mrb[182].mxu1 }
 0x253   :  { %v2007_v22 = vadd.f32 %v5812_v1, %v1775_v15  ;;  %3021 = vst.msk [vmem:[%s6230_s4 + $0x658] sm:$0xff] %vm2817_vm4, %v2795_v19  ;;  %v1776_v23 = vmul.f32 %v5801_v57, %v1139_v20  ;;  %v3478_v24 = vpop.f32.mrb[183].mxu0  ;;  %v2121_v25 = vadd.f32 %v5812_v1, %v1889_v17  ;;  %v1890_v26 = vmul.f32 %v5801_v57, %v1595_v21  ;;  %v3706_v27 = vpop.f32.mrb[183].mxu1 }
 0x255   :  { %vm2232_vm3 = vcmp.gt.f32.partialorder %v2007_v22, 0.0  ;;  %v2457_v28 = vmul.f32 0.01, %v2007_v22  ;;  %v2008_v29 = vadd.f32 %v5812_v1, %v1776_v23  ;;  %vm2346_vm7 = vcmp.gt.f32.partialorder %v2121_v25, 0.0 }
 0x256   :  { %v2571_v30 = vmul.f32 0.01, %v2121_v25  ;;  %v2122_v31 = vadd.f32 %v5812_v1, %v1890_v26 }
 0x257   :  { %v2682_v32 = vsel %vm2232_vm3, %v2007_v22, %v2457_v28  ;;  %vm2233_vm8 = vcmp.gt.f32.partialorder %v2008_v29, 0.0  ;;  %v2458_v33 = vmul.f32 0.01, %v2008_v29 }
 0x258   :  { %2908 = vst.msk [vmem:[%s6230_s4 + $0x2d0] sm:$0xff] %vm2817_vm4, %v2682_v32  ;;  %v2796_v34 = vsel %vm2346_vm7, %v2121_v25, %v2571_v30  ;;  %v1144_v46 = vpop.f32.mrb[184].mxu0  ;;  %vm2347_vm9 = vcmp.gt.f32.partialorder %v2122_v31, 0.0  ;;  %v2572_v35 = vmul.f32 0.01, %v2122_v31  ;;  %v1600_v36 = vpop.f32.mrb[184].mxu1 }
 0x259   :  { %v2683_v37 = vsel %vm2233_vm8, %v2008_v29, %v2458_v33  ;;  %3022 = vst.msk [vmem:[%s6230_s4 + $0x660] sm:$0xff] %vm2817_vm4, %v2796_v34  ;;  %v1777_v38 = vmul.f32 %v5801_v57, %v1144_v46  ;;  %v3481_v52 = vpop.f32.mrb[185].mxu0  ;;  %v1891_v39 = vmul.f32 %v5801_v57, %v1600_v36  ;;  %v3709_v40 = vpop.f32.mrb[185].mxu1 }
 0x25a   :  { %2909 = vst.msk [vmem:[%s6230_s4 + $0x2d8] sm:$0xff] %vm2817_vm4, %v2683_v37  ;;  %v2797_v41 = vsel %vm2347_vm9, %v2122_v31, %v2572_v35  ;;  %v1147_v42 = vpop.f32.mrb[186].mxu0  ;;  %v1603_v43 = vpop.f32.mrb[186].mxu1 }
 0x25b   :  { %v2009_v45 = vadd.f32 %v5812_v1, %v1777_v38  ;;  %3023 = vst.msk [vmem:[%s6230_s4 + $0x668] sm:$0xff] %vm2817_vm4, %v2797_v41  ;;  %v1778_v47 = vmul.f32 %v5801_v57, %v1147_v42  ;;  %v3482_v48 = vpop.f32.mrb[187].mxu0  ;;  %v2123_v49 = vadd.f32 %v5812_v1, %v1891_v39  ;;  %v1892_v50 = vmul.f32 %v5801_v57, %v1603_v43  ;;  %v3710_v51 = vpop.f32.mrb[187].mxu1 }
 0x25d   :  { %vm2234_vm10 = vcmp.gt.f32.partialorder %v2009_v45, 0.0  ;;  %v2459_v53 = vmul.f32 0.01, %v2009_v45  ;;  %v2010_v54 = vadd.f32 %v5812_v1, %v1778_v47  ;;  %vm2348_vm11 = vcmp.gt.f32.partialorder %v2123_v49, 0.0 }
 0x25e   :  { %v2573_v44 = vmul.f32 0.01, %v2123_v49  ;;  %v2124_v56 = vadd.f32 %v5812_v1, %v1892_v50 }
 0x25f   :  { %v2684_v58 = vsel %vm2234_vm10, %v2009_v45, %v2459_v53  ;;  %vm2235_vm12 = vcmp.gt.f32.partialorder %v2010_v54, 0.0  ;;  %v2460_v55 = vmul.f32 0.01, %v2010_v54 }
 0x260   :  { %2910 = vst.msk [vmem:[%s6230_s4 + $0x2e0] sm:$0xff] %vm2817_vm4, %v2684_v58  ;;  %v2798_v59 = vsel %vm2348_vm11, %v2123_v49, %v2573_v44  ;;  %v1152_v60 = vpop.f32.mrb[188].mxu0  ;;  %vm2349_vm13 = vcmp.gt.f32.partialorder %v2124_v56, 0.0  ;;  %v2574_v61 = vmul.f32 0.01, %v2124_v56  ;;  %v1608_v62 = vpop.f32.mrb[188].mxu1 }
 0x261   :  { %v2685_v0 = vsel %vm2235_vm12, %v2010_v54, %v2460_v55  ;;  %3024 = vst.msk [vmem:[%s6230_s4 + $0x670] sm:$0xff] %vm2817_vm4, %v2798_v59  ;;  %v1779_v63 = vmul.f32 %v5801_v57, %v1152_v60  ;;  %v3485_v2 = vpop.f32.mrb[189].mxu0  ;;  %v1893_v3 = vmul.f32 %v5801_v57, %v1608_v62  ;;  %v3713_v4 = vpop.f32.mrb[189].mxu1 }
 0x262   :  { %2911 = vst.msk [vmem:[%s6230_s4 + $0x2e8] sm:$0xff] %vm2817_vm4, %v2685_v0  ;;  %v2799_v5 = vsel %vm2349_vm13, %v2124_v56, %v2574_v61  ;;  %v1155_v6 = vpop.f32.mrb[190].mxu0  ;;  %v1611_v7 = vpop.f32.mrb[190].mxu1 }
 0x263   :  { %v2011_v8 = vadd.f32 %v5812_v1, %v1779_v63  ;;  %3025 = vst.msk [vmem:[%s6230_s4 + $0x678] sm:$0xff] %vm2817_vm4, %v2799_v5  ;;  %v1780_v9 = vmul.f32 %v5801_v57, %v1155_v6  ;;  %v3486_v10 = vpop.f32.mrb[191].mxu0  ;;  %v2125_v11 = vadd.f32 %v5812_v1, %v1893_v3  ;;  %v1894_v12 = vmul.f32 %v5801_v57, %v1611_v7  ;;  %v3714_v13 = vpop.f32.mrb[191].mxu1 }
 0x265   :  { %vm2236_vm14 = vcmp.gt.f32.partialorder %v2011_v8, 0.0  ;;  %v2461_v14 = vmul.f32 0.01, %v2011_v8  ;;  %v2012_v15 = vadd.f32 %v5812_v1, %v1780_v9  ;;  %vm2350_vm15 = vcmp.gt.f32.partialorder %v2125_v11, 0.0 }
 0x266   :  { %v2575_v16 = vmul.f32 0.01, %v2125_v11  ;;  %v2126_v17 = vadd.f32 %v5812_v1, %v1894_v12 }
 0x267   :  { %v2686_v18 = vsel %vm2236_vm14, %v2011_v8, %v2461_v14  ;;  %vm2237_vm1 = vcmp.gt.f32.partialorder %v2012_v15, 0.0  ;;  %v2462_v19 = vmul.f32 0.01, %v2012_v15 }
 0x268   :  { %2912 = vst.msk [vmem:[%s6230_s4 + $0x2f0] sm:$0xff] %vm2817_vm4, %v2686_v18  ;;  %v2800_v20 = vsel %vm2350_vm15, %v2125_v11, %v2575_v16  ;;  %v1160_v21 = vpop.f32.mrb[192].mxu0  ;;  %vm2351_vm0 = vcmp.gt.f32.partialorder %v2126_v17, 0.0  ;;  %v2576_v22 = vmul.f32 0.01, %v2126_v17  ;;  %v1616_v23 = vpop.f32.mrb[192].mxu1 }
 0x269   :  { %v2687_v24 = vsel %vm2237_vm1, %v2012_v15, %v2462_v19  ;;  %3026 = vst.msk [vmem:[%s6230_s4 + $0x680] sm:$0xff] %vm2817_vm4, %v2800_v20  ;;  %v1781_v25 = vmul.f32 %v5801_v57, %v1160_v21  ;;  %v3489_v26 = vpop.f32.mrb[193].mxu0  ;;  %v1895_v27 = vmul.f32 %v5801_v57, %v1616_v23  ;;  %v3717_v28 = vpop.f32.mrb[193].mxu1 }
 0x26a   :  { %2913 = vst.msk [vmem:[%s6230_s4 + $0x2f8] sm:$0xff] %vm2817_vm4, %v2687_v24  ;;  %v2801_v29 = vsel %vm2351_vm0, %v2126_v17, %v2576_v22  ;;  %v1163_v30 = vpop.f32.mrb[194].mxu0  ;;  %v1619_v31 = vpop.f32.mrb[194].mxu1 }
 0x26b   :  { %v2013_v32 = vadd.f32 %v5812_v1, %v1781_v25  ;;  %3027 = vst.msk [vmem:[%s6230_s4 + $0x688] sm:$0xff] %vm2817_vm4, %v2801_v29  ;;  %v1782_v33 = vmul.f32 %v5801_v57, %v1163_v30  ;;  %v3490_v34 = vpop.f32.mrb[195].mxu0  ;;  %v2127_v46 = vadd.f32 %v5812_v1, %v1895_v27  ;;  %v1896_v35 = vmul.f32 %v5801_v57, %v1619_v31  ;;  %v3718_v36 = vpop.f32.mrb[195].mxu1 }
 0x26d   :  { %vm2238_vm2 = vcmp.gt.f32.partialorder %v2013_v32, 0.0  ;;  %v2463_v37 = vmul.f32 0.01, %v2013_v32  ;;  %v2014_v38 = vadd.f32 %v5812_v1, %v1782_v33  ;;  %vm2352_vm5 = vcmp.gt.f32.partialorder %v2127_v46, 0.0 }
 0x26e   :  { %v2577_v52 = vmul.f32 0.01, %v2127_v46  ;;  %v2128_v39 = vadd.f32 %v5812_v1, %v1896_v35 }
 0x26f   :  { %v2688_v40 = vsel %vm2238_vm2, %v2013_v32, %v2463_v37  ;;  %vm2239_vm6 = vcmp.gt.f32.partialorder %v2014_v38, 0.0  ;;  %v2464_v41 = vmul.f32 0.01, %v2014_v38 }
 0x270   :  { %2914 = vst.msk [vmem:[%s6230_s4 + $0x300] sm:$0xff] %vm2817_vm4, %v2688_v40  ;;  %v2802_v42 = vsel %vm2352_vm5, %v2127_v46, %v2577_v52  ;;  %v1168_v43 = vpop.f32.mrb[196].mxu0  ;;  %vm2353_vm3 = vcmp.gt.f32.partialorder %v2128_v39, 0.0  ;;  %v2578_v45 = vmul.f32 0.01, %v2128_v39  ;;  %v1624_v47 = vpop.f32.mrb[196].mxu1 }
 0x271   :  { %v2689_v48 = vsel %vm2239_vm6, %v2014_v38, %v2464_v41  ;;  %3028 = vst.msk [vmem:[%s6230_s4 + $0x690] sm:$0xff] %vm2817_vm4, %v2802_v42  ;;  %v1783_v49 = vmul.f32 %v5801_v57, %v1168_v43  ;;  %v3493_v50 = vpop.f32.mrb[197].mxu0  ;;  %v1897_v51 = vmul.f32 %v5801_v57, %v1624_v47  ;;  %v3721_v53 = vpop.f32.mrb[197].mxu1 }
 0x272   :  { %2915 = vst.msk [vmem:[%s6230_s4 + $0x308] sm:$0xff] %vm2817_vm4, %v2689_v48  ;;  %v2803_v54 = vsel %vm2353_vm3, %v2128_v39, %v2578_v45  ;;  %v1171_v44 = vpop.f32.mrb[198].mxu0  ;;  %v1627_v56 = vpop.f32.mrb[198].mxu1 }
 0x273   :  { %v2015_v58 = vadd.f32 %v5812_v1, %v1783_v49  ;;  %3029 = vst.msk [vmem:[%s6230_s4 + $0x698] sm:$0xff] %vm2817_vm4, %v2803_v54  ;;  %v1784_v55 = vmul.f32 %v5801_v57, %v1171_v44  ;;  %v3494_v59 = vpop.f32.mrb[199].mxu0  ;;  %v2129_v60 = vadd.f32 %v5812_v1, %v1897_v51  ;;  %v1898_v61 = vmul.f32 %v5801_v57, %v1627_v56  ;;  %v3722_v62 = vpop.f32.mrb[199].mxu1 }
 0x275   :  { %vm2240_vm7 = vcmp.gt.f32.partialorder %v2015_v58, 0.0  ;;  %v2465_v0 = vmul.f32 0.01, %v2015_v58  ;;  %v2016_v63 = vadd.f32 %v5812_v1, %v1784_v55  ;;  %vm2354_vm8 = vcmp.gt.f32.partialorder %v2129_v60, 0.0 }
 0x276   :  { %v2579_v2 = vmul.f32 0.01, %v2129_v60  ;;  %v2130_v3 = vadd.f32 %v5812_v1, %v1898_v61 }
 0x277   :  { %v2690_v4 = vsel %vm2240_vm7, %v2015_v58, %v2465_v0  ;;  %vm2241_vm9 = vcmp.gt.f32.partialorder %v2016_v63, 0.0  ;;  %v2466_v5 = vmul.f32 0.01, %v2016_v63 }
 0x278   :  { %2916 = vst.msk [vmem:[%s6230_s4 + $0x310] sm:$0xff] %vm2817_vm4, %v2690_v4  ;;  %v2804_v6 = vsel %vm2354_vm8, %v2129_v60, %v2579_v2  ;;  %v1176_v7 = vpop.f32.mrb[200].mxu0  ;;  %vm2355_vm10 = vcmp.gt.f32.partialorder %v2130_v3, 0.0  ;;  %v2580_v8 = vmul.f32 0.01, %v2130_v3  ;;  %v1632_v9 = vpop.f32.mrb[200].mxu1 }
 0x279   :  { %v2691_v10 = vsel %vm2241_vm9, %v2016_v63, %v2466_v5  ;;  %3030 = vst.msk [vmem:[%s6230_s4 + $0x6a0] sm:$0xff] %vm2817_vm4, %v2804_v6  ;;  %v1785_v11 = vmul.f32 %v5801_v57, %v1176_v7  ;;  %v3497_v12 = vpop.f32.mrb[201].mxu0  ;;  %v1899_v13 = vmul.f32 %v5801_v57, %v1632_v9  ;;  %v3725_v14 = vpop.f32.mrb[201].mxu1 }
 0x27a   :  { %2917 = vst.msk [vmem:[%s6230_s4 + $0x318] sm:$0xff] %vm2817_vm4, %v2691_v10  ;;  %v2805_v15 = vsel %vm2355_vm10, %v2130_v3, %v2580_v8  ;;  %v1179_v16 = vpop.f32.mrb[202].mxu0  ;;  %v1635_v17 = vpop.f32.mrb[202].mxu1 }
 0x27b   :  { %v2017_v18 = vadd.f32 %v5812_v1, %v1785_v11  ;;  %3031 = vst.msk [vmem:[%s6230_s4 + $0x6a8] sm:$0xff] %vm2817_vm4, %v2805_v15  ;;  %v1786_v19 = vmul.f32 %v5801_v57, %v1179_v16  ;;  %v3498_v20 = vpop.f32.mrb[203].mxu0  ;;  %v2131_v21 = vadd.f32 %v5812_v1, %v1899_v13  ;;  %v1900_v22 = vmul.f32 %v5801_v57, %v1635_v17  ;;  %v3726_v23 = vpop.f32.mrb[203].mxu1 }
 0x27d   :  { %vm2242_vm11 = vcmp.gt.f32.partialorder %v2017_v18, 0.0  ;;  %v2467_v24 = vmul.f32 0.01, %v2017_v18  ;;  %v2018_v25 = vadd.f32 %v5812_v1, %v1786_v19  ;;  %vm2356_vm12 = vcmp.gt.f32.partialorder %v2131_v21, 0.0 }
 0x27e   :  { %v2581_v26 = vmul.f32 0.01, %v2131_v21  ;;  %v2132_v27 = vadd.f32 %v5812_v1, %v1900_v22 }
 0x27f   :  { %v2692_v28 = vsel %vm2242_vm11, %v2017_v18, %v2467_v24  ;;  %vm2243_vm13 = vcmp.gt.f32.partialorder %v2018_v25, 0.0  ;;  %v2468_v29 = vmul.f32 0.01, %v2018_v25 }
 0x280   :  { %2918 = vst.msk [vmem:[%s6230_s4 + $0x320] sm:$0xff] %vm2817_vm4, %v2692_v28  ;;  %v2806_v30 = vsel %vm2356_vm12, %v2131_v21, %v2581_v26  ;;  %v1184_v31 = vpop.f32.mrb[204].mxu0  ;;  %vm2357_vm14 = vcmp.gt.f32.partialorder %v2132_v27, 0.0  ;;  %v2582_v32 = vmul.f32 0.01, %v2132_v27  ;;  %v1640_v33 = vpop.f32.mrb[204].mxu1 }
 0x281   :  { %v2693_v34 = vsel %vm2243_vm13, %v2018_v25, %v2468_v29  ;;  %3032 = vst.msk [vmem:[%s6230_s4 + $0x6b0] sm:$0xff] %vm2817_vm4, %v2806_v30  ;;  %v1787_v46 = vmul.f32 %v5801_v57, %v1184_v31  ;;  %v3501_v35 = vpop.f32.mrb[205].mxu0  ;;  %v1901_v36 = vmul.f32 %v5801_v57, %v1640_v33  ;;  %v3729_v37 = vpop.f32.mrb[205].mxu1 }
 0x282   :  { %2919 = vst.msk [vmem:[%s6230_s4 + $0x328] sm:$0xff] %vm2817_vm4, %v2693_v34  ;;  %v2807_v38 = vsel %vm2357_vm14, %v2132_v27, %v2582_v32  ;;  %v1187_v52 = vpop.f32.mrb[206].mxu0  ;;  %v1643_v39 = vpop.f32.mrb[206].mxu1 }
 0x283   :  { %v2019_v40 = vadd.f32 %v5812_v1, %v1787_v46  ;;  %3033 = vst.msk [vmem:[%s6230_s4 + $0x6b8] sm:$0xff] %vm2817_vm4, %v2807_v38  ;;  %v1788_v41 = vmul.f32 %v5801_v57, %v1187_v52  ;;  %v3502_v42 = vpop.f32.mrb[207].mxu0  ;;  %v2133_v43 = vadd.f32 %v5812_v1, %v1901_v36  ;;  %v1902_v45 = vmul.f32 %v5801_v57, %v1643_v39  ;;  %v3730_v47 = vpop.f32.mrb[207].mxu1 }
 0x285   :  { %vm2244_vm15 = vcmp.gt.f32.partialorder %v2019_v40, 0.0  ;;  %v2469_v48 = vmul.f32 0.01, %v2019_v40  ;;  %v2020_v49 = vadd.f32 %v5812_v1, %v1788_v41  ;;  %vm2358_vm1 = vcmp.gt.f32.partialorder %v2133_v43, 0.0 }
 0x286   :  { %v2583_v50 = vmul.f32 0.01, %v2133_v43  ;;  %v2134_v51 = vadd.f32 %v5812_v1, %v1902_v45 }
 0x287   :  { %v2694_v53 = vsel %vm2244_vm15, %v2019_v40, %v2469_v48  ;;  %vm2245_vm0 = vcmp.gt.f32.partialorder %v2020_v49, 0.0  ;;  %v2470_v54 = vmul.f32 0.01, %v2020_v49 }
 0x288   :  { %2920 = vst.msk [vmem:[%s6230_s4 + $0x330] sm:$0xff] %vm2817_vm4, %v2694_v53  ;;  %v2808_v44 = vsel %vm2358_vm1, %v2133_v43, %v2583_v50  ;;  %v1192_v56 = vpop.f32.mrb[208].mxu0  ;;  %vm2359_vm2 = vcmp.gt.f32.partialorder %v2134_v51, 0.0  ;;  %v2584_v58 = vmul.f32 0.01, %v2134_v51  ;;  %v1648_v55 = vpop.f32.mrb[208].mxu1 }
 0x289   :  { %v2695_v59 = vsel %vm2245_vm0, %v2020_v49, %v2470_v54  ;;  %3034 = vst.msk [vmem:[%s6230_s4 + $0x6c0] sm:$0xff] %vm2817_vm4, %v2808_v44  ;;  %v1789_v60 = vmul.f32 %v5801_v57, %v1192_v56  ;;  %v3505_v61 = vpop.f32.mrb[209].mxu0  ;;  %v1903_v62 = vmul.f32 %v5801_v57, %v1648_v55  ;;  %v3733_v0 = vpop.f32.mrb[209].mxu1 }
 0x28a   :  { %2921 = vst.msk [vmem:[%s6230_s4 + $0x338] sm:$0xff] %vm2817_vm4, %v2695_v59  ;;  %v2809_v63 = vsel %vm2359_vm2, %v2134_v51, %v2584_v58  ;;  %v1195_v2 = vpop.f32.mrb[210].mxu0  ;;  %v1651_v3 = vpop.f32.mrb[210].mxu1 }
 0x28b   :  { %v2021_v4 = vadd.f32 %v5812_v1, %v1789_v60  ;;  %3035 = vst.msk [vmem:[%s6230_s4 + $0x6c8] sm:$0xff] %vm2817_vm4, %v2809_v63  ;;  %v1790_v5 = vmul.f32 %v5801_v57, %v1195_v2  ;;  %v3506_v6 = vpop.f32.mrb[211].mxu0  ;;  %v2135_v7 = vadd.f32 %v5812_v1, %v1903_v62  ;;  %v1904_v8 = vmul.f32 %v5801_v57, %v1651_v3  ;;  %v3734_v9 = vpop.f32.mrb[211].mxu1 }
 0x28d   :  { %vm2246_vm5 = vcmp.gt.f32.partialorder %v2021_v4, 0.0  ;;  %v2471_v10 = vmul.f32 0.01, %v2021_v4  ;;  %v2022_v11 = vadd.f32 %v5812_v1, %v1790_v5  ;;  %vm2360_vm6 = vcmp.gt.f32.partialorder %v2135_v7, 0.0 }
 0x28e   :  { %v2585_v12 = vmul.f32 0.01, %v2135_v7  ;;  %v2136_v13 = vadd.f32 %v5812_v1, %v1904_v8 }
 0x28f   :  { %v2696_v14 = vsel %vm2246_vm5, %v2021_v4, %v2471_v10  ;;  %vm2247_vm3 = vcmp.gt.f32.partialorder %v2022_v11, 0.0  ;;  %v2472_v15 = vmul.f32 0.01, %v2022_v11 }
 0x290   :  { %2922 = vst.msk [vmem:[%s6230_s4 + $0x340] sm:$0xff] %vm2817_vm4, %v2696_v14  ;;  %v2810_v16 = vsel %vm2360_vm6, %v2135_v7, %v2585_v12  ;;  %v1200_v17 = vpop.f32.mrb[212].mxu0  ;;  %vm2361_vm7 = vcmp.gt.f32.partialorder %v2136_v13, 0.0  ;;  %v2586_v18 = vmul.f32 0.01, %v2136_v13  ;;  %v1656_v19 = vpop.f32.mrb[212].mxu1 }
 0x291   :  { %v2697_v20 = vsel %vm2247_vm3, %v2022_v11, %v2472_v15  ;;  %3036 = vst.msk [vmem:[%s6230_s4 + $0x6d0] sm:$0xff] %vm2817_vm4, %v2810_v16  ;;  %v1791_v21 = vmul.f32 %v5801_v57, %v1200_v17  ;;  %v3509_v22 = vpop.f32.mrb[213].mxu0  ;;  %v1905_v23 = vmul.f32 %v5801_v57, %v1656_v19  ;;  %v3737_v24 = vpop.f32.mrb[213].mxu1 }
 0x292   :  { %2923 = vst.msk [vmem:[%s6230_s4 + $0x348] sm:$0xff] %vm2817_vm4, %v2697_v20  ;;  %v2811_v25 = vsel %vm2361_vm7, %v2136_v13, %v2586_v18  ;;  %v1203_v26 = vpop.f32.mrb[214].mxu0  ;;  %v1659_v27 = vpop.f32.mrb[214].mxu1  ;;  %v3772_v13 = vld [vmem:[%s6229_s3] ss:$0 sm:$0xff] }
 0x293   :  { %v2023_v28 = vadd.f32 %v5812_v1, %v1791_v21  ;;  %3037 = vst.msk [vmem:[%s6230_s4 + $0x6d8] sm:$0xff] %vm2817_vm4, %v2811_v25  ;;  %v1792_v29 = vmul.f32 %v5801_v57, %v1203_v26  ;;  %v3510_v30 = vpop.f32.mrb[215].mxu0  ;;  %v2137_v31 = vadd.f32 %v5812_v1, %v1905_v23  ;;  %v1906_v32 = vmul.f32 %v5801_v57, %v1659_v27  ;;  %v3738_v33 = vpop.f32.mrb[215].mxu1 }
 0x295   :  { %vm2248_vm8 = vcmp.gt.f32.partialorder %v2023_v28, 0.0  ;;  %v2473_v34 = vmul.f32 0.01, %v2023_v28  ;;  %v2024_v46 = vadd.f32 %v5812_v1, %v1792_v29  ;;  %vm2362_vm9 = vcmp.gt.f32.partialorder %v2137_v31, 0.0 }
 0x296   :  { %v2587_v35 = vmul.f32 0.01, %v2137_v31  ;;  %v2138_v36 = vadd.f32 %v5812_v1, %v1906_v32 }
 0x297   :  { %v2698_v37 = vsel %vm2248_vm8, %v2023_v28, %v2473_v34  ;;  %vm2249_vm10 = vcmp.gt.f32.partialorder %v2024_v46, 0.0  ;;  %v2474_v38 = vmul.f32 0.01, %v2024_v46 }
 0x298   :  { %2924 = vst.msk [vmem:[%s6230_s4 + $0x350] sm:$0xff] %vm2817_vm4, %v2698_v37  ;;  %v2812_v52 = vsel %vm2362_vm9, %v2137_v31, %v2587_v35  ;;  %v1208_v39 = vpop.f32.mrb[216].mxu0  ;;  %vm2363_vm11 = vcmp.gt.f32.partialorder %v2138_v36, 0.0  ;;  %v2588_v40 = vmul.f32 0.01, %v2138_v36  ;;  %v1664_v41 = vpop.f32.mrb[216].mxu1 }
 0x299   :  { %v2699_v42 = vsel %vm2249_vm10, %v2024_v46, %v2474_v38  ;;  %3038 = vst.msk [vmem:[%s6230_s4 + $0x6e0] sm:$0xff] %vm2817_vm4, %v2812_v52  ;;  %v1793_v43 = vmul.f32 %v5801_v57, %v1208_v39  ;;  %v3513_v45 = vpop.f32.mrb[217].mxu0  ;;  %v1907_v47 = vmul.f32 %v5801_v57, %v1664_v41  ;;  %v3741_v48 = vpop.f32.mrb[217].mxu1 }
 0x29a   :  { %2925 = vst.msk [vmem:[%s6230_s4 + $0x358] sm:$0xff] %vm2817_vm4, %v2699_v42  ;;  %v2813_v49 = vsel %vm2363_vm11, %v2138_v36, %v2588_v40  ;;  %v1211_v50 = vpop.f32.mrb[218].mxu0  ;;  %v1667_v51 = vpop.f32.mrb[218].mxu1 }
 0x29b   :  { %v2025_v53 = vadd.f32 %v5812_v1, %v1793_v43  ;;  %3039 = vst.msk [vmem:[%s6230_s4 + $0x6e8] sm:$0xff] %vm2817_vm4, %v2813_v49  ;;  %v1794_v54 = vmul.f32 %v5801_v57, %v1211_v50  ;;  %v3514_v44 = vpop.f32.mrb[219].mxu0  ;;  %v2139_v56 = vadd.f32 %v5812_v1, %v1907_v47  ;;  %v1908_v58 = vmul.f32 %v5801_v57, %v1667_v51  ;;  %v3742_v55 = vpop.f32.mrb[219].mxu1 }
 0x29d   :  { %vm2250_vm12 = vcmp.gt.f32.partialorder %v2025_v53, 0.0  ;;  %v2475_v59 = vmul.f32 0.01, %v2025_v53  ;;  %v2026_v60 = vadd.f32 %v5812_v1, %v1794_v54  ;;  %vm2364_vm13 = vcmp.gt.f32.partialorder %v2139_v56, 0.0 }
 0x29e   :  { %v2589_v61 = vmul.f32 0.01, %v2139_v56  ;;  %v2140_v62 = vadd.f32 %v5812_v1, %v1908_v58  ;;  %v3771_v1 = vld [vmem:[%s6228_s2] ss:$0 sm:$0xff] }
 0x29f   :  { %v2700_v0 = vsel %vm2250_vm12, %v2025_v53, %v2475_v59  ;;  %vm2251_vm14 = vcmp.gt.f32.partialorder %v2026_v60, 0.0  ;;  %v2476_v63 = vmul.f32 0.01, %v2026_v60 }
 0x2a0   :  { %2926 = vst.msk [vmem:[%s6230_s4 + $0x360] sm:$0xff] %vm2817_vm4, %v2700_v0  ;;  %v2814_v2 = vsel %vm2364_vm13, %v2139_v56, %v2589_v61  ;;  %v1216_v3 = vpop.f32.mrb[220].mxu0  ;;  %vm2365_vm15 = vcmp.gt.f32.partialorder %v2140_v62, 0.0  ;;  %v2590_v57 = vmul.f32 0.01, %v2140_v62  ;;  %v1672_v4 = vpop.f32.mrb[220].mxu1 }
 0x2a1   :  { %v2701_v5 = vsel %vm2251_vm14, %v2026_v60, %v2476_v63  ;;  %3040 = vst.msk [vmem:[%s6230_s4 + $0x6f0] sm:$0xff] %vm2817_vm4, %v2814_v2  ;;  %v1795_v6 = vmul.f32 %v3771_v1, %v1216_v3  ;;  %v3517_v7 = vpop.f32.mrb[221].mxu0  ;;  %v1909_v8 = vmul.f32 %v3771_v1, %v1672_v4  ;;  %v3745_v9 = vpop.f32.mrb[221].mxu1 }
 0x2a2   :  { %2927 = vst.msk [vmem:[%s6230_s4 + $0x368] sm:$0xff] %vm2817_vm4, %v2701_v5  ;;  %v2815_v10 = vsel %vm2365_vm15, %v2140_v62, %v2590_v57  ;;  %v1219_v11 = vpop.f32.mrb[222].mxu0  ;;  %v1675_v12 = vpop.f32.mrb[222].mxu1 }
 0x2a3   :  { %v2027_v14 = vadd.f32 %v3772_v13, %v1795_v6  ;;  %3041 = vst.msk [vmem:[%s6230_s4 + $0x6f8] sm:$0xff] %vm2817_vm4, %v2815_v10  ;;  %v1796_v15 = vmul.f32 %v3771_v1, %v1219_v11  ;;  %v3518_v16 = vpop.f32.mrb[223].mxu0  ;;  %v2141_v17 = vadd.f32 %v3772_v13, %v1909_v8  ;;  %v3746_v18 = vpop.f32.mrb[223].mxu1 }
 0x2a5   :  { %vm2252_vm1 = vcmp.gt.f32.partialorder %v2027_v14, 0.0  ;;  %v2477_v19 = vmul.f32 0.01, %v2027_v14  ;;  %v2028_v20 = vadd.f32 %v3772_v13, %v1796_v15  ;;  %vm2366_vm0 = vcmp.gt.f32.partialorder %v2141_v17, 0.0 }
 0x2a6   :  { %v2591_v21 = vmul.f32 0.01, %v2141_v17 }
 0x2a7   :  { %v2702_v22 = vsel %vm2252_vm1, %v2027_v14, %v2477_v19  ;;  %vm2253_vm2 = vcmp.gt.f32.partialorder %v2028_v20, 0.0  ;;  %v2478_v23 = vmul.f32 0.01, %v2028_v20 }
 0x2a8   :  { %2928 = vst.msk [vmem:[%s6230_s4 + $0x370] sm:$0xff] %vm2817_vm4, %v2702_v22  ;;  %v2816_v24 = vsel %vm2366_vm0, %v2141_v17, %v2591_v21  ;;  %v1224_v25 = vpop.f32.mrb[224].mxu0 }
 0x2a9   :  { %v2703_v26 = vsel %vm2253_vm2, %v2028_v20, %v2478_v23  ;;  %3042 = vst.msk [vmem:[%s6230_s4 + $0x700] sm:$0xff] %vm2817_vm4, %v2816_v24  ;;  %v1797_v27 = vmul.f32 %v3771_v1, %v1224_v25  ;;  %v3521_v28 = vpop.f32.mrb[225].mxu0 }
 0x2aa   :  { %2929 = vst.msk [vmem:[%s6230_s4 + $0x378] sm:$0xff] %vm2817_vm4, %v2703_v26  ;;  %v1227_v29 = vpop.f32.mrb[226].mxu0 }
 0x2ab   :  { %v2029_v30 = vadd.f32 %v3772_v13, %v1797_v27  ;;  %v1798_v31 = vmul.f32 %v3771_v1, %v1227_v29  ;;  %v3522_v32 = vpop.f32.mrb[227].mxu0 }
 0x2ad   :  { %vm2254_vm5 = vcmp.gt.f32.partialorder %v2029_v30, 0.0  ;;  %v2479_v33 = vmul.f32 0.01, %v2029_v30  ;;  %v2030_v34 = vadd.f32 %v3772_v13, %v1798_v31 }
 0x2af   :  { %v2704_v46 = vsel %vm2254_vm5, %v2029_v30, %v2479_v33  ;;  %vm2255_vm6 = vcmp.gt.f32.partialorder %v2030_v34, 0.0  ;;  %v2480_v35 = vmul.f32 0.01, %v2030_v34 }
 0x2b0   :  { %2930 = vst.msk [vmem:[%s6230_s4 + $0x380] sm:$0xff] %vm2817_vm4, %v2704_v46 }
 0x2b1   :  { %v2705_v36 = vsel %vm2255_vm6, %v2030_v34, %v2480_v35 }
 0x2b2   :  { %2931 = vst.msk [vmem:[%s6230_s4 + $0x388] sm:$0xff] %vm2817_vm4, %v2705_v36 }

</bundles_post_ra>
